<compile_context>
chip_gen: v6e
topology: v6e:2x2x1
jax: 0.10.0
libtpu: 0.0.40
codegen_flags: <defaults>
</compile_context>

<pallas_src>
import numpy as np
import jax
import jax.numpy as jnp
from jax.experimental import pallas as pl
from jax.experimental.pallas import tpu as pltpu

LATENT_DIM = 100
SEQ_LENGTH = 60
N_FEATURES = 1
INIT_LENGTH = SEQ_LENGTH // 4          # 15
INIT_CHANNELS = 128
MID_CHANNELS = 64
MID_LENGTH = INIT_LENGTH * 2           # 30
OUT_PAD = 128                          # lane-dense padded output width (>= 60)
EPS = 1e-5
SLOPE = 0.2


# ----------------------------------------------------------------------------
# Pallas kernel: fused Generator forward for one (small) batch.
# ----------------------------------------------------------------------------
def generator_kernel(z_ref, w1_ref, b1_ref, g1_ref, bt1_ref,
                     wc_ref, b2f_ref, s_ref, st_ref, g2_ref, bt2_ref,
                     w3_ref, b3_ref, o_ref):
    B = z_ref.shape[0]

    # ---- fc: Linear(100 -> 1920) + BatchNorm1d(1920) (batch stats) + LeakyReLU(0.2)
    # fc weights were pre-permuted so x1 is position-major: column = l*128 + c.
    y1 = jnp.dot(z_ref[...].astype(jnp.bfloat16), w1_ref[...],
                 preferred_element_type=jnp.float32) + b1_ref[...]
    m1 = jnp.mean(y1, axis=0, keepdims=True)
    d1 = y1 - m1
    v1 = jnp.mean(d1 * d1, axis=0, keepdims=True)            # two-pass (stable) var
    x1 = d1 * jax.lax.rsqrt(v1 + EPS) * g1_ref[...] + bt1_ref[...]
    x1 = jnp.where(x1 > 0, x1, SLOPE * x1)                   # (B, 1920) f32

    # ---- deconv1: ConvTranspose1d(128->64, k=4, s=2, p=1) as 15 per-position
    #      matmuls against a single shared (384, 128) bf16 tap matrix.
    #      piece l lanes [0:64]  -> output position 2l   (taps k=3 on pos l-1, k=1 on pos l)
    #      piece l lanes [64:128]-> output position 2l+1 (taps k=2 on pos l,   k=0 on pos l+1)
    x1b = x1.astype(jnp.bfloat16)
    zpad = jnp.zeros((B, INIT_CHANNELS), jnp.bfloat16)
    x1p = jnp.concatenate([zpad, x1b, zpad], axis=-1)        # (B, 17*128) zero-padded positions
    wc = wc_ref[...]                                          # (384, 128) bf16, loop-invariant
    pieces = []
    for l in range(INIT_LENGTH):
        win = x1p[:, l * INIT_CHANNELS:(l + 3) * INIT_CHANNELS]          # (B, 384)
        pieces.append(jnp.dot(win, wc, preferred_element_type=jnp.float32))  # (B, 128)
    h = jnp.concatenate(pieces, axis=-1) + b2f_ref[...]      # (B, 1920) position-major (p*64+c)

    # ---- BatchNorm1d(64): per-channel stats over (batch, 30 positions) via 0/1
    #      channel-sum matrix S / expansion ST; two-pass variance; fused (2,64)@ST
    #      expansion of [scale, shift]; then LeakyReLU(0.2).
    inv_cnt = 1.0 / (B * MID_LENGTH)
    s_sum = jnp.dot(h.astype(jnp.bfloat16), s_ref[...],
                    preferred_element_type=jnp.float32)      # (B, 64) per-channel sums
    m2c = jnp.sum(s_sum, axis=0, keepdims=True) * inv_cnt    # (1, 64)
    m2 = jnp.dot(m2c.astype(jnp.bfloat16), st_ref[...],
                 preferred_element_type=jnp.float32)         # (1, 1920)
    d2 = h - m2
    q_sum = jnp.dot((d2 * d2).astype(jnp.bfloat16), s_ref[...],
                    preferred_element_type=jnp.float32)      # (B, 64)
    v2c = jnp.sum(q_sum, axis=0, keepdims=True) * inv_cnt    # (1, 64)
    sc_c = g2_ref[...] * jax.lax.rsqrt(v2c + EPS)            # (1, 64)
    ssf = jnp.dot(jnp.concatenate([sc_c, bt2_ref[...]], axis=0).astype(jnp.bfloat16),
                  st_ref[...], preferred_element_type=jnp.float32)       # (2, 1920)
    x2 = d2 * ssf[0:1, :] + ssf[1:2, :]
    x2 = jnp.where(x2 > 0, x2, SLOPE * x2)

    # ---- deconv2: ConvTranspose1d(64->1, k=4, s=2, p=1) as one (1920, 128) dense
    #      matmul (output lane-padded to 128) + Tanh.
    y3 = jnp.dot(x2.astype(jnp.bfloat16), w3_ref[...],
                 preferred_element_type=jnp.float32) + b3_ref[...]       # (B, 128)
    o_ref[...] = jnp.tanh(y3)


# ----------------------------------------------------------------------------
# Glue: parameter construction (deterministic) + structural lowering matrices.
# ----------------------------------------------------------------------------
def bf16_round(x):
    return np.asarray(jnp.asarray(x, jnp.float32).astype(jnp.bfloat16).astype(jnp.float32))


def conv_transpose_to_dense_pm(w, L_in, stride, padding):
    """w: (Ci, Co, K) ConvTranspose1d weight -> dense (L_in*Ci, L_out*Co),
    rows in position-major order (li*Ci + ci), cols (lo*Co + co)."""
    Ci, Co, K = w.shape
    L_out = (L_in - 1) * stride - 2 * padding + K
    dense = np.zeros((L_in, Ci, L_out, Co), dtype=np.float32)
    for li in range(L_in):
        for k in range(K):
            lo = li * stride - padding + k
            if 0 <= lo < L_out:
                dense[li, :, lo, :] += w[:, :, k]
    return dense.reshape(L_in * Ci, L_out * Co)


def init_params(key):
    ks = jax.random.split(key, 10)
    f = lambda k, shape: np.asarray(0.1 * jax.random.normal(k, shape, jnp.float32))

    # matmul weights are bf16-rounded once so the kernel and the reference use
    # numerically identical weight values.
    w1 = bf16_round(f(ks[0], (LATENT_DIM, INIT_CHANNELS * INIT_LENGTH)))
    b1 = f(ks[1], (INIT_CHANNELS * INIT_LENGTH,))
    g1 = 1.0 + f(ks[2], (INIT_CHANNELS * INIT_LENGTH,))
    bt1 = f(ks[3], (INIT_CHANNELS * INIT_LENGTH,))

    wT1 = bf16_round(f(ks[4], (INIT_CHANNELS, MID_CHANNELS, 4)))   # (Ci, Co, K)
    bT1 = f(ks[5], (MID_CHANNELS,))
    g2 = 1.0 + f(ks[6], (MID_CHANNELS,))
    bt2 = f(ks[7], (MID_CHANNELS,))

    wT2 = bf16_round(f(ks[8], (MID_CHANNELS, N_FEATURES, 4)))
    bT2 = f(ks[9], (N_FEATURES,))

    raw = dict(w1=w1, b1=b1, g1=g1, bt1=bt1, wT1=wT1, bT1=bT1,
               g2=g2, bt2=bt2, wT2=wT2, bT2=bT2)

    # fc column permutation: channel-major (c*L + l) -> position-major (l*C + c)
    n = np.arange(INIT_CHANNELS * INIT_LENGTH)
    perm = (n % INIT_CHANNELS) * INIT_LENGTH + (n // INIT_CHANNELS)

    # deconv1 shared per-window tap matrix: rows = [pos l-1 | pos l | pos l+1] channels,
    # cols = [even output (64) | odd output (64)] channels.
    wc = np.zeros((3 * INIT_CHANNELS, 2 * MID_CHANNELS), np.float32)
    wc[0 * INIT_CHANNELS:1 * INIT_CHANNELS, :MID_CHANNELS] = wT1[:, :, 3]
    wc[1 * INIT_CHANNELS:2 * INIT_CHANNELS, :MID_CHANNELS] = wT1[:, :, 1]
    wc[1 * INIT_CHANNELS:2 * INIT_CHANNELS, MID_CHANNELS:] = wT1[:, :, 2]
    wc[2 * INIT_CHANNELS:3 * INIT_CHANNELS, MID_CHANNELS:] = wT1[:, :, 0]

    # deconv2 dense matrix (position-major rows), output lane-padded to OUT_PAD.
    w3 = conv_transpose_to_dense_pm(wT2, MID_LENGTH, 2, 1)          # (1920, 60)
    w3p = np.zeros((MID_CHANNELS * MID_LENGTH, OUT_PAD), np.float32)
    w3p[:, :w3.shape[1]] = w3

    # BN2 channel-sum / expansion matrices for position-major layout (p*64 + c).
    S = np.tile(np.eye(MID_CHANNELS, dtype=np.float32), (MID_LENGTH, 1))  # (1920, 64)

    b3f = np.zeros((OUT_PAD,), np.float32)
    b3f[:SEQ_LENGTH * N_FEATURES] = np.tile(bT2, SEQ_LENGTH)

    dev = dict(
        w1=jnp.asarray(w1[:, perm], jnp.bfloat16),
        b1=jnp.asarray(b1[perm][None, :]),
        g1=jnp.asarray(g1[perm][None, :]),
        bt1=jnp.asarray(bt1[perm][None, :]),
        wc=jnp.asarray(wc, jnp.bfloat16),
        b2f=jnp.asarray(np.tile(bT1, MID_LENGTH)[None, :]),
        S=jnp.asarray(S, jnp.bfloat16),
        ST=jnp.asarray(np.ascontiguousarray(S.T), jnp.bfloat16),
        g2=jnp.asarray(g2[None, :]),
        bt2=jnp.asarray(bt2[None, :]),
        w3=jnp.asarray(w3p, jnp.bfloat16),
        b3f=jnp.asarray(b3f[None, :]),
    )
    return dev, raw


def generator_forward(z, p):
    B = z.shape[0]
    args = (z, p["w1"], p["b1"], p["g1"], p["bt1"],
            p["wc"], p["b2f"], p["S"], p["ST"], p["g2"], p["bt2"],
            p["w3"], p["b3f"])
    out_flat = pl.pallas_call(
        generator_kernel,
        out_shape=jax.ShapeDtypeStruct((B, OUT_PAD), jnp.float32),
        in_specs=[pl.BlockSpec(memory_space=pltpu.MemorySpace.VMEM) for _ in args],
        out_specs=pl.BlockSpec(memory_space=pltpu.MemorySpace.VMEM),
        compiler_params=pltpu.CompilerParams(vmem_limit_bytes=32 * 1024 * 1024),
    )(*args)
    # (B, 128) -> slice real outputs -> (B, seq, n_features)  (== out.permute(0, 2, 1))
    return out_flat[:, :SEQ_LENGTH * N_FEATURES].reshape(B, SEQ_LENGTH, N_FEATURES)


# ----------------------------------------------------------------------------
# Pure-numpy reference (mirrors PyTorch semantics) for a sanity check.
# ----------------------------------------------------------------------------
def reference_numpy(z, r):
    def conv_t(x, w, b, stride, pad):
        B, Ci, Lin = x.shape
        _, Co, K = w.shape
        Lout = (Lin - 1) * stride - 2 * pad + K
        out = np.zeros((B, Co, Lout), np.float32)
        for li in range(Lin):
            for k in range(K):
                lo = li * stride - pad + k
                if 0 <= lo < Lout:
                    out[:, :, lo] += np.einsum("bi,io->bo", x[:, :, li], w[:, :, k])
        return out + b[None, :, None]

    y1 = z @ r["w1"] + r["b1"]
    m, v = y1.mean(0), y1.var(0)
    x1 = (y1 - m) / np.sqrt(v + EPS) * r["g1"] + r["bt1"]
    x1 = np.where(x1 > 0, x1, SLOPE * x1)
    h = x1.reshape(z.shape[0], INIT_CHANNELS, INIT_LENGTH)
    h = conv_t(h, r["wT1"], r["bT1"], 2, 1)
    m = h.mean(axis=(0, 2), keepdims=True)
    v = h.var(axis=(0, 2), keepdims=True)
    h = (h - m) / np.sqrt(v + EPS) * r["g2"][None, :, None] + r["bt2"][None, :, None]
    h = np.where(h > 0, h, SLOPE * h)
    o = np.tanh(conv_t(h, r["wT2"], r["bT2"], 2, 1))
    return o.transpose(0, 2, 1)


if __name__ == "__main__":
    key = jax.random.PRNGKey(0)
    kp, kz = jax.random.split(key)
    params, raw = init_params(kp)

    B = 4
    z = jax.random.normal(kz, (B, LATENT_DIM), jnp.float32)

    out = jax.block_until_ready(generator_forward(z, params))
    assert out.shape == (B, SEQ_LENGTH, N_FEATURES), out.shape

    ref = reference_numpy(np.asarray(z), raw)
    np.testing.assert_allclose(np.asarray(out), ref, atol=5e-2, rtol=5e-2)

    print("KERNEL_OK")
</pallas_src>

<mosaic_0001>
module attributes {stable_mosaic.version = 11 : i64} {
  func.func @generator_kernel(%arg0: memref<4x100xf32, #tpu.memory_space<vmem>>, %arg1: memref<100x1920xbf16, #tpu.memory_space<vmem>>, %arg2: memref<1x1920xf32, #tpu.memory_space<vmem>>, %arg3: memref<1x1920xf32, #tpu.memory_space<vmem>>, %arg4: memref<1x1920xf32, #tpu.memory_space<vmem>>, %arg5: memref<384x128xbf16, #tpu.memory_space<vmem>>, %arg6: memref<1x1920xf32, #tpu.memory_space<vmem>>, %arg7: memref<1920x64xbf16, #tpu.memory_space<vmem>>, %arg8: memref<64x1920xbf16, #tpu.memory_space<vmem>>, %arg9: memref<1x64xf32, #tpu.memory_space<vmem>>, %arg10: memref<1x64xf32, #tpu.memory_space<vmem>>, %arg11: memref<1920x128xbf16, #tpu.memory_space<vmem>>, %arg12: memref<1x128xf32, #tpu.memory_space<vmem>>, %arg13: memref<4x128xf32, #tpu.memory_space<vmem>>) attributes {dimension_semantics = [], scalar_prefetch = 0 : i64, scratch_operands = 0 : i64, tpu.core_type = #tpu.core_type<tc>} {
    %c0 = arith.constant 0 : index
    %c0_0 = arith.constant 0 : index
    %0 = vector.load %arg0[%c0, %c0_0] : memref<4x100xf32, #tpu.memory_space<vmem>>, vector<4x100xf32>
    %1 = arith.truncf %0 : vector<4x100xf32> to vector<4x100xbf16>
    %c0_1 = arith.constant 0 : index
    %c0_2 = arith.constant 0 : index
    %2 = vector.load %arg1[%c0_1, %c0_2] : memref<100x1920xbf16, #tpu.memory_space<vmem>>, vector<100x1920xbf16>
    %cst = arith.constant dense<0.000000e+00> : vector<4x1920xf32>
    %3 = tpu.matmul %1, %2, %cst {dimension_numbers = #tpu.dot_dimension_numbers<[1], [0], [0], [1], [0, 0, 1, 1], [], []>} : vector<4x100xbf16>, vector<100x1920xbf16>, vector<4x1920xf32> -> vector<4x1920xf32>
    %c0_3 = arith.constant 0 : index
    %c0_4 = arith.constant 0 : index
    %4 = vector.load %arg2[%c0_3, %c0_4] : memref<1x1920xf32, #tpu.memory_space<vmem>>, vector<1x1920xf32>
    %5 = vector.broadcast %4 : vector<1x1920xf32> to vector<4x1920xf32>
    %6 = arith.addf %3, %5 : vector<4x1920xf32>
    %cst_5 = arith.constant dense<0.000000e+00> : vector<1920xf32>
    %7 = vector.multi_reduction <add>, %6, %cst_5 [0] : vector<4x1920xf32> to vector<1920xf32>
    %8 = vector.shape_cast %7 : vector<1920xf32> to vector<1x1920xf32>
    %cst_6 = arith.constant 4.000000e+00 : f32
    %9 = vector.broadcast %cst_6 : f32 to vector<1x1920xf32>
    %10 = arith.divf %8, %9 : vector<1x1920xf32>
    %11 = vector.broadcast %10 : vector<1x1920xf32> to vector<4x1920xf32>
    %12 = arith.subf %6, %11 : vector<4x1920xf32>
    %13 = arith.mulf %12, %12 : vector<4x1920xf32>
    %cst_7 = arith.constant dense<0.000000e+00> : vector<1920xf32>
    %14 = vector.multi_reduction <add>, %13, %cst_7 [0] : vector<4x1920xf32> to vector<1920xf32>
    %15 = vector.shape_cast %14 : vector<1920xf32> to vector<1x1920xf32>
    %cst_8 = arith.constant 4.000000e+00 : f32
    %16 = vector.broadcast %cst_8 : f32 to vector<1x1920xf32>
    %17 = arith.divf %15, %16 : vector<1x1920xf32>
    %cst_9 = arith.constant 9.99999974E-6 : f32
    %18 = vector.broadcast %cst_9 : f32 to vector<1x1920xf32>
    %19 = arith.addf %17, %18 : vector<1x1920xf32>
    %20 = math.rsqrt %19 : vector<1x1920xf32>
    %21 = vector.broadcast %20 : vector<1x1920xf32> to vector<4x1920xf32>
    %22 = arith.mulf %12, %21 : vector<4x1920xf32>
    %c0_10 = arith.constant 0 : index
    %c0_11 = arith.constant 0 : index
    %23 = vector.load %arg3[%c0_10, %c0_11] : memref<1x1920xf32, #tpu.memory_space<vmem>>, vector<1x1920xf32>
    %24 = vector.broadcast %23 : vector<1x1920xf32> to vector<4x1920xf32>
    %25 = arith.mulf %22, %24 : vector<4x1920xf32>
    %c0_12 = arith.constant 0 : index
    %c0_13 = arith.constant 0 : index
    %26 = vector.load %arg4[%c0_12, %c0_13] : memref<1x1920xf32, #tpu.memory_space<vmem>>, vector<1x1920xf32>
    %27 = vector.broadcast %26 : vector<1x1920xf32> to vector<4x1920xf32>
    %28 = arith.addf %25, %27 : vector<4x1920xf32>
    %cst_14 = arith.constant 0.000000e+00 : f32
    %29 = vector.broadcast %cst_14 : f32 to vector<4x1920xf32>
    %30 = arith.cmpf ogt, %28, %29 : vector<4x1920xf32>
    %cst_15 = arith.constant 2.000000e-01 : f32
    %31 = vector.broadcast %cst_15 : f32 to vector<4x1920xf32>
    %32 = arith.mulf %31, %28 : vector<4x1920xf32>
    %33 = arith.select %30, %28, %32 : vector<4x1920xi1>, vector<4x1920xf32>
    %34 = arith.truncf %33 : vector<4x1920xf32> to vector<4x1920xbf16>
    %cst_16 = arith.constant 0.000000e+00 : bf16
    %35 = vector.broadcast %cst_16 : bf16 to vector<4x128xbf16>
    %36 = tpu.concatenate %35, %34, %35 in 1 : vector<4x128xbf16>, vector<4x1920xbf16>, vector<4x128xbf16> -> vector<4x2176xbf16>
    %c0_17 = arith.constant 0 : index
    %c0_18 = arith.constant 0 : index
    %37 = vector.load %arg5[%c0_17, %c0_18] : memref<384x128xbf16, #tpu.memory_space<vmem>>, vector<384x128xbf16>
    %38 = vector.extract_strided_slice %36 {offsets = [0, 0], sizes = [4, 384], strides = [1, 1]} : vector<4x2176xbf16> to vector<4x384xbf16>
    %cst_19 = arith.constant dense<0.000000e+00> : vector<4x128xf32>
    %39 = tpu.matmul %38, %37, %cst_19 {dimension_numbers = #tpu.dot_dimension_numbers<[1], [0], [0], [1], [0, 0, 1, 1], [], []>} : vector<4x384xbf16>, vector<384x128xbf16>, vector<4x128xf32> -> vector<4x128xf32>
    %40 = vector.extract_strided_slice %36 {offsets = [0, 128], sizes = [4, 384], strides = [1, 1]} : vector<4x2176xbf16> to vector<4x384xbf16>
    %cst_20 = arith.constant dense<0.000000e+00> : vector<4x128xf32>
    %41 = tpu.matmul %40, %37, %cst_20 {dimension_numbers = #tpu.dot_dimension_numbers<[1], [0], [0], [1], [0, 0, 1, 1], [], []>} : vector<4x384xbf16>, vector<384x128xbf16>, vector<4x128xf32> -> vector<4x128xf32>
    %42 = vector.extract_strided_slice %36 {offsets = [0, 256], sizes = [4, 384], strides = [1, 1]} : vector<4x2176xbf16> to vector<4x384xbf16>
    %cst_21 = arith.constant dense<0.000000e+00> : vector<4x128xf32>
    %43 = tpu.matmul %42, %37, %cst_21 {dimension_numbers = #tpu.dot_dimension_numbers<[1], [0], [0], [1], [0, 0, 1, 1], [], []>} : vector<4x384xbf16>, vector<384x128xbf16>, vector<4x128xf32> -> vector<4x128xf32>
    %44 = vector.extract_strided_slice %36 {offsets = [0, 384], sizes = [4, 384], strides = [1, 1]} : vector<4x2176xbf16> to vector<4x384xbf16>
    %cst_22 = arith.constant dense<0.000000e+00> : vector<4x128xf32>
    %45 = tpu.matmul %44, %37, %cst_22 {dimension_numbers = #tpu.dot_dimension_numbers<[1], [0], [0], [1], [0, 0, 1, 1], [], []>} : vector<4x384xbf16>, vector<384x128xbf16>, vector<4x128xf32> -> vector<4x128xf32>
    %46 = vector.extract_strided_slice %36 {offsets = [0, 512], sizes = [4, 384], strides = [1, 1]} : vector<4x2176xbf16> to vector<4x384xbf16>
    %cst_23 = arith.constant dense<0.000000e+00> : vector<4x128xf32>
    %47 = tpu.matmul %46, %37, %cst_23 {dimension_numbers = #tpu.dot_dimension_numbers<[1], [0], [0], [1], [0, 0, 1, 1], [], []>} : vector<4x384xbf16>, vector<384x128xbf16>, vector<4x128xf32> -> vector<4x128xf32>
    %48 = vector.extract_strided_slice %36 {offsets = [0, 640], sizes = [4, 384], strides = [1, 1]} : vector<4x2176xbf16> to vector<4x384xbf16>
    %cst_24 = arith.constant dense<0.000000e+00> : vector<4x128xf32>
    %49 = tpu.matmul %48, %37, %cst_24 {dimension_numbers = #tpu.dot_dimension_numbers<[1], [0], [0], [1], [0, 0, 1, 1], [], []>} : vector<4x384xbf16>, vector<384x128xbf16>, vector<4x128xf32> -> vector<4x128xf32>
    %50 = vector.extract_strided_slice %36 {offsets = [0, 768], sizes = [4, 384], strides = [1, 1]} : vector<4x2176xbf16> to vector<4x384xbf16>
    %cst_25 = arith.constant dense<0.000000e+00> : vector<4x128xf32>
    %51 = tpu.matmul %50, %37, %cst_25 {dimension_numbers = #tpu.dot_dimension_numbers<[1], [0], [0], [1], [0, 0, 1, 1], [], []>} : vector<4x384xbf16>, vector<384x128xbf16>, vector<4x128xf32> -> vector<4x128xf32>
    %52 = vector.extract_strided_slice %36 {offsets = [0, 896], sizes = [4, 384], strides = [1, 1]} : vector<4x2176xbf16> to vector<4x384xbf16>
    %cst_26 = arith.constant dense<0.000000e+00> : vector<4x128xf32>
    %53 = tpu.matmul %52, %37, %cst_26 {dimension_numbers = #tpu.dot_dimension_numbers<[1], [0], [0], [1], [0, 0, 1, 1], [], []>} : vector<4x384xbf16>, vector<384x128xbf16>, vector<4x128xf32> -> vector<4x128xf32>
    %54 = vector.extract_strided_slice %36 {offsets = [0, 1024], sizes = [4, 384], strides = [1, 1]} : vector<4x2176xbf16> to vector<4x384xbf16>
    %cst_27 = arith.constant dense<0.000000e+00> : vector<4x128xf32>
    %55 = tpu.matmul %54, %37, %cst_27 {dimension_numbers = #tpu.dot_dimension_numbers<[1], [0], [0], [1], [0, 0, 1, 1], [], []>} : vector<4x384xbf16>, vector<384x128xbf16>, vector<4x128xf32> -> vector<4x128xf32>
    %56 = vector.extract_strided_slice %36 {offsets = [0, 1152], sizes = [4, 384], strides = [1, 1]} : vector<4x2176xbf16> to vector<4x384xbf16>
    %cst_28 = arith.constant dense<0.000000e+00> : vector<4x128xf32>
    %57 = tpu.matmul %56, %37, %cst_28 {dimension_numbers = #tpu.dot_dimension_numbers<[1], [0], [0], [1], [0, 0, 1, 1], [], []>} : vector<4x384xbf16>, vector<384x128xbf16>, vector<4x128xf32> -> vector<4x128xf32>
    %58 = vector.extract_strided_slice %36 {offsets = [0, 1280], sizes = [4, 384], strides = [1, 1]} : vector<4x2176xbf16> to vector<4x384xbf16>
    %cst_29 = arith.constant dense<0.000000e+00> : vector<4x128xf32>
    %59 = tpu.matmul %58, %37, %cst_29 {dimension_numbers = #tpu.dot_dimension_numbers<[1], [0], [0], [1], [0, 0, 1, 1], [], []>} : vector<4x384xbf16>, vector<384x128xbf16>, vector<4x128xf32> -> vector<4x128xf32>
    %60 = vector.extract_strided_slice %36 {offsets = [0, 1408], sizes = [4, 384], strides = [1, 1]} : vector<4x2176xbf16> to vector<4x384xbf16>
    %cst_30 = arith.constant dense<0.000000e+00> : vector<4x128xf32>
    %61 = tpu.matmul %60, %37, %cst_30 {dimension_numbers = #tpu.dot_dimension_numbers<[1], [0], [0], [1], [0, 0, 1, 1], [], []>} : vector<4x384xbf16>, vector<384x128xbf16>, vector<4x128xf32> -> vector<4x128xf32>
    %62 = vector.extract_strided_slice %36 {offsets = [0, 1536], sizes = [4, 384], strides = [1, 1]} : vector<4x2176xbf16> to vector<4x384xbf16>
    %cst_31 = arith.constant dense<0.000000e+00> : vector<4x128xf32>
    %63 = tpu.matmul %62, %37, %cst_31 {dimension_numbers = #tpu.dot_dimension_numbers<[1], [0], [0], [1], [0, 0, 1, 1], [], []>} : vector<4x384xbf16>, vector<384x128xbf16>, vector<4x128xf32> -> vector<4x128xf32>
    %64 = vector.extract_strided_slice %36 {offsets = [0, 1664], sizes = [4, 384], strides = [1, 1]} : vector<4x2176xbf16> to vector<4x384xbf16>
    %cst_32 = arith.constant dense<0.000000e+00> : vector<4x128xf32>
    %65 = tpu.matmul %64, %37, %cst_32 {dimension_numbers = #tpu.dot_dimension_numbers<[1], [0], [0], [1], [0, 0, 1, 1], [], []>} : vector<4x384xbf16>, vector<384x128xbf16>, vector<4x128xf32> -> vector<4x128xf32>
    %66 = vector.extract_strided_slice %36 {offsets = [0, 1792], sizes = [4, 384], strides = [1, 1]} : vector<4x2176xbf16> to vector<4x384xbf16>
    %cst_33 = arith.constant dense<0.000000e+00> : vector<4x128xf32>
    %67 = tpu.matmul %66, %37, %cst_33 {dimension_numbers = #tpu.dot_dimension_numbers<[1], [0], [0], [1], [0, 0, 1, 1], [], []>} : vector<4x384xbf16>, vector<384x128xbf16>, vector<4x128xf32> -> vector<4x128xf32>
    %68 = tpu.concatenate %39, %41, %43, %45, %47, %49, %51, %53, %55, %57, %59, %61, %63, %65, %67 in 1 : vector<4x128xf32>, vector<4x128xf32>, vector<4x128xf32>, vector<4x128xf32>, vector<4x128xf32>, vector<4x128xf32>, vector<4x128xf32>, vector<4x128xf32>, vector<4x128xf32>, vector<4x128xf32>, vector<4x128xf32>, vector<4x128xf32>, vector<4x128xf32>, vector<4x128xf32>, vector<4x128xf32> -> vector<4x1920xf32>
    %c0_34 = arith.constant 0 : index
    %c0_35 = arith.constant 0 : index
    %69 = vector.load %arg6[%c0_34, %c0_35] : memref<1x1920xf32, #tpu.memory_space<vmem>>, vector<1x1920xf32>
    %70 = vector.broadcast %69 : vector<1x1920xf32> to vector<4x1920xf32>
    %71 = arith.addf %68, %70 : vector<4x1920xf32>
    %72 = arith.truncf %71 : vector<4x1920xf32> to vector<4x1920xbf16>
    %c0_36 = arith.constant 0 : index
    %c0_37 = arith.constant 0 : index
    %73 = vector.load %arg7[%c0_36, %c0_37] : memref<1920x64xbf16, #tpu.memory_space<vmem>>, vector<1920x64xbf16>
    %cst_38 = arith.constant dense<0.000000e+00> : vector<4x64xf32>
    %74 = tpu.matmul %72, %73, %cst_38 {dimension_numbers = #tpu.dot_dimension_numbers<[1], [0], [0], [1], [0, 0, 1, 1], [], []>} : vector<4x1920xbf16>, vector<1920x64xbf16>, vector<4x64xf32> -> vector<4x64xf32>
    %cst_39 = arith.constant dense<0.000000e+00> : vector<64xf32>
    %75 = vector.multi_reduction <add>, %74, %cst_39 [0] : vector<4x64xf32> to vector<64xf32>
    %76 = vector.shape_cast %75 : vector<64xf32> to vector<1x64xf32>
    %cst_40 = arith.constant 0.00833333377 : f32
    %77 = vector.broadcast %cst_40 : f32 to vector<1x64xf32>
    %78 = arith.mulf %76, %77 : vector<1x64xf32>
    %79 = arith.truncf %78 : vector<1x64xf32> to vector<1x64xbf16>
    %c0_41 = arith.constant 0 : index
    %c0_42 = arith.constant 0 : index
    %80 = vector.load %arg8[%c0_41, %c0_42] : memref<64x1920xbf16, #tpu.memory_space<vmem>>, vector<64x1920xbf16>
    %cst_43 = arith.constant dense<0.000000e+00> : vector<1x1920xf32>
    %81 = tpu.matmul %79, %80, %cst_43 {dimension_numbers = #tpu.dot_dimension_numbers<[1], [0], [0], [1], [0, 0, 1, 1], [], []>} : vector<1x64xbf16>, vector<64x1920xbf16>, vector<1x1920xf32> -> vector<1x1920xf32>
    %82 = vector.broadcast %81 : vector<1x1920xf32> to vector<4x1920xf32>
    %83 = arith.subf %71, %82 : vector<4x1920xf32>
    %84 = arith.mulf %83, %83 : vector<4x1920xf32>
    %85 = arith.truncf %84 : vector<4x1920xf32> to vector<4x1920xbf16>
    %c0_44 = arith.constant 0 : index
    %c0_45 = arith.constant 0 : index
    %86 = vector.load %arg7[%c0_44, %c0_45] : memref<1920x64xbf16, #tpu.memory_space<vmem>>, vector<1920x64xbf16>
    %cst_46 = arith.constant dense<0.000000e+00> : vector<4x64xf32>
    %87 = tpu.matmul %85, %86, %cst_46 {dimension_numbers = #tpu.dot_dimension_numbers<[1], [0], [0], [1], [0, 0, 1, 1], [], []>} : vector<4x1920xbf16>, vector<1920x64xbf16>, vector<4x64xf32> -> vector<4x64xf32>
    %cst_47 = arith.constant dense<0.000000e+00> : vector<64xf32>
    %88 = vector.multi_reduction <add>, %87, %cst_47 [0] : vector<4x64xf32> to vector<64xf32>
    %89 = vector.shape_cast %88 : vector<64xf32> to vector<1x64xf32>
    %cst_48 = arith.constant 0.00833333377 : f32
    %90 = vector.broadcast %cst_48 : f32 to vector<1x64xf32>
    %91 = arith.mulf %89, %90 : vector<1x64xf32>
    %c0_49 = arith.constant 0 : index
    %c0_50 = arith.constant 0 : index
    %92 = vector.load %arg9[%c0_49, %c0_50] : memref<1x64xf32, #tpu.memory_space<vmem>>, vector<1x64xf32>
    %cst_51 = arith.constant 9.99999974E-6 : f32
    %93 = vector.broadcast %cst_51 : f32 to vector<1x64xf32>
    %94 = arith.addf %91, %93 : vector<1x64xf32>
    %95 = math.rsqrt %94 : vector<1x64xf32>
    %96 = arith.mulf %92, %95 : vector<1x64xf32>
    %c0_52 = arith.constant 0 : index
    %c0_53 = arith.constant 0 : index
    %97 = vector.load %arg10[%c0_52, %c0_53] : memref<1x64xf32, #tpu.memory_space<vmem>>, vector<1x64xf32>
    %98 = tpu.concatenate %96, %97 in 0 : vector<1x64xf32>, vector<1x64xf32> -> vector<2x64xf32>
    %99 = arith.truncf %98 : vector<2x64xf32> to vector<2x64xbf16>
    %c0_54 = arith.constant 0 : index
    %c0_55 = arith.constant 0 : index
    %100 = vector.load %arg8[%c0_54, %c0_55] : memref<64x1920xbf16, #tpu.memory_space<vmem>>, vector<64x1920xbf16>
    %cst_56 = arith.constant dense<0.000000e+00> : vector<2x1920xf32>
    %101 = tpu.matmul %99, %100, %cst_56 {dimension_numbers = #tpu.dot_dimension_numbers<[1], [0], [0], [1], [0, 0, 1, 1], [], []>} : vector<2x64xbf16>, vector<64x1920xbf16>, vector<2x1920xf32> -> vector<2x1920xf32>
    %102 = vector.extract_strided_slice %101 {offsets = [0, 0], sizes = [1, 1920], strides = [1, 1]} : vector<2x1920xf32> to vector<1x1920xf32>
    %103 = vector.broadcast %102 : vector<1x1920xf32> to vector<4x1920xf32>
    %104 = arith.mulf %83, %103 : vector<4x1920xf32>
    %105 = vector.extract_strided_slice %101 {offsets = [1, 0], sizes = [1, 1920], strides = [1, 1]} : vector<2x1920xf32> to vector<1x1920xf32>
    %106 = vector.broadcast %105 : vector<1x1920xf32> to vector<4x1920xf32>
    %107 = arith.addf %104, %106 : vector<4x1920xf32>
    %cst_57 = arith.constant 0.000000e+00 : f32
    %108 = vector.broadcast %cst_57 : f32 to vector<4x1920xf32>
    %109 = arith.cmpf ogt, %107, %108 : vector<4x1920xf32>
    %cst_58 = arith.constant 2.000000e-01 : f32
    %110 = vector.broadcast %cst_58 : f32 to vector<4x1920xf32>
    %111 = arith.mulf %110, %107 : vector<4x1920xf32>
    %112 = arith.select %109, %107, %111 : vector<4x1920xi1>, vector<4x1920xf32>
    %113 = arith.truncf %112 : vector<4x1920xf32> to vector<4x1920xbf16>
    %c0_59 = arith.constant 0 : index
    %c0_60 = arith.constant 0 : index
    %114 = vector.load %arg11[%c0_59, %c0_60] : memref<1920x128xbf16, #tpu.memory_space<vmem>>, vector<1920x128xbf16>
    %cst_61 = arith.constant dense<0.000000e+00> : vector<4x128xf32>
    %115 = tpu.matmul %113, %114, %cst_61 {dimension_numbers = #tpu.dot_dimension_numbers<[1], [0], [0], [1], [0, 0, 1, 1], [], []>} : vector<4x1920xbf16>, vector<1920x128xbf16>, vector<4x128xf32> -> vector<4x128xf32>
    %c0_62 = arith.constant 0 : index
    %c0_63 = arith.constant 0 : index
    %116 = vector.load %arg12[%c0_62, %c0_63] : memref<1x128xf32, #tpu.memory_space<vmem>>, vector<1x128xf32>
    %117 = vector.broadcast %116 : vector<1x128xf32> to vector<4x128xf32>
    %118 = arith.addf %115, %117 : vector<4x128xf32>
    %119 = math.tanh %118 : vector<4x128xf32>
    %c0_64 = arith.constant 0 : index
    %c0_65 = arith.constant 0 : index
    %120 = vector.load %arg13[%c0_64, %c0_65] : memref<4x128xf32, #tpu.memory_space<vmem>>, vector<4x128xf32>
    tpu.vector_store %arg13[%c0_64, %c0_65], %119 {strides = array<i32>} : memref<4x128xf32, #tpu.memory_space<vmem>>, vector<4x128xf32>,
    return
  }
}

</mosaic_0001>

<bundles_post_ra>
// kernel: tpu_custom_call.1
= control target key start
LH: loop header
LB: loop body
LE: loop exit
PB: predicated region body
PF: predicated region fallthrough
CT: control target
= control target key end

     0   :  { %18 = vsyncpa [#allocation3], 0  ;;  %s13294_s0 = inlined_call_operand.vmem [shape: f32[4,100], index: 0, kind: input, shape index: {}]   ;;  %s13295_s1 = inlined_call_operand.hbm [shape: bf16[100,1920], index: 1, kind: input, shape index: {}]   ;;  %s13296_s2 = inlined_call_operand.vmem [shape: f32[1,1920], index: 2, kind: input, shape index: {}]   ;;  %s13297_s3 = inlined_call_operand.hbm [shape: f32[1,1920], index: 3, kind: input, shape index: {}]   ;;  %s13298_s4 = inlined_call_operand.hbm [shape: f32[1,1920], index: 4, kind: input, shape index: {}]   ;;  %s13299_s5 = inlined_call_operand.hbm [shape: bf16[384,128], index: 5, kind: input, shape index: {}]   ;;  %s13300_s6 = inlined_call_operand.hbm [shape: f32[1,1920], index: 6, kind: input, shape index: {}]   ;;  %s13301_s7 = inlined_call_operand.vmem [shape: bf16[1920,64], index: 7, kind: input, shape index: {}]   ;;  %s13302_s8 = inlined_call_operand.vmem [shape: bf16[64,1920], index: 8, kind: input, shape index: {}]   ;;  %s13303_s9 = inlined_call_operand.vmem [shape: f32[1,64], index: 9, kind: input, shape index: {}]   ;;  %s13304_s10 = inlined_call_operand.hbm [shape: f32[1,64], index: 10, kind: input, shape index: {}]   ;;  %s13305_s11 = inlined_call_operand.vmem [shape: bf16[1920,128], index: 11, kind: input, shape index: {}]   ;;  %s13306_s12 = inlined_call_operand.hbm [shape: f32[1,128], index: 12, kind: input, shape index: {}]   ;;  %s13307_s13 = inlined_call_operand.hbm [shape: f32[4,128], index: 13, kind: output, shape index: {}]  }
   0x1   :  { %19 = vsyncpa [#allocation6], 0 }
   0x2   :  { %20 = vsyncpa [#allocation9], 0 }
   0x3   :  { %21 = vsyncpa [#allocation12], 0 }
   0x4   :  { %22 = vsyncpa [#allocation4], 0  ;;  %s10231_s25 = smov [#allocation5]   ;;  %s10232_s27 = smov [#allocation8]  }
   0x5   :  { %s45_s26 = sshll.u32 %s10231_s25, 4  ;;  %s64_s28 = sshll.u32 %s10232_s27, 4  ;;  %s46_s26 = int_to_ptr.vmem [resolvable:$true] %s45_s26  ;;  %s65_s28 = int_to_ptr.vmem [resolvable:$true] %s64_s28 }
   0x6   :  { %s10069_s29 = scalar_lea.vmem %s46_s26, 240  ;;  %s10073_s30 = scalar_lea.vmem %s46_s26, 256 }
   0x7   :  { %p10070_p0 = scmp.ne.s32.totalorder %s46_s26, %s10069_s29  ;;  %p10074_p1 = scmp.lt.s32.totalorder %s46_s26, %s46_s26 }
   0x8   :  { %p10075_p2 = scmp.lt.s32.totalorder %s10073_s30, %s10069_s29 }
   0xa   :  { %p10076_p3 = por %p10075_p2, %p10074_p1 }
   0xc   :  { %p10077_p4 = pnand %p10076_p3, %p10070_p0 }
   0xe   :  { %10080 = shalt.err (!%p10077_p4)
}
   0xf   :  { %48 = dma.hbm_to_vmem [thread:$0]  %s13297_s3, 240, %s46_s26, [#allocation6]  }
  0x10   :  { %s10089_s16 = scalar_lea.vmem %s65_s28, 3072  ;;  %p10094_p6 = scmp.lt.s32.totalorder %s65_s28, %s65_s28 }
  0x11   :  { %p10090_p5 = scmp.ne.s32.totalorder %s65_s28, %s10089_s16  ;;  %p10095_p7 = scmp.lt.s32.totalorder %s10089_s16, %s10089_s16 }
  0x13   :  { %p10096_p8 = por %p10095_p7, %p10094_p6 }
  0x15   :  { %p10097_p9 = pnand %p10096_p8, %p10090_p5 }
  0x17   :  { %10100 = shalt.err (!%p10097_p9)
}
  0x18   :  { %s10233_s17 = smov 64   ;;  %s10234_s18 = smov 4  }
  0x19   :  { %70 = dma.hbm_to_vmem [thread:$0]  %s13299_s5, 3072, %s65_s28, [#allocation9], %s10233_s17, %s10233_s17, %s10234_s18  }
  0x1a   :  { %s10235_s21 = smov [#allocation11]   ;;  %s10236_s23 = smov [#allocation2]  }
  0x1b   :  { %s93_s22 = sshll.u32 %s10235_s21, 4  ;;  %s30_s24 = sshll.u32 %s10236_s23, 4  ;;  %s94_s22 = int_to_ptr.vmem [resolvable:$true] %s93_s22  ;;  %s31_s24 = int_to_ptr.vmem [resolvable:$true] %s30_s24 }
  0x1c   :  { %s10109_s3 = scalar_lea.vmem %s94_s22, 16  ;;  %s10113_s25 = scalar_lea.vmem %s94_s22, 32 }
  0x1d   :  { %p10110_p10 = scmp.ne.s32.totalorder %s94_s22, %s10109_s3  ;;  %p10114_p11 = scmp.lt.s32.totalorder %s94_s22, %s94_s22 }
  0x1e   :  { %p10115_p12 = scmp.lt.s32.totalorder %s10113_s25, %s10109_s3 }
  0x20   :  { %p10116_p13 = por %p10115_p12, %p10114_p11 }
  0x22   :  { %p10117_p0 = pnand %p10116_p13, %p10110_p10 }
  0x24   :  { %10120 = shalt.err (!%p10117_p0)
}
  0x25   :  { %96 = dma.hbm_to_vmem [thread:$0]  %s13304_s10, 16, %s94_s22, [#allocation12]  }
  0x26   :  { %s10129_s29 = scalar_lea.vmem %s31_s24, 12480  ;;  %p10134_p2 = scmp.lt.s32.totalorder %s31_s24, %s31_s24 }
  0x27   :  { %p10130_p1 = scmp.ne.s32.totalorder %s31_s24, %s10129_s29  ;;  %p10135_p3 = scmp.lt.s32.totalorder %s10129_s29, %s10129_s29 }
  0x29   :  { %p10136_p4 = por %p10135_p3, %p10134_p2 }
  0x2b   :  { %p10137_p5 = pnand %p10136_p4, %p10130_p1 }
  0x2d   :  { %10140 = shalt.err (!%p10137_p5)
}
  0x2e   :  { %s10237_s5 = smov 960   ;;  %s10238_s28 = smov 60  }
  0x2f   :  { %36 = dma.hbm_to_vmem [thread:$0]  %s13295_s1, 12480, %s31_s24, [#allocation3], %s10237_s5, %s10237_s5, %s10238_s28  }
  0x30   :  { %s10239_s15 = smov [#allocation7]   ;;  %s10240_s17 = smov [#allocation10]  }
  0x31   :  { %s55_s16 = sshll.u32 %s10239_s15, 4  ;;  %s77_s18 = sshll.u32 %s10240_s17, 4  ;;  %s56_s16 = int_to_ptr.vmem [resolvable:$true] %s55_s16  ;;  %s78_s18 = int_to_ptr.vmem [resolvable:$true] %s77_s18 }
  0x32   :  { %s10149_s10 = scalar_lea.vmem %s56_s16, 240  ;;  %s10153_s19 = scalar_lea.vmem %s56_s16, 256 }
  0x33   :  { %p10150_p6 = scmp.ne.s32.totalorder %s56_s16, %s10149_s10  ;;  %p10154_p7 = scmp.lt.s32.totalorder %s56_s16, %s56_s16 }
  0x34   :  { %p10155_p8 = scmp.lt.s32.totalorder %s10153_s19, %s10149_s10 }
  0x36   :  { %p10156_p9 = por %p10155_p8, %p10154_p7 }
  0x38   :  { %p10157_p10 = pnand %p10156_p9, %p10150_p6 }
  0x3a   :  { %10160 = shalt.err (!%p10157_p10)
}
  0x3b   :  { %58 = dma.hbm_to_vmem [thread:$0]  %s13298_s4, 240, %s56_s16, [#allocation6]  }
  0x3c   :  { %s10169_s22 = scalar_lea.vmem %s78_s18, 240  ;;  %s10173_s1 = scalar_lea.vmem %s78_s18, 256 }
  0x3d   :  { %p10170_p11 = scmp.ne.s32.totalorder %s78_s18, %s10169_s22  ;;  %p10174_p12 = scmp.lt.s32.totalorder %s78_s18, %s78_s18 }
  0x3e   :  { %p10175_p13 = scmp.lt.s32.totalorder %s10173_s1, %s10169_s22 }
  0x40   :  { %p10176_p0 = por %p10175_p13, %p10174_p12 }
  0x42   :  { %p10177_p1 = pnand %p10176_p0, %p10170_p11 }
  0x44   :  { %10180 = shalt.err (!%p10177_p1)
}
  0x45   :  { %80 = dma.hbm_to_vmem [thread:$0]  %s13300_s6, 240, %s78_s18, [#allocation9]  }
  0x46   :  { %s10241_s3 = smov [#allocation13]  }
  0x47   :  { %s105_s25 = sshll.u32 %s10241_s3, 4  ;;  %s106_s25 = int_to_ptr.vmem [resolvable:$true] %s105_s25 }
  0x48   :  { %s10189_s26 = scalar_lea.vmem %s106_s25, 16  ;;  %s10193_s27 = scalar_lea.vmem %s106_s25, 32 }
  0x49   :  { %p10190_p2 = scmp.ne.s32.totalorder %s106_s25, %s10189_s26  ;;  %p10194_p3 = scmp.lt.s32.totalorder %s106_s25, %s106_s25 }
  0x4a   :  { %p10195_p4 = scmp.lt.s32.totalorder %s10193_s27, %s10189_s26 }
  0x4c   :  { %p10196_p5 = por %p10195_p4, %p10194_p3 }
  0x4e   :  { %p10197_p6 = pnand %p10196_p5, %p10190_p2 }
  0x50   :  { %10200 = shalt.err (!%p10197_p6)
}
  0x51   :  { %108 = dma.hbm_to_vmem [thread:$0]  %s13306_s12, 16, %s106_s25, [#allocation12]  }
  0x52   :  { %10221 = dma.done.wait [#allocation3], 12480  }
  0x53   :  { %10222 = vsyncadd [#allocation3], 4294954816 }
  0x54   :  { %10223 = dma.done.wait [#allocation6], 480  }
  0x55   :  { %10224 = vsyncadd [#allocation6], 4294966816 }
  0x56   :  { %10225 = dma.done.wait [#allocation9], 3312  }
  0x57   :  { %10226 = vsyncadd [#allocation9], 4294963984 }
  0x58   :  { %10227 = dma.done.wait [#allocation12], 32  }
  0x59   :  { %10228 = vsyncadd [#allocation12], 4294967264  ;;  %v13308_v0 = vmov 0   ;;  %v229_v1 = vld [vmem:[#allocation2 + $0x2d0] sm:$0x33]  ;;  %vm814_vm0 = vcmask 1041408  }
  0x5a   :  { %892 = vmatprep.mubr.bf16.mxu0 %v13308_v0  ;;  %933 = vmatprep.mubr.bf16.mxu1 %v13308_v0  ;;  %v230_v2 = vld [vmem:[#allocation2 + $0x2d8] sm:$0x33]  ;;  %v7627_v3 = vcombine.high %v229_v1, %v229_v1  ;;  %v7626_v5 = vcombine.low %v229_v1, %v229_v1  ;;  %v9393_v8 = vld [vmem:[#allocation2 + $0x264] ss:$60 sps:$4 sm:$0xff]   ;;  %v9399_v14 = vld [vmem:[#allocation2 + $0x1ec] ss:$60 sps:$4 sm:$0xff]  }
  0x5b   :  { %v7629_v4 = vcombine.high %v230_v2, %v230_v2  ;;  %v7628_v6 = vcombine.low %v230_v2, %v230_v2  ;;  %v9391_v7 = vld [vmem:[#allocation2 + $0x25c] ss:$60 sps:$4 sm:$0xff]   ;;  %v9397_v13 = vld [vmem:[#allocation2 + $0x1e4] ss:$60 sps:$4 sm:$0xff]   ;;  %v9403_v17 = vld [vmem:[#allocation2 + $0x16c] ss:$60 sps:$4 sm:$0xff]  }
  0x5c   :  { %7641 = vmatprep.subr.msk.bf16.mxu0 %vm814_vm0, %v7627_v3  ;;  %v816_v9 = vsel %vm814_vm0, %v7626_v5, 0  ;;  %v9395_v11 = vld [vmem:[#allocation2 + $0x258] ss:$60 sps:$4 sm:$0xff]   ;;  %v9396_v12 = vld [vmem:[#allocation2 + $0x260] ss:$60 sps:$4 sm:$0xff]   ;;  %vm810_vm1 = vcmask 818176  }
  0x5d   :  { %7643 = vmatprep.subr.msk.bf16.mxu1 %vm814_vm0, %v7629_v4  ;;  %v822_v10 = vsel %vm814_vm0, %v7628_v6, 0  ;;  %863 = vmatpush1.bf16.msra.mxu0 %v816_v9  ;;  %v9401_v15 = vld [vmem:[#allocation2 + $0x1e0] ss:$60 sps:$4 sm:$0xff]   ;;  %v9402_v16 = vld [vmem:[#allocation2 + $0x1e8] ss:$60 sps:$4 sm:$0xff]   ;;  %vm10244_vm2 = vmmov 0  }
  0x5e   :  { %904 = vmatpush1.bf16.msra.mxu1 %v822_v10  ;;  %864 = vmatprep.subr.bf16.mxu0 %v9391_v7  ;;  %v9405_v18 = vld [vmem:[#allocation2 + $0x174] ss:$60 sps:$4 sm:$0xff]   ;;  %v9407_v19 = vld [vmem:[#allocation2 + $0x168] ss:$60 sps:$4 sm:$0xff]   ;;  %v9411_v22 = vld [vmem:[#allocation2 + $0xfc] ss:$60 sps:$4 sm:$0xff]  }
  0x5f   :  { %905 = vmatprep.subr.bf16.mxu1 %v9393_v8  ;;  %v9408_v20 = vld [vmem:[#allocation2 + $0x170] ss:$60 sps:$4 sm:$0xff]   ;;  %v9414_v24 = vld [vmem:[#allocation2 + $0xf8] ss:$60 sps:$4 sm:$0xff]   ;;  %v9417_v26 = vld [vmem:[#allocation2 + $0x84] ss:$60 sps:$4 sm:$0xff]  }
  0x60   :  { %v9409_v21 = vld [vmem:[#allocation2 + $0xf4] ss:$60 sps:$4 sm:$0xff]   ;;  %v9415_v25 = vld [vmem:[#allocation2 + $0x7c] ss:$60 sps:$4 sm:$0xff]   ;;  %v9421_v29 = vld [vmem:[#allocation2 + $0x4] ss:$60 sps:$4 sm:$0xff]  }
  0x61   :  { %865 = vmatpush1.bf16.msra.mxu0 %v9395_v11  ;;  %v9413_v23 = vld [vmem:[#allocation2 + $0xf0] ss:$60 sps:$4 sm:$0xff]   ;;  %v9419_v27 = vld [vmem:[#allocation2 + $0x78] ss:$60 sps:$4 sm:$0xff]   ;;  %v9420_v28 = vld [vmem:[#allocation2 + $0x80] ss:$60 sps:$4 sm:$0xff]  }
  0x62   :  { %906 = vmatpush1.bf16.msra.mxu1 %v9396_v12  ;;  %866 = vmatprep.subr.bf16.mxu0 %v9397_v13  ;;  %v9423_v30 = vld [vmem:[#allocation2 + $0xc] ss:$60 sps:$4 sm:$0xff]   ;;  %v231_v31 = vld [vmem:[#allocation2 + $0x2e0] sm:$0x33]  ;;  %v9451_v44 = vld [vmem:[#allocation2 + $0x274] ss:$60 sps:$4 sm:$0xff]  }
  0x63   :  { %907 = vmatprep.subr.bf16.mxu1 %v9399_v14  ;;  %v9425_v32 = vld [vmem:[#allocation2] ss:$60 sps:$4 sm:$0xff]   ;;  %v9426_v33 = vld [vmem:[#allocation2 + $0x8] ss:$60 sps:$4 sm:$0xff]   ;;  %v7631_v35 = vcombine.high %v231_v31, %v231_v31  ;;  %v7630_v36 = vcombine.low %v231_v31, %v231_v31  ;;  %v9434_v46 = vld [vmem:[#allocation2 + $0x1f4] ss:$60 sps:$4 sm:$0xff]  }
  0x64   :  { %v131_v34 = vld [vmem:[%s13294_s0] sm:$0xf]  ;;  %v232_v37 = vld [vmem:[#allocation2 + $0x2e8] sm:$0x33]  ;;  %v9454_v48 = vld [vmem:[#allocation2 + $0x1fc] ss:$60 sps:$4 sm:$0xff]  }
  0x65   :  { %867 = vmatpush1.bf16.msra.mxu0 %v9401_v15  ;;  %v7633_v38 = vcombine.high %v232_v37, %v232_v37  ;;  %v7632_v39 = vcombine.low %v232_v37, %v232_v37  ;;  %v10346_v40 = vpack.c.bf16 %v131_v34, %v131_v34  ;;  %v828_v41 = vsel %vm814_vm0, %v7630_v36, 0  ;;  %v9431_v42 = vld [vmem:[#allocation2 + $0x26c] ss:$60 sps:$4 sm:$0xff]   ;;  %v9437_v50 = vld [vmem:[#allocation2 + $0x17c] ss:$60 sps:$4 sm:$0xff]  }
  0x66   :  { %908 = vmatpush1.bf16.msra.mxu1 %v9402_v16  ;;  %868 = vmatprep.subr.bf16.mxu0 %v9403_v17  ;;  %v9429_v45 = vld [vmem:[#allocation2 + $0x268] ss:$60 sps:$4 sm:$0xff]   ;;  %v9449_v47 = vld [vmem:[#allocation2 + $0x270] ss:$60 sps:$4 sm:$0xff]   ;;  %v9452_v51 = vld [vmem:[#allocation2 + $0x1f8] ss:$60 sps:$4 sm:$0xff]  }
  0x67   :  { %909 = vmatprep.subr.bf16.mxu1 %v9405_v18  ;;  %v834_v43 = vsel %vm814_vm0, %v7632_v39, 0  ;;  %v9432_v49 = vld [vmem:[#allocation2 + $0x1f0] ss:$60 sps:$4 sm:$0xff]   ;;  %v9457_v52 = vld [vmem:[#allocation2 + $0x184] ss:$60 sps:$4 sm:$0xff]   ;;  %vm1187_vm3 = vcmask 1043456  }
  0x68   :  { %v9435_v53 = vld [vmem:[#allocation2 + $0x178] ss:$60 sps:$4 sm:$0xff]   ;;  %v9440_v54 = vld [vmem:[#allocation2 + $0x104] ss:$60 sps:$4 sm:$0xff]   ;;  %v9460_v56 = vld [vmem:[#allocation2 + $0x10c] ss:$60 sps:$4 sm:$0xff]  }
  0x69   :  { %869 = vmatpush1.bf16.msra.mxu0 %v9407_v19  ;;  %v9455_v55 = vld [vmem:[#allocation2 + $0x180] ss:$60 sps:$4 sm:$0xff]   ;;  %v9443_v58 = vld [vmem:[#allocation2 + $0x8c] ss:$60 sps:$4 sm:$0xff]   ;;  %v9463_v60 = vld [vmem:[#allocation2 + $0x94] ss:$60 sps:$4 sm:$0xff]  }
  0x6a   :  { %910 = vmatpush1.bf16.msra.mxu1 %v9408_v20  ;;  %870 = vmatprep.subr.bf16.mxu0 %v9409_v21  ;;  %v9438_v57 = vld [vmem:[#allocation2 + $0x100] ss:$60 sps:$4 sm:$0xff]   ;;  %v9458_v59 = vld [vmem:[#allocation2 + $0x108] ss:$60 sps:$4 sm:$0xff]   ;;  %v9446_v62 = vld [vmem:[#allocation2 + $0x14] ss:$60 sps:$4 sm:$0xff]  }
  0x6b   :  { %911 = vmatprep.subr.bf16.mxu1 %v9411_v22  ;;  %v9441_v61 = vld [vmem:[#allocation2 + $0x88] ss:$60 sps:$4 sm:$0xff]   ;;  %v9461_v63 = vld [vmem:[#allocation2 + $0x90] ss:$60 sps:$4 sm:$0xff]   ;;  %v9466_v1 = vld [vmem:[#allocation2 + $0x1c] ss:$60 sps:$4 sm:$0xff]  }
  0x6c   :  { %v233_v2 = vld [vmem:[#allocation2 + $0x2f0] sm:$0x33]  ;;  %v234_v3 = vld [vmem:[#allocation2 + $0x2f8] sm:$0x33]  ;;  %v9479_v13 = vld [vmem:[#allocation2 + $0x284] ss:$60 sps:$4 sm:$0xff]  }
  0x6d   :  { %871 = vmatpush1.bf16.msra.mxu0 %v9413_v23  ;;  %v9444_v4 = vld [vmem:[#allocation2 + $0x10] ss:$60 sps:$4 sm:$0xff]   ;;  %v9464_v5 = vld [vmem:[#allocation2 + $0x18] ss:$60 sps:$4 sm:$0xff]   ;;  %v7635_v6 = vcombine.high %v233_v2, %v233_v2  ;;  %v7634_v7 = vcombine.low %v233_v2, %v233_v2  ;;  %v7636_v8 = vcombine.low %v234_v3, %v234_v3  ;;  %v7637_v9 = vcombine.high %v234_v3, %v234_v3  ;;  %v235_v14 = vld [vmem:[#allocation2 + $0x300] sm:$0x33] }
  0x6e   :  { %912 = vmatpush1.bf16.msra.mxu1 %v9414_v24  ;;  %872 = vmatprep.subr.bf16.mxu0 %v9415_v25  ;;  %v9471_v11 = vld [vmem:[#allocation2 + $0x27c] ss:$60 sps:$4 sm:$0xff]   ;;  %v9476_v16 = vld [vmem:[#allocation2 + $0x204] ss:$60 sps:$4 sm:$0xff]   ;;  %v7638_v19 = vcombine.low %v235_v14, %v235_v14  ;;  %v9485_v21 = vld [vmem:[#allocation2 + $0x20c] ss:$60 sps:$4 sm:$0xff]  }
  0x6f   :  { %913 = vmatprep.subr.bf16.mxu1 %v9417_v26  ;;  %v840_v10 = vsel %vm814_vm0, %v7634_v7, 0  ;;  %v846_v12 = vsel %vm814_vm0, %v7636_v8, 0  ;;  %v9469_v15 = vld [vmem:[#allocation2 + $0x278] ss:$60 sps:$4 sm:$0xff]   ;;  %v9477_v18 = vld [vmem:[#allocation2 + $0x280] ss:$60 sps:$4 sm:$0xff]  }
  0x70   :  { %v9512_v17 = vld [vmem:[#allocation2 + $0x308] ss:$0 sps:$4 sm:$0x33]   ;;  %v9474_v20 = vld [vmem:[#allocation2 + $0x200] ss:$60 sps:$4 sm:$0xff]   ;;  %v852_v25 = vsel %vm814_vm0, %v7638_v19, 0 }
  0x71   :  { %873 = vmatpush1.bf16.msra.mxu0 %v9419_v27  ;;  %v9482_v22 = vld [vmem:[#allocation2 + $0x18c] ss:$60 sps:$4 sm:$0xff]   ;;  %v9491_v24 = vld [vmem:[#allocation2 + $0x194] ss:$60 sps:$4 sm:$0xff]   ;;  %v858_v26 = vsel %vm814_vm0, %v9512_v17, 0  ;;  %v9537_v2 = vld [vmem:[#allocation8 + $0x70] sm:$0xff]  }
  0x72   :  { %914 = vmatpush1.bf16.msra.mxu1 %v9420_v28  ;;  %874 = vmatprep.subr.bf16.mxu0 %v9421_v29  ;;  %v9483_v23 = vld [vmem:[#allocation2 + $0x208] ss:$60 sps:$4 sm:$0xff]   ;;  %v9488_v28 = vld [vmem:[#allocation2 + $0x114] ss:$60 sps:$4 sm:$0xff]   ;;  %v9501_v37 = vld [vmem:[#allocation2 + $0xa0] ss:$60 sps:$4 sm:$0xff]  }
  0x73   :  { %915 = vmatprep.subr.bf16.mxu1 %v9423_v30  ;;  %v9480_v27 = vld [vmem:[#allocation2 + $0x188] ss:$60 sps:$4 sm:$0xff]   ;;  %v9489_v29 = vld [vmem:[#allocation2 + $0x190] ss:$60 sps:$4 sm:$0xff]   ;;  %v9497_v30 = vld [vmem:[#allocation2 + $0x11c] ss:$60 sps:$4 sm:$0xff]  }
  0x74   :  { %v9486_v31 = vld [vmem:[#allocation2 + $0x110] ss:$60 sps:$4 sm:$0xff]   ;;  %v9503_v34 = vld [vmem:[#allocation2 + $0xa4] ss:$60 sps:$4 sm:$0xff]   ;;  %v9553_v17 = vld [vmem:[#allocation8 + $0x8] sm:$0xff]  }
  0x75   :  { %875 = vmatpush1.bf16.msra.mxu0 %v9425_v32  ;;  %v9494_v32 = vld [vmem:[#allocation2 + $0x9c] ss:$60 sps:$4 sm:$0xff]   ;;  %v9500_v36 = vld [vmem:[#allocation2 + $0x24] ss:$60 sps:$4 sm:$0xff]   ;;  %v9543_v7 = vld [vmem:[#allocation8 + $0x60] sm:$0xff]  }
  0x76   :  { %916 = vmatpush1.bf16.msra.mxu1 %v9426_v33  ;;  %7645 = vmatprep.subr.msk.bf16.mxu0 %vm814_vm0, %v7631_v35  ;;  %v9495_v33 = vld [vmem:[#allocation2 + $0x118] ss:$60 sps:$4 sm:$0xff]   ;;  %v9498_v39 = vld [vmem:[#allocation2 + $0x20] ss:$60 sps:$4 sm:$0xff]   ;;  %v9544_v8 = vld [vmem:[#allocation8 + $0x20] sm:$0xff]  }
  0x77   :  { %7647 = vmatprep.subr.msk.bf16.mxu1 %vm814_vm0, %v7633_v38  ;;  %v9492_v35 = vld [vmem:[#allocation2 + $0x98] ss:$60 sps:$4 sm:$0xff]   ;;  %v9506_v38 = vld [vmem:[#allocation2 + $0x2c] ss:$60 sps:$4 sm:$0xff]   ;;  %v9538_v3 = vld [vmem:[#allocation8 + $0x30] sm:$0xff]  }
  0x78   :  { %7642 = vmatmul.mubr.msk.bf16.vlgmr.msra.gmra.mxu0 %vm810_vm1, %v10346_v40  ;;  %v9555_v19 = vld [vmem:[#allocation8 + $0x40] sm:$0xff]  }
  0x79   :  { %7644 = vmatmul.mubr.msk.bf16.vlgmr.msra.gmra.mxu1 %vm810_vm1, %v10346_v40  ;;  %945 = vmatpush1.bf16.msra.mxu0 %v828_v41  ;;  %v9504_v41 = vld [vmem:[#allocation2 + $0x28] ss:$60 sps:$4 sm:$0xff]  }
  0x7a   :  { %974 = vmatprep.mubr.bf16.mxu0 %v13308_v0  ;;  %946 = vmatprep.subr.bf16.mxu0 %v9431_v42  ;;  %v7639_v42 = vcombine.high %v235_v14, %v235_v14  ;;  %v9550_v14 = vld [vmem:[#allocation8 + $0x10] sm:$0xff]  }
  0x7b   :  { %986 = vmatpush1.bf16.msra.mxu1 %v834_v43  ;;  %1015 = vmatprep.mubr.bf16.mxu1 %v13308_v0  ;;  %v9511_v43 = vld [vmem:[#allocation2 + $0x28c] ss:$60 sps:$4 sm:$0xff]  }
  0x7c   :  { %987 = vmatprep.subr.bf16.mxu1 %v9451_v44  ;;  %v9509_v44 = vld [vmem:[#allocation2 + $0x288] ss:$60 sps:$4 sm:$0xff]  }
  0x7d   :  { %947 = vmatpush1.bf16.msra.mxu0 %v9429_v45  ;;  %v13310_v45 = vmov 0.0  }
  0x7e   :  { %948 = vmatprep.subr.bf16.mxu0 %v9434_v46  ;;  %v9515_v46 = vld [vmem:[#allocation2 + $0x214] ss:$60 sps:$4 sm:$0xff]  }
  0x7f   :  { %988 = vmatpush1.bf16.msra.mxu1 %v9449_v47  ;;  %v9516_v47 = vld [vmem:[#allocation2 + $0x290] ss:$60 sps:$4 sm:$0xff]  }
  0x80   :  { %989 = vmatprep.subr.bf16.mxu1 %v9454_v48  ;;  %v9513_v48 = vld [vmem:[#allocation2 + $0x210] ss:$60 sps:$4 sm:$0xff]  }
  0x81   :  { %949 = vmatpush1.bf16.msra.mxu0 %v9432_v49  ;;  %v9519_v49 = vld [vmem:[#allocation2 + $0x19c] ss:$60 sps:$4 sm:$0xff]  }
  0x82   :  { %950 = vmatprep.subr.bf16.mxu0 %v9437_v50  ;;  %v9520_v50 = vld [vmem:[#allocation2 + $0x218] ss:$60 sps:$4 sm:$0xff]  }
  0x83   :  { %990 = vmatpush1.bf16.msra.mxu1 %v9452_v51  ;;  %v9517_v51 = vld [vmem:[#allocation2 + $0x198] ss:$60 sps:$4 sm:$0xff]  }
  0x84   :  { %991 = vmatprep.subr.bf16.mxu1 %v9457_v52  ;;  %v9523_v52 = vld [vmem:[#allocation2 + $0x124] ss:$60 sps:$4 sm:$0xff]  }
  0x85   :  { %951 = vmatpush1.bf16.msra.mxu0 %v9435_v53  ;;  %v9524_v53 = vld [vmem:[#allocation2 + $0x1a0] ss:$60 sps:$4 sm:$0xff]  }
  0x86   :  { %952 = vmatprep.subr.bf16.mxu0 %v9440_v54  ;;  %v9521_v54 = vld [vmem:[#allocation2 + $0x120] ss:$60 sps:$4 sm:$0xff]  }
  0x87   :  { %992 = vmatpush1.bf16.msra.mxu1 %v9455_v55  ;;  %v9527_v55 = vld [vmem:[#allocation2 + $0xac] ss:$60 sps:$4 sm:$0xff]  }
  0x88   :  { %993 = vmatprep.subr.bf16.mxu1 %v9460_v56  ;;  %v9528_v56 = vld [vmem:[#allocation2 + $0x128] ss:$60 sps:$4 sm:$0xff]  }
  0x89   :  { %953 = vmatpush1.bf16.msra.mxu0 %v9438_v57  ;;  %v9525_v57 = vld [vmem:[#allocation2 + $0xa8] ss:$60 sps:$4 sm:$0xff]  }
  0x8a   :  { %954 = vmatprep.subr.bf16.mxu0 %v9443_v58  ;;  %v9531_v58 = vld [vmem:[#allocation2 + $0x34] ss:$60 sps:$4 sm:$0xff]  }
  0x8b   :  { %994 = vmatpush1.bf16.msra.mxu1 %v9458_v59  ;;  %v9532_v59 = vld [vmem:[#allocation2 + $0xb0] ss:$60 sps:$4 sm:$0xff]  }
  0x8c   :  { %995 = vmatprep.subr.bf16.mxu1 %v9463_v60  ;;  %v9529_v60 = vld [vmem:[#allocation2 + $0x30] ss:$60 sps:$4 sm:$0xff]  }
  0x8d   :  { %955 = vmatpush1.bf16.msra.mxu0 %v9441_v61  ;;  %v9533_v61 = vld [vmem:[#allocation2 + $0x38] ss:$60 sps:$4 sm:$0xff]  }
  0x8e   :  { %956 = vmatprep.subr.bf16.mxu0 %v9446_v62  ;;  %v9534_v62 = vld [vmem:[#allocation8 + $0x78] sm:$0xff]  }
  0x8f   :  { %996 = vmatpush1.bf16.msra.mxu1 %v9461_v63  ;;  %v9535_v63 = vld [vmem:[#allocation8 + $0x38] sm:$0xff]  }
  0x90   :  { %997 = vmatprep.subr.bf16.mxu1 %v9466_v1  ;;  %v9536_v1 = vld [vmem:[#allocation8 + $0xb8] sm:$0xff]  }
  0x91   :  { %957 = vmatpush1.bf16.msra.mxu0 %v9444_v4  ;;  %v9539_v4 = vld [vmem:[#allocation8 + $0xb0] sm:$0xff]  }
  0x92   :  { %7649 = vmatprep.subr.msk.bf16.mxu0 %vm814_vm0, %v7635_v6  ;;  %v9541_v6 = vld [vmem:[#allocation8 + $0x28] sm:$0xff]  }
  0x93   :  { %998 = vmatpush1.bf16.msra.mxu1 %v9464_v5  ;;  %v9540_v5 = vld [vmem:[#allocation8 + $0x68] sm:$0xff]  }
  0x94   :  { %7651 = vmatprep.subr.msk.bf16.mxu1 %vm814_vm0, %v7637_v9  ;;  %7646 = vmatmul.mubr.msk.bf16.vlgmr.msra.gmra.mxu0 %vm810_vm1, %v10346_v40  ;;  %v9545_v9 = vld [vmem:[#allocation8 + $0xa0] sm:$0xff]  }
  0x95   :  { %1027 = vmatpush1.bf16.msra.mxu0 %v840_v10  ;;  %1056 = vmatprep.mubr.bf16.mxu0 %v13308_v0  ;;  %v9546_v10 = vld [vmem:[#allocation8 + $0x58] sm:$0xff]  }
  0x96   :  { %7648 = vmatmul.mubr.msk.bf16.vlgmr.msra.gmra.mxu1 %vm810_vm1, %v10346_v40  ;;  %1028 = vmatprep.subr.bf16.mxu0 %v9471_v11  ;;  %v9547_v11 = vld [vmem:[#allocation8 + $0x18] sm:$0xff]  }
  0x97   :  { %1068 = vmatpush1.bf16.msra.mxu1 %v846_v12  ;;  %1097 = vmatprep.mubr.bf16.mxu1 %v13308_v0  ;;  %v9548_v12 = vld [vmem:[#allocation8 + $0x98] sm:$0xff]  }
  0x98   :  { %1069 = vmatprep.subr.bf16.mxu1 %v9479_v13  ;;  %v9549_v13 = vld [vmem:[#allocation8 + $0x50] sm:$0xff]  }
  0x99   :  { %1029 = vmatpush1.bf16.msra.mxu0 %v9469_v15  ;;  %v9551_v15 = vld [vmem:[#allocation8 + $0x90] sm:$0xff]  }
  0x9a   :  { %1030 = vmatprep.subr.bf16.mxu0 %v9476_v16  ;;  %v9552_v16 = vld [vmem:[#allocation8 + $0x48] sm:$0xff]  }
  0x9b   :  { %1070 = vmatpush1.bf16.msra.mxu1 %v9477_v18  ;;  %v9554_v18 = vld [vmem:[#allocation8 + $0x88] sm:$0xff]  }
  0x9c   :  { %1071 = vmatprep.subr.bf16.mxu1 %v9485_v21  ;;  %v9557_v21 = vld [vmem:[#allocation8 + $0x80] sm:$0xff]  }
  0x9d   :  { %1031 = vmatpush1.bf16.msra.mxu0 %v9474_v20  ;;  %v9556_v20 = vld [vmem:[#allocation8] sm:$0xff]  }
  0x9e   :  { %1032 = vmatprep.subr.bf16.mxu0 %v9482_v22  ;;  %v241_v22 = vlaneseq }
  0x9f   :  { %1072 = vmatpush1.bf16.msra.mxu1 %v9483_v23 }
  0xa0   :  { %1073 = vmatprep.subr.bf16.mxu1 %v9491_v24  ;;  %v242_v23 = vshrl.u32 %v241_v22, 7 }
  0xa1   :  { %1033 = vmatpush1.bf16.msra.mxu0 %v9480_v27 }
  0xa2   :  { %1034 = vmatprep.subr.bf16.mxu0 %v9488_v28  ;;  %v10400_v24 = vsub.s32 0, %v242_v23  ;;  %v10406_v27 = vsub.s32 3, %v242_v23  ;;  %v10408_v28 = vsub.s32 4, %v242_v23 }
  0xa3   :  { %1074 = vmatpush1.bf16.msra.mxu1 %v9489_v29  ;;  %v10410_v29 = vsub.s32 5, %v242_v23 }
  0xa4   :  { %1075 = vmatprep.subr.bf16.mxu1 %v9497_v30  ;;  %v10412_v30 = vsub.s32 6, %v242_v23 }
  0xa5   :  { %1035 = vmatpush1.bf16.msra.mxu0 %v9486_v31  ;;  %v10414_v31 = vsub.s32 7, %v242_v23 }
  0xa6   :  { %1036 = vmatprep.subr.bf16.mxu0 %v9494_v32  ;;  %v10419_v32 = vld [vmem:[%s13296_s2] sm:$0xff] }
  0xa7   :  { %1076 = vmatpush1.bf16.msra.mxu1 %v9495_v33  ;;  %13377 = vst [vmem:[#allocation22_spill] sm:$0xff] %v10414_v31  ;;  %v244_v33 = vrot.slane %v10419_v32, %v10400_v24 }
  0xa8   :  { %1077 = vmatprep.subr.bf16.mxu1 %v9503_v34 }
  0xa9   :  { %1037 = vmatpush1.bf16.msra.mxu0 %v9492_v35 }
  0xaa   :  { %1038 = vmatprep.subr.bf16.mxu0 %v9500_v36  ;;  %v256_v36 = vrot.slane %v10419_v32, %v10406_v27 }
  0xab   :  { %1078 = vmatpush1.bf16.msra.mxu1 %v9501_v37 }
  0xac   :  { %1079 = vmatprep.subr.bf16.mxu1 %v9506_v38 }
  0xad   :  { %1039 = vmatpush1.bf16.msra.mxu0 %v9498_v39 }
  0xae   :  { %7653 = vmatprep.subr.msk.bf16.mxu0 %vm814_vm0, %v7639_v42 }
  0xaf   :  { %1080 = vmatpush1.bf16.msra.mxu1 %v9504_v41 }
  0xb0   :  { %8970 = vmatprep.subr.bf16.mxu1 %v13310_v45  ;;  %7650 = vmatmul.mubr.msk.bf16.vlgmr.msra.gmra.mxu0 %vm810_vm1, %v10346_v40 }
  0xb1   :  { %1109 = vmatpush1.bf16.msra.mxu0 %v852_v25  ;;  %1138 = vmatprep.mubr.bf16.mxu0 %v13308_v0  ;;  %v10402_v25 = vsub.s32 2, %v242_v23 }
  0xb2   :  { %7652 = vmatmul.mubr.msk.bf16.vlgmr.msra.gmra.mxu1 %vm810_vm1, %v10346_v40  ;;  %1110 = vmatprep.subr.bf16.mxu0 %v9511_v43 }
  0xb3   :  { %8971 = vmatpush3.bf16.msra.mxu1 %v858_v26  ;;  %8984 = vmatprep.mubr.msk.bf16.mxu1 %vm10244_vm2, %v13310_v45  ;;  %13375 = vst [vmem:[#allocation20_spill] sm:$0xff] %v10402_v25  ;;  %v10404_v26 = vsub.s32 1, %v242_v23  ;;  %v252_v34 = vrot.slane %v10419_v32, %v10402_v25 }
  0xb4   :  { %8972 = vmatprep.subr.bf16.mxu1 %v13310_v45 }
  0xb5   :  { %1111 = vmatpush1.bf16.msra.mxu0 %v9509_v44  ;;  %13376 = vst [vmem:[#allocation21_spill] sm:$0xff] %v10404_v26  ;;  %v248_v35 = vrot.slane %v10419_v32, %v10404_v26 }
  0xb6   :  { %1112 = vmatprep.subr.bf16.mxu0 %v9515_v46 }
  0xb7   :  { %8973 = vmatpush3.bf16.msra.mxu1 %v9516_v47 }
  0xb8   :  { %8974 = vmatprep.subr.bf16.mxu1 %v13310_v45 }
  0xb9   :  { %1113 = vmatpush1.bf16.msra.mxu0 %v9513_v48 }
  0xba   :  { %1114 = vmatprep.subr.bf16.mxu0 %v9519_v49 }
  0xbb   :  { %8975 = vmatpush3.bf16.msra.mxu1 %v9520_v50 }
  0xbc   :  { %8976 = vmatprep.subr.bf16.mxu1 %v13310_v45 }
  0xbd   :  { %1115 = vmatpush1.bf16.msra.mxu0 %v9517_v51 }
  0xbe   :  { %1116 = vmatprep.subr.bf16.mxu0 %v9523_v52 }
  0xbf   :  { %8977 = vmatpush3.bf16.msra.mxu1 %v9524_v53 }
  0xc0   :  { %8978 = vmatprep.subr.bf16.mxu1 %v13310_v45 }
  0xc1   :  { %1117 = vmatpush1.bf16.msra.mxu0 %v9521_v54 }
  0xc2   :  { %1118 = vmatprep.subr.bf16.mxu0 %v9527_v55 }
  0xc3   :  { %8979 = vmatpush3.bf16.msra.mxu1 %v9528_v56 }
  0xc4   :  { %8980 = vmatprep.subr.bf16.mxu1 %v13310_v45 }
  0xc5   :  { %1119 = vmatpush1.bf16.msra.mxu0 %v9525_v57 }
  0xc6   :  { %1120 = vmatprep.subr.bf16.mxu0 %v9531_v58 }
  0xc7   :  { %8981 = vmatpush3.bf16.msra.mxu1 %v9532_v59 }
  0xc8   :  { %8982 = vmatprep.subr.bf16.mxu1 %v13310_v45 }
  0xc9   :  { %1121 = vmatpush1.bf16.msra.mxu0 %v9529_v60 }
  0xca   :  { %8006 = vmatprep.subr.bf16.mxu0 %v9534_v62 }
  0xcb   :  { %8983 = vmatpush3.bf16.msra.mxu1 %v9533_v61 }
  0xcc   :  { %8988 = vmatprep.subr.bf16.mxu1 %v13310_v45  ;;  %7654 = vmatmul.mubr.msk.bf16.vlgmr.msra.gmra.mxu0 %vm810_vm1, %v10346_v40 }
  0xcd   :  { %8007 = vmatpush3.bf16.msra.mxu0 %v9535_v63 }
  0xce   :  { %8985 = vmatmul.mubr.msk.bf16.vlgmr.msra.gmra.mxu1 %vm810_vm1, %v10346_v40  ;;  %8008 = vmatprep.subr.bf16.mxu0 %v9537_v2  ;;  %v9542_v40 = vld [vmem:[#allocation8 + $0xa8] sm:$0xff]  }
  0xcf   :  { %9004 = vmatprep.mubr.msk.bf16.mxu1 %vm10244_vm2, %v13310_v45  ;;  %8989 = vmatpush3.bf16.msra.mxu1 %v9536_v1 }
  0xd0   :  { %8990 = vmatprep.subr.bf16.mxu1 %v13310_v45 }
  0xd1   :  { %8009 = vmatpush3.bf16.msra.mxu0 %v9538_v3 }
  0xd2   :  { %8010 = vmatprep.subr.bf16.mxu0 %v9540_v5 }
  0xd3   :  { %8991 = vmatpush3.bf16.msra.mxu1 %v9539_v4 }
  0xd4   :  { %8992 = vmatprep.subr.bf16.mxu1 %v13310_v45 }
  0xd5   :  { %8011 = vmatpush3.bf16.msra.mxu0 %v9541_v6 }
  0xd6   :  { %8012 = vmatprep.subr.bf16.mxu0 %v9543_v7 }
  0xd7   :  { %8993 = vmatpush3.bf16.msra.mxu1 %v9542_v40 }
  0xd8   :  { %8994 = vmatprep.subr.bf16.mxu1 %v13310_v45 }
  0xd9   :  { %8013 = vmatpush3.bf16.msra.mxu0 %v9544_v8 }
  0xda   :  { %8014 = vmatprep.subr.bf16.mxu0 %v9546_v10 }
  0xdb   :  { %8995 = vmatpush3.bf16.msra.mxu1 %v9545_v9 }
  0xdc   :  { %8996 = vmatprep.subr.bf16.mxu1 %v13310_v45 }
  0xdd   :  { %8015 = vmatpush3.bf16.msra.mxu0 %v9547_v11 }
  0xde   :  { %8016 = vmatprep.subr.bf16.mxu0 %v9549_v13 }
  0xdf   :  { %8997 = vmatpush3.bf16.msra.mxu1 %v9548_v12 }
  0xe0   :  { %8998 = vmatprep.subr.bf16.mxu1 %v13310_v45 }
  0xe1   :  { %8017 = vmatpush3.bf16.msra.mxu0 %v9550_v14 }
  0xe2   :  { %8018 = vmatprep.subr.bf16.mxu0 %v9552_v16 }
  0xe3   :  { %8999 = vmatpush3.bf16.msra.mxu1 %v9551_v15 }
  0xe4   :  { %9000 = vmatprep.subr.bf16.mxu1 %v13310_v45 }
  0xe5   :  { %8019 = vmatpush3.bf16.msra.mxu0 %v9553_v17 }
  0xe6   :  { %8020 = vmatprep.subr.bf16.mxu0 %v9555_v19 }
  0xe7   :  { %9001 = vmatpush3.bf16.msra.mxu1 %v9554_v18 }
  0xe8   :  { %9002 = vmatprep.subr.bf16.mxu1 %v13310_v45 }
  0xe9   :  { %8021 = vmatpush3.bf16.msra.mxu0 %v9556_v20 }
  0xea   :  { %8037 = vmatprep.subr.bf16.mxu0 %v9534_v62 }
  0xeb   :  { %9003 = vmatpush3.bf16.msra.mxu1 %v9557_v21 }
  0xec   :  { %9008 = vmatprep.subr.bf16.mxu1 %v13310_v45 }
 0x138   :  { %v894_v37 = vpop.f32.mrf.mxu0 }
 0x139   :  { %v935_v38 = vpop.f32.mrf.mxu1  ;;  %v895_v39 = vadd.f32 %v894_v37, %v244_v33 }
 0x13a   :  { %v936_v41 = vadd.f32 %v935_v38, %v252_v34  ;;  %v896_v42 = vpop.f32.mrf.mxu0 }
 0x13b   :  { %v937_v43 = vpop.f32.mrf.mxu1  ;;  %v1188_v44 = vsel %vm1187_vm3, %v895_v39, 0.0  ;;  %v897_v47 = vadd.f32 %v896_v42, %v248_v35 }
 0x13c   :  { %v1202_v46 = vsel %vm1187_vm3, %v936_v41, 0.0  ;;  %v938_v48 = vadd.f32 %v937_v43, %v256_v36  ;;  %v1189_v49 = vrot.slane %v1188_v44, 4  ;;  %v898_v51 = vpop.f32.mrf.mxu0 }
 0x13d   :  { %v1203_v50 = vrot.slane %v1202_v46, 4  ;;  %v939_v52 = vpop.f32.mrf.mxu1  ;;  %v1195_v53 = vsel %vm1187_vm3, %v897_v47, 0.0 }
 0x13e   :  { %v1209_v54 = vsel %vm1187_vm3, %v938_v48, 0.0  ;;  %v1190_v55 = vadd.f32 %v1189_v49, %v1188_v44  ;;  %v1196_v57 = vrot.slane %v1195_v53, 4  ;;  %v899_v59 = vpop.f32.mrf.mxu0  ;;  %v268_v49 = vrot.slane %v10419_v32, %v10412_v30 }
 0x13f   :  { %v1204_v56 = vadd.f32 %v1203_v50, %v1202_v46  ;;  %v1210_v58 = vrot.slane %v1209_v54, 4  ;;  %v940_v60 = vpop.f32.mrf.mxu1 }
 0x140   :  { %v1191_v61 = vrot.slane %v1190_v55, 2  ;;  %v1197_v63 = vadd.f32 %v1196_v57, %v1195_v53 }
 0x141   :  { %v1205_v62 = vrot.slane %v1204_v56, 2  ;;  %v1211_v1 = vadd.f32 %v1210_v58, %v1209_v54 }
 0x142   :  { %v1192_v2 = vadd.f32 %v1191_v61, %v1190_v55  ;;  %v1198_v4 = vrot.slane %v1197_v63, 2  ;;  %v264_v55 = vrot.slane %v10419_v32, %v10410_v29 }
 0x143   :  { %v1206_v3 = vadd.f32 %v1205_v62, %v1204_v56  ;;  %v1212_v5 = vrot.slane %v1211_v1, 2  ;;  %v272_v56 = vrot.slane %v10419_v32, %v10414_v31 }
 0x144   :  { %v1193_v6 = vrot.slane %v1192_v2, 1  ;;  %v1199_v7 = vadd.f32 %v1198_v4, %v1197_v63 }
 0x145   :  { %v1207_v40 = vrot.slane %v1206_v3, 1  ;;  %v1213_v8 = vadd.f32 %v1212_v5, %v1211_v1 }
 0x146   :  { %v1194_v9 = vadd.f32 %v1193_v6, %v1192_v2  ;;  %v1200_v11 = vrot.slane %v1199_v7, 1 }
 0x147   :  { %v1208_v10 = vadd.f32 %v1207_v40, %v1206_v3  ;;  %v1214_v12 = vrot.slane %v1213_v8, 1 }
 0x148   :  { %v1294_v13 = vmul.f32 0.25, %v1194_v9  ;;  %v1201_v15 = vadd.f32 %v1200_v11, %v1199_v7 }
 0x149   :  { %v1296_v14 = vmul.f32 0.25, %v1208_v10  ;;  %v1215_v16 = vadd.f32 %v1214_v12, %v1213_v8 }
 0x14a   :  { %v10433_v17 = vsub.f32 %v895_v39, %v1294_v13  ;;  %v1295_v19 = vmul.f32 0.25, %v1201_v15 }
 0x14b   :  { %v10435_v18 = vsub.f32 %v936_v41, %v1296_v14  ;;  %v1297_v20 = vmul.f32 0.25, %v1215_v16 }
 0x14c   :  { %v1324_v21 = vmul.f32 %v10433_v17, %v10433_v17  ;;  %v10441_v23 = vsub.f32 %v897_v47, %v1295_v19 }
 0x14d   :  { %v1326_v22 = vmul.f32 %v10435_v18, %v10435_v18  ;;  %v10443_v33 = vsub.f32 %v938_v48, %v1297_v20  ;;  %v260_v48 = vrot.slane %v10419_v32, %v10408_v28 }
 0x14e   :  { %v1339_v34 = vsel %vm1187_vm3, %v1324_v21, 0.0  ;;  %v1325_v36 = vmul.f32 %v10441_v23, %v10441_v23 }
 0x14f   :  { %v1353_v35 = vsel %vm1187_vm3, %v1326_v22, 0.0  ;;  %v1327_v37 = vmul.f32 %v10443_v33, %v10443_v33  ;;  %v1340_v38 = vrot.slane %v1339_v34, 4 }
 0x150   :  { %v1354_v39 = vrot.slane %v1353_v35, 4  ;;  %v1346_v41 = vsel %vm1187_vm3, %v1325_v36, 0.0 }
 0x151   :  { %v1360_v42 = vsel %vm1187_vm3, %v1327_v37, 0.0  ;;  %v1341_v43 = vadd.f32 %v1340_v38, %v1339_v34  ;;  %v1347_v46 = vrot.slane %v1346_v41, 4 }
 0x152   :  { %v1355_v44 = vadd.f32 %v1354_v39, %v1353_v35  ;;  %v1361_v47 = vrot.slane %v1360_v42, 4 }
 0x153   :  { %v1342_v50 = vrot.slane %v1341_v43, 2  ;;  %v1348_v52 = vadd.f32 %v1347_v46, %v1346_v41 }
 0x154   :  { %v1356_v51 = vrot.slane %v1355_v44, 2  ;;  %v1362_v53 = vadd.f32 %v1361_v47, %v1360_v42  ;;  %v976_v54 = vpop.f32.mrf.mxu0 }
 0x155   :  { %v1343_v57 = vadd.f32 %v1342_v50, %v1341_v43  ;;  %v1349_v59 = vrot.slane %v1348_v52, 2  ;;  %v10461_v62 = vadd.f32 %v976_v54, %v260_v48 }
 0x156   :  { %v1357_v58 = vadd.f32 %v1356_v51, %v1355_v44  ;;  %v1363_v60 = vrot.slane %v1362_v53, 2  ;;  %v1017_v61 = vpop.f32.mrf.mxu1  ;;  %v978_v63 = vpop.f32.mrf.mxu0 }
 0x157   :  { %v10463_v1 = vadd.f32 %v1017_v61, %v268_v49  ;;  %v1344_v2 = vrot.slane %v1343_v57, 1  ;;  %v1350_v4 = vadd.f32 %v1349_v59, %v1348_v52  ;;  %v1216_v40 = vsel %vm1187_vm3, %v10461_v62, 0.0 }
 0x158   :  { %v1358_v3 = vrot.slane %v1357_v58, 1  ;;  %v1364_v5 = vadd.f32 %v1363_v60, %v1362_v53  ;;  %v1019_v6 = vpop.f32.mrf.mxu1  ;;  %v979_v7 = vadd.f32 %v978_v63, %v264_v55  ;;  %v980_v32 = vpop.f32.mrf.mxu0  ;;  %v1217_v15 = vrot.slane %v1216_v40, 4 }
 0x159   :  { %v1230_v8 = vsel %vm1187_vm3, %v10463_v1, 0.0  ;;  %v1020_v9 = vadd.f32 %v1019_v6, %v272_v56  ;;  %v1345_v10 = vadd.f32 %v1344_v2, %v1343_v57  ;;  %v1351_v12 = vrot.slane %v1350_v4, 1 }
 0x15a   :  { %v1359_v11 = vadd.f32 %v1358_v3, %v1357_v58  ;;  %v1365_v13 = vrot.slane %v1364_v5, 1  ;;  %v1021_v14 = vpop.f32.mrf.mxu1  ;;  %v1223_v16 = vsel %vm1187_vm3, %v979_v7, 0.0  ;;  %v981_v19 = vpop.f32.mrf.mxu0  ;;  %v1231_v20 = vrot.slane %v1230_v8, 4 }
 0x15b   :  { %v1237_v21 = vsel %vm1187_vm3, %v1020_v9, 0.0  ;;  %v1444_v22 = vmul.f32 0.25, %v1345_v10  ;;  %v1352_v35 = vadd.f32 %v1351_v12, %v1350_v4  ;;  %v1218_v38 = vadd.f32 %v1217_v15, %v1216_v40  ;;  %v10475_v10 = vld [vmem:[#allocation7] sm:$0xff] }
 0x15c   :  { %v1446_v34 = vmul.f32 0.25, %v1359_v11  ;;  %v1366_v36 = vadd.f32 %v1365_v13, %v1364_v5  ;;  %v1022_v37 = vpop.f32.mrf.mxu1  ;;  %v1224_v39 = vrot.slane %v1223_v16, 4  ;;  %v1232_v41 = vadd.f32 %v1231_v20, %v1230_v8  ;;  %v10473_v5 = vld [vmem:[#allocation5] sm:$0xff] }
 0x15d   :  { %v1238_v42 = vrot.slane %v1237_v21, 4  ;;  %v1459_v43 = vadd.f32 1e-05, %v1444_v22  ;;  %v1445_v46 = vmul.f32 0.25, %v1352_v35  ;;  %v1219_v48 = vrot.slane %v1218_v38, 2 }
 0x15e   :  { %v10471_v44 = vadd.f32 1e-05, %v1446_v34  ;;  %v1447_v47 = vmul.f32 0.25, %v1366_v36  ;;  %v1225_v49 = vadd.f32 %v1224_v39, %v1223_v16  ;;  %v1233_v50 = vrot.slane %v1232_v41, 2 }
 0x15f   :  { %v1239_v51 = vadd.f32 %v1238_v42, %v1237_v21  ;;  %9886 = vrsqrt.f32 %v1459_v43  ;;  %v1460_v52 = vadd.f32 1e-05, %v1445_v46  ;;  %v1220_v54 = vadd.f32 %v1219_v48, %v1218_v38 }
 0x160   :  { %v1462_v53 = vadd.f32 1e-05, %v1447_v47  ;;  %v1226_v55 = vrot.slane %v1225_v49, 2  ;;  %v1234_v56 = vadd.f32 %v1233_v50, %v1232_v41  ;;  %v1511_v20 = vrot.slane %v10473_v5, %v10400_v24 }
 0x161   :  { %9888 = vrsqrt.f32 %v1460_v52  ;;  %v1240_v57 = vrot.slane %v1239_v51, 2  ;;  %v1221_v58 = vrot.slane %v1220_v54, 1  ;;  %v1609_v41 = vrot.slane %v10475_v10, %v10404_v26 }
 0x162   :  { %9890 = vrsqrt.f32 %v1462_v53  ;;  %v1227_v59 = vadd.f32 %v1226_v55, %v1225_v49  ;;  %v1235_v60 = vrot.slane %v1234_v56, 1  ;;  %v1523_v42 = vrot.slane %v10473_v5, %v10406_v27 }
 0x163   :  { %v1241_v61 = vadd.f32 %v1240_v57, %v1239_v51  ;;  %v1222_v63 = vadd.f32 %v1221_v58, %v1220_v54  ;;  %v1617_v51 = vrot.slane %v10475_v10, %v10406_v27  ;;  %9892 = vrsqrt.f32 %v10471_v44  ;;  %v10529_v44 = vld [vmem:[%s13296_s2 + $0x8] sm:$0xff] }
 0x164   :  { %v1228_v2 = vrot.slane %v1227_v59, 1  ;;  %v1236_v3 = vadd.f32 %v1235_v60, %v1234_v56 }
 0x165   :  { %v1242_v4 = vrot.slane %v1241_v61, 1  ;;  %v1298_v6 = vmul.f32 0.25, %v1222_v63 }
 0x166   :  { %v1229_v40 = vadd.f32 %v1228_v2, %v1227_v59  ;;  %v1300_v32 = vmul.f32 0.25, %v1236_v3 }
 0x167   :  { %v1243_v8 = vadd.f32 %v1242_v4, %v1241_v61  ;;  %v10478_v11 = vsub.f32 %v10461_v62, %v1298_v6  ;;  %v1605_v62 = vrot.slane %v10475_v10, %v10400_v24 }
 0x168   :  { %v1299_v12 = vmul.f32 0.25, %v1229_v40  ;;  %v10481_v13 = vsub.f32 %v10463_v1, %v1300_v32  ;;  %v1515_v1 = vrot.slane %v10473_v5, %v10404_v26 }
 0x169   :  { %v1301_v14 = vmul.f32 0.25, %v1243_v8  ;;  %v1328_v15 = vmul.f32 %v10478_v11, %v10478_v11 }
 0x16a   :  { %v10485_v16 = vsub.f32 %v979_v7, %v1299_v12  ;;  %v1330_v19 = vmul.f32 %v10481_v13, %v10481_v13 }
 0x16b   :  { %v10493_v21 = vsub.f32 %v1020_v9, %v1301_v14  ;;  %v1367_v34 = vsel %vm1187_vm3, %v1328_v15, 0.0 }
 0x16c   :  { %v9887_v22 = vpop.eup %9886  ;;  %v1329_v7 = vmul.f32 %v10485_v16, %v10485_v16  ;;  %v1381_v35 = vsel %vm1187_vm3, %v1330_v19, 0.0  ;;  %v1368_v37 = vrot.slane %v1367_v34, 4 }
 0x16d   :  { %v1489_v36 = vmul.f32 %v9887_v22, %v10433_v17  ;;  %v1382_v38 = vrot.slane %v1381_v35, 4  ;;  %v1331_v39 = vmul.f32 %v10493_v21, %v10493_v21 }
 0x16e   :  { %v9889_v9 = vpop.eup %9888  ;;  %v1374_v43 = vsel %vm1187_vm3, %v1329_v7, 0.0  ;;  %v1369_v49 = vadd.f32 %v1368_v37, %v1367_v34 }
 0x16f   :  { %v9891_v46 = vpop.eup %9890  ;;  %v1583_v47 = vmul.f32 %v1511_v20, %v1489_v36  ;;  %v1490_v48 = vmul.f32 %v9889_v9, %v10441_v23  ;;  %v1375_v17 = vrot.slane %v1374_v43, 4  ;;  %v1383_v52 = vadd.f32 %v1382_v38, %v1381_v35 }
 0x170   :  { %v1492_v50 = vmul.f32 %v9891_v46, %v10443_v33  ;;  %v1388_v53 = vsel %vm1187_vm3, %v1331_v39, 0.0  ;;  %v10514_v54 = vpop.f32.mrf.mxu0  ;;  %v1370_v57 = vrot.slane %v1369_v49, 2  ;;  %v284_v46 = vrot.slane %v10529_v44, %v10402_v25 }
 0x171   :  { %v1677_v55 = vadd.f32 %v1605_v62, %v1583_v47  ;;  %v1584_v56 = vmul.f32 %v1515_v1, %v1490_v48  ;;  %v1376_v58 = vadd.f32 %v1375_v17, %v1374_v43  ;;  %v1384_v61 = vrot.slane %v1383_v52, 2 }
 0x172   :  { %v1099_v59 = vpop.f32.mrf.mxu1  ;;  %v1586_v60 = vmul.f32 %v1523_v42, %v1492_v50  ;;  %v1389_v23 = vrot.slane %v1388_v53, 4  ;;  %v10516_v63 = vpop.f32.mrf.mxu0  ;;  %v1371_v33 = vadd.f32 %v1370_v57, %v1369_v49  ;;  %v10535_v49 = vld [vmem:[#allocation8 + $0x38] sm:$0xff]   ;;  %v288_v17 = vrot.slane %v10529_v44, %v10406_v27 }
 0x173   :  { %13378 = vst [vmem:[#allocation23_spill] sm:$0xff] %v10516_v63  ;;  %v1678_v2 = vadd.f32 %v1609_v41, %v1584_v56  ;;  %v1377_v3 = vrot.slane %v1376_v58, 2  ;;  %vm1692_vm4 = vcmp.gt.f32.partialorder %v1677_v55, 0.0  ;;  %v1707_v40 = vmul.f32 0.2, %v1677_v55  ;;  %v10541_v50 = vld [vmem:[#allocation8 + $0xb8] sm:$0xff]  }
 0x174   :  { %v1101_v4 = vpop.f32.mrf.mxu1  ;;  %v10518_v6 = vadd.f32 %v1617_v51, %v1586_v60  ;;  %v1062_v32 = vpop.f32.mrf.mxu0  ;;  %v1372_v8 = vrot.slane %v1371_v33, 1  ;;  %v1385_v20 = vadd.f32 %v1384_v61, %v1383_v52  ;;  %v1390_v62 = vadd.f32 %v1389_v23, %v1388_v53  ;;  %v10544_v51 = vld [vmem:[#allocation8 + $0x70] sm:$0xff]  }
 0x175   :  { %v1378_v12 = vadd.f32 %v1377_v3, %v1376_v58  ;;  %vm1693_vm5 = vcmp.gt.f32.partialorder %v1678_v2, 0.0  ;;  %v1708_v14 = vmul.f32 0.2, %v1678_v2  ;;  %v1722_v19 = vsel %vm1692_vm4, %v1677_v55, %v1707_v40  ;;  %v10552_v60 = vld [vmem:[#allocation8 + $0x30] sm:$0xff]  }
 0x176   :  { %v1103_v15 = vpop.f32.mrf.mxu1  ;;  %v1063_v22 = vpop.f32.mrf.mxu0  ;;  %v1373_v1 = vadd.f32 %v1372_v8, %v1371_v33  ;;  %v10521_v7 = vpack.c.bf16 %v1722_v19, %v1722_v19  ;;  %v1386_v38 = vrot.slane %v1385_v20, 1  ;;  %v1391_v39 = vrot.slane %v1390_v62, 2  ;;  %v10557_v23 = vld [vmem:[#allocation8 + $0xb0] sm:$0xff]   ;;  %v10574_v19 = vld [vmem:[#allocation8 + $0x60] sm:$0xff]  }
 0x177   :  { %v1379_v34 = vrot.slane %v1378_v12, 1  ;;  %v1723_v35 = vsel %vm1693_vm5, %v1678_v2, %v1708_v14  ;;  %v10550_v58 = vadd.f32 %v1099_v59, %v284_v46  ;;  %v10555_v61 = vadd.f32 %v1101_v4, %v288_v17  ;;  %v10560_v2 = vld [vmem:[#allocation8 + $0x68] sm:$0xff]   ;;  %v9893_v8 = vpop.eup %9892 }
 0x178   :  { %v1104_v36 = vpop.f32.mrf.mxu1  ;;  %v10523_v37 = vpack.c.bf16 %v1723_v35, %v1723_v35  ;;  %v1448_v9 = vmul.f32 0.25, %v1373_v1  ;;  %1976 = vmatprep.mubr.bf16.mxu0 %v10521_v7  ;;  %v1387_v42 = vadd.f32 %v1386_v38, %v1385_v20  ;;  %v1392_v43 = vadd.f32 %v1391_v39, %v1390_v62  ;;  %v10571_v15 = vld [vmem:[#allocation8 + $0xa8] sm:$0xff]   ;;  %v10581_v35 = vld [vmem:[#allocation8 + $0x20] sm:$0xff]   ;;  %v10587_v39 = vld [vmem:[#allocation8 + $0x58] sm:$0xff]  }
 0x179   :  { %v1380_v41 = vadd.f32 %v1379_v34, %v1378_v12  ;;  %1977 = vmatmul.mubr.bf16.vlgmr.msra.gmra.mxu0 %v13308_v0  ;;  %v1258_v59 = vsel %vm1187_vm3, %v10550_v58, 0.0  ;;  %v1265_v4 = vsel %vm1187_vm3, %v10555_v61, 0.0  ;;  %v10568_v12 = vld [vmem:[#allocation8 + $0x28] sm:$0xff]   ;;  %v1491_v22 = vmul.f32 %v9893_v8, %v10435_v18  ;;  %v10584_v38 = vld [vmem:[#allocation8 + $0xa0] sm:$0xff]  }
 0x17a   :  { %9005 = vmatmul.mubr.bf16.vlgmr.msra.gmra.mxu1 %v10523_v37  ;;  %v1463_v47 = vadd.f32 1e-05, %v1448_v9  ;;  %8038 = vmatpush3.bf16.msra.mxu0 %v10535_v49  ;;  %v1450_v52 = vmul.f32 0.25, %v1387_v42  ;;  %v1393_v53 = vrot.slane %v1392_v43, 1  ;;  %v1259_v3 = vrot.slane %v1258_v59, 4 }
 0x17b   :  { %v1449_v48 = vmul.f32 0.25, %v1380_v41  ;;  %2056 = vmatprep.mubr.bf16.mxu0 %v10523_v37  ;;  %9009 = vmatpush3.bf16.msra.mxu1 %v10541_v50  ;;  %v1266_v32 = vrot.slane %v1265_v4, 4  ;;  %v1519_v1 = vrot.slane %v10473_v5, %v10402_v25  ;;  %v1527_v18 = vrot.slane %v10473_v5, %v10408_v28 }
 0x17c   :  { %8039 = vmatprep.subr.bf16.mxu0 %v10544_v51  ;;  %9894 = vrsqrt.f32 %v1463_v47  ;;  %9010 = vmatprep.subr.bf16.mxu1 %v13310_v45  ;;  %v1465_v56 = vadd.f32 1e-05, %v1450_v52  ;;  %v1394_v57 = vadd.f32 %v1393_v53, %v1392_v43  ;;  %v1260_v14 = vadd.f32 %v1259_v3, %v1258_v59  ;;  %v10607_v59 = vld [vmem:[#allocation8 + $0x98] sm:$0xff]  }
 0x17d   :  { %v1464_v55 = vadd.f32 1e-05, %v1449_v48  ;;  %9024 = vmatprep.mubr.msk.bf16.mxu1 %vm10244_vm2, %v13310_v45  ;;  %v1267_v20 = vadd.f32 %v1266_v32, %v1265_v4  ;;  %v1585_v43 = vmul.f32 %v1519_v1, %v1491_v22  ;;  %v1613_v46 = vrot.slane %v10475_v10, %v10402_v25 }
 0x17e   :  { %8040 = vmatpush3.bf16.msra.mxu0 %v10552_v60  ;;  %v1451_v33 = vmul.f32 0.25, %v1394_v57  ;;  %v1261_v62 = vrot.slane %v1260_v14, 2  ;;  %v292_v48 = vrot.slane %v10529_v44, %v10408_v28  ;;  %v1621_v52 = vrot.slane %v10475_v10, %v10408_v28 }
 0x17f   :  { %9896 = vrsqrt.f32 %v1464_v55  ;;  %9011 = vmatpush3.bf16.msra.mxu1 %v10557_v23  ;;  %8041 = vmatprep.subr.bf16.mxu0 %v10560_v2  ;;  %v1268_v34 = vrot.slane %v1267_v20, 2  ;;  %v1531_v53 = vrot.slane %v10473_v5, %v10410_v29  ;;  %v10602_v55 = vld [vmem:[#allocation8 + $0x18] sm:$0xff]   ;;  %v1535_v3 = vrot.slane %v10473_v5, %v10412_v30 }
 0x180   :  { %9898 = vrsqrt.f32 %v1465_v56  ;;  %9012 = vmatprep.subr.bf16.mxu1 %v13310_v45  ;;  %v1466_v40 = vadd.f32 1e-05, %v1451_v33  ;;  %v1262_v36 = vadd.f32 %v1261_v62, %v1260_v14  ;;  %v1625_v33 = vrot.slane %v10475_v10, %v10410_v29 }
 0x181   :  { %v1269_v9 = vadd.f32 %v1268_v34, %v1267_v20  ;;  %v1629_v20 = vrot.slane %v10475_v10, %v10412_v30  ;;  %v1679_v1 = vadd.f32 %v1613_v46, %v1585_v43  ;;  %v1539_v46 = vrot.slane %v10473_v5, %v10414_v31 }
 0x182   :  { %8042 = vmatpush3.bf16.msra.mxu0 %v10568_v12  ;;  %9900 = vrsqrt.f32 %v1466_v40  ;;  %v1263_v41 = vrot.slane %v1262_v36, 1  ;;  %vm1695_vm7 = vcmp.gt.f32.partialorder %v10518_v6, 0.0  ;;  %vm4533_vm4 = vcmask 519168  }
 0x183   :  { %9013 = vmatpush3.bf16.msra.mxu1 %v10571_v15  ;;  %8043 = vmatprep.subr.bf16.mxu0 %v10574_v19  ;;  %v1270_v47 = vrot.slane %v1269_v9, 1  ;;  %vm1694_vm6 = vcmp.gt.f32.partialorder %v1679_v1, 0.0  ;;  %vm4911_vm5 = vcmask 523264  }
 0x184   :  { %9014 = vmatprep.subr.bf16.mxu1 %v13310_v45  ;;  %v1264_v56 = vadd.f32 %v1263_v41, %v1262_v36 }
 0x185   :  { %v1271_v4 = vadd.f32 %v1270_v47, %v1269_v9 }
 0x186   :  { %8044 = vmatpush3.bf16.msra.mxu0 %v10581_v35  ;;  %v1304_v62 = vmul.f32 0.25, %v1264_v56  ;;  %v10630_v56 = vld [vmem:[#allocation8 + $0x90] sm:$0xff]  }
 0x187   :  { %9015 = vmatpush3.bf16.msra.mxu1 %v10584_v38  ;;  %8045 = vmatprep.subr.bf16.mxu0 %v10587_v39  ;;  %v1305_v36 = vmul.f32 0.25, %v1271_v4 }
 0x188   :  { %9016 = vmatprep.subr.bf16.mxu1 %v13310_v45 }
 0x189   :  { %v9895_v42 = vpop.eup %9894 }
 0x18a   :  { %v1493_v17 = vmul.f32 %v9895_v42, %v10478_v11  ;;  %8046 = vmatpush3.bf16.msra.mxu0 %v10602_v55  ;;  %v10610_v11 = vld [vmem:[#allocation8 + $0x50] sm:$0xff]  }
 0x18b   :  { %9017 = vmatpush3.bf16.msra.mxu1 %v10607_v59  ;;  %8047 = vmatprep.subr.bf16.mxu0 %v10610_v11 }
 0x18c   :  { %v9897_v57 = vpop.eup %9896  ;;  %v1140_v40 = vpop.f32.mrf.mxu0  ;;  %v1587_v8 = vmul.f32 %v1527_v18, %v1493_v17  ;;  %9018 = vmatprep.subr.bf16.mxu1 %v13310_v45  ;;  %v10624_v18 = vld [vmem:[#allocation8 + $0x10] sm:$0xff]  }
 0x18d   :  { %v9899_v32 = vpop.eup %9898  ;;  %v1494_v14 = vmul.f32 %v9897_v57, %v10485_v16  ;;  %v10620_v41 = vadd.f32 %v1140_v40, %v292_v48  ;;  %v10628_v16 = vsub.f32 %v10550_v58, %v1304_v62  ;;  %v10639_v48 = vsub.f32 %v10555_v61, %v1305_v36 }
 0x18e   :  { %v1181_v22 = vpop.f32.mrf.mxu1  ;;  %v1495_v34 = vmul.f32 %v9899_v32, %v10481_v13  ;;  %v1142_v42 = vpop.f32.mrf.mxu0  ;;  %v10622_v9 = vadd.f32 %v1621_v52, %v1587_v8  ;;  %8048 = vmatpush3.bf16.msra.mxu0 %v10624_v18  ;;  %v10633_v13 = vld [vmem:[#allocation8 + $0x48] sm:$0xff]   ;;  %v1633_v57 = vrot.slane %v10475_v10, %v10414_v31 }
 0x18f   :  { %v1588_v47 = vmul.f32 %v1531_v53, %v1494_v14  ;;  %9019 = vmatpush3.bf16.msra.mxu1 %v10630_v56  ;;  %8049 = vmatprep.subr.bf16.mxu0 %v10633_v13  ;;  %v9901_v53 = vpop.eup %9900  ;;  %v1334_v4 = vmul.f32 %v10628_v16, %v10628_v16  ;;  %v1335_v61 = vmul.f32 %v10639_v48, %v10639_v48  ;;  %v1272_v14 = vsel %vm1187_vm3, %v10620_v41, 0.0 }
 0x190   :  { %v8986_v17 = vpop.f32.mrf.mxu1  ;;  %v1589_v43 = vmul.f32 %v1535_v3, %v1495_v34  ;;  %v1144_v52 = vpop.f32.mrf.mxu0  ;;  %9020 = vmatprep.subr.bf16.mxu1 %v13310_v45  ;;  %v1709_v3 = vmul.f32 0.2, %v1679_v1  ;;  %v1496_v5 = vmul.f32 %v9901_v53, %v10493_v21  ;;  %v10661_v34 = vld [vmem:[#allocation8 + $0x88] sm:$0xff]   ;;  %v10664_v21 = vld [vmem:[#allocation8 + $0x40] sm:$0xff]   ;;  %v1273_v53 = vrot.slane %v1272_v14, 4 }
 0x191   :  { %v10641_v58 = vadd.f32 %v1625_v33, %v1588_v47  ;;  %v10653_v33 = vld [vmem:[#allocation8 + $0x8] sm:$0xff]   ;;  %v1409_v10 = vsel %vm1187_vm3, %v1334_v4, 0.0  ;;  %v1416_v17 = vsel %vm1187_vm3, %v1335_v61, 0.0  ;;  %v10679_v61 = vld [vmem:[#allocation8 + $0x80] sm:$0xff]   ;;  %vm1696_vm8 = vcmp.gt.f32.partialorder %v10622_v9, 0.0 }
 0x192   :  { %v1184_v40 = vpop.f32.mrf.mxu1  ;;  %v10648_v32 = vadd.f32 %v1629_v20, %v1589_v43  ;;  %v1145_v8 = vpop.f32.mrf.mxu0  ;;  %8050 = vmatpush3.bf16.msra.mxu0 %v10653_v33  ;;  %v296_v20 = vrot.slane %v10529_v44, %v10410_v29  ;;  %v1590_v36 = vmul.f32 %v1539_v46, %v1496_v5  ;;  %v1410_v47 = vrot.slane %v1409_v10, 4 }
 0x193   :  { %9021 = vmatpush3.bf16.msra.mxu1 %v10661_v34  ;;  %8051 = vmatprep.subr.bf16.mxu0 %v10664_v21  ;;  %v300_v43 = vrot.slane %v10529_v44, %v10412_v30  ;;  %v1417_v52 = vrot.slane %v1416_v17, 4  ;;  %v1724_v4 = vsel %vm1694_vm6, %v1679_v1, %v1709_v3  ;;  %v1274_v5 = vadd.f32 %v1273_v53, %v1272_v14 }
 0x194   :  { %13379 = vst [vmem:[#allocation24_spill] sm:$0xff] %v10648_v32  ;;  %v8987_v62 = vpop.f32.mrf.mxu1  ;;  %9022 = vmatprep.subr.bf16.mxu1 %v13310_v45  ;;  %v10672_v40 = vadd.f32 %v1633_v57, %v1590_v36  ;;  %v1411_v8 = vadd.f32 %v1410_v47, %v1409_v10  ;;  %v10677_v0 = vadd.f32 %v1142_v42, %v296_v20  ;;  %v10682_v45 = vld [vmem:[#allocation8 + $0x78] sm:$0xff]   ;;  %v13381_v10 = vmov 0.0  }
 0x195   :  { %v10674_v62 = vld [vmem:[#allocation8] sm:$0xff]   ;;  %v1418_v46 = vadd.f32 %v1417_v52, %v1416_v17  ;;  %v1182_v57 = vadd.f32 %v1181_v22, %v300_v43  ;;  %v10685_v3 = vpack.c.bf16 %v1724_v4, %v1724_v4  ;;  %v1275_v47 = vrot.slane %v1274_v5, 2 }
 0x196   :  { %13380 = vst [vmem:[#allocation25_spill] sm:$0xff] %v10672_v40  ;;  %8052 = vmatpush3.bf16.msra.mxu0 %v10674_v62  ;;  %v1412_v1 = vrot.slane %v1411_v8, 2  ;;  %v1279_v42 = vsel %vm1187_vm3, %v10677_v0, 0.0  ;;  %vm1697_vm9 = vcmp.gt.f32.partialorder %v10641_v58, 0.0  ;;  %vm5686_vm6 = vcmask 1040384  }
 0x197   :  { %9023 = vmatpush3.bf16.msra.mxu1 %v10679_v61  ;;  %8068 = vmatprep.subr.bf16.mxu0 %v10682_v45  ;;  %v1419_v36 = vrot.slane %v1418_v46, 2  ;;  %v1280_v20 = vrot.slane %v1279_v42, 4  ;;  %v1286_v17 = vsel %vm1187_vm3, %v1182_v57, 0.0  ;;  %v1276_v43 = vadd.f32 %v1275_v47, %v1274_v5 }
 0x198   :  { %9028 = vmatprep.subr.bf16.mxu1 %v13381_v10  ;;  %v1413_v14 = vadd.f32 %v1412_v1, %v1411_v8  ;;  %v1287_v52 = vrot.slane %v1286_v17, 4 }
 0x199   :  { %2057 = vmatmul.mubr.bf16.vlgmr.msra.gmra.mxu0 %v10521_v7  ;;  %v1420_v22 = vadd.f32 %v1419_v36, %v1418_v46  ;;  %v1281_v4 = vadd.f32 %v1280_v20, %v1279_v42  ;;  %v1277_v8 = vrot.slane %v1276_v43, 1 }
 0x19a   :  { %9025 = vmatmul.mubr.bf16.vlgmr.msra.gmra.mxu1 %v10685_v3  ;;  %8069 = vmatpush3.bf16.msra.mxu0 %v10535_v49  ;;  %v1414_v53 = vrot.slane %v1413_v14, 1  ;;  %v1288_v1 = vadd.f32 %v1287_v52, %v1286_v17 }
 0x19b   :  { %2136 = vmatprep.mubr.bf16.mxu0 %v10685_v3  ;;  %9029 = vmatpush3.bf16.msra.mxu1 %v10541_v50  ;;  %v1421_v7 = vrot.slane %v1420_v22, 1  ;;  %v1282_v46 = vrot.slane %v1281_v4, 2  ;;  %v1278_v36 = vadd.f32 %v1277_v8, %v1276_v43 }
 0x19c   :  { %8070 = vmatprep.subr.bf16.mxu0 %v10544_v51  ;;  %9030 = vmatprep.subr.bf16.mxu1 %v13381_v10  ;;  %v1415_v31 = vadd.f32 %v1414_v53, %v1413_v14  ;;  %v1289_v47 = vrot.slane %v1288_v1, 2 }
 0x19d   :  { %9044 = vmatprep.mubr.msk.bf16.mxu1 %vm10244_vm2, %v13381_v10  ;;  %v1422_v5 = vadd.f32 %v1421_v7, %v1420_v22  ;;  %v1283_v20 = vadd.f32 %v1282_v46, %v1281_v4  ;;  %v1306_v17 = vmul.f32 0.25, %v1278_v36 }
 0x19e   :  { %8071 = vmatpush3.bf16.msra.mxu0 %v10552_v60  ;;  %v1454_v42 = vmul.f32 0.25, %v1415_v31  ;;  %v1290_v52 = vadd.f32 %v1289_v47, %v1288_v1 }
 0x19f   :  { %9031 = vmatpush3.bf16.msra.mxu1 %v10557_v23  ;;  %8072 = vmatprep.subr.bf16.mxu0 %v10560_v2  ;;  %v1455_v40 = vmul.f32 0.25, %v1422_v5  ;;  %v1284_v63 = vrot.slane %v1283_v20, 1  ;;  %v10706_v22 = vsub.f32 %v10620_v41, %v1306_v17  ;;  %v10734_v17 = vld [vmem:[#allocation5 + $0x8] sm:$0xff] }
 0x1a0   :  { %9032 = vmatprep.subr.bf16.mxu1 %v13381_v10  ;;  %v1469_v32 = vadd.f32 1e-05, %v1454_v42  ;;  %v1291_v43 = vrot.slane %v1290_v52, 1 }
 0x1a1   :  { %v1470_v14 = vadd.f32 1e-05, %v1455_v40  ;;  %v1285_v31 = vadd.f32 %v1284_v63, %v1283_v20  ;;  %v1336_v53 = vmul.f32 %v10706_v22, %v10706_v22 }
 0x1a2   :  { %8073 = vmatpush3.bf16.msra.mxu0 %v10568_v12  ;;  %9902 = vrsqrt.f32 %v1469_v32  ;;  %v1292_v4 = vadd.f32 %v1291_v43, %v1290_v52  ;;  %v1551_v43 = vrot.slane %v10734_v17, %v10402_v25 }
 0x1a3   :  { %9033 = vmatpush3.bf16.msra.mxu1 %v10571_v15  ;;  %8074 = vmatprep.subr.bf16.mxu0 %v10574_v19  ;;  %9904 = vrsqrt.f32 %v1470_v14  ;;  %v1307_v7 = vmul.f32 0.25, %v1285_v31  ;;  %v1423_v41 = vsel %vm1187_vm3, %v1336_v53, 0.0  ;;  %v10738_v14 = vld [vmem:[#allocation7 + $0x8] sm:$0xff] }
 0x1a4   :  { %9034 = vmatprep.subr.bf16.mxu1 %v13381_v10  ;;  %v1308_v40 = vmul.f32 0.25, %v1292_v4  ;;  %v1424_v8 = vrot.slane %v1423_v41, 4 }
 0x1a5   :  { %v10718_v63 = vsub.f32 %v10677_v0, %v1307_v7  ;;  %v1645_v7 = vrot.slane %v10738_v14, %v10402_v25 }
 0x1a6   :  { %8075 = vmatpush3.bf16.msra.mxu0 %v10581_v35  ;;  %v10721_v32 = vsub.f32 %v1182_v57, %v1308_v40  ;;  %v1425_v1 = vadd.f32 %v1424_v8, %v1423_v41  ;;  %v1555_v41 = vrot.slane %v10734_v17, %v10406_v27 }
 0x1a7   :  { %9035 = vmatpush3.bf16.msra.mxu1 %v10584_v38  ;;  %8076 = vmatprep.subr.bf16.mxu0 %v10587_v39  ;;  %v1337_v46 = vmul.f32 %v10718_v63, %v10718_v63 }
 0x1a8   :  { %9036 = vmatprep.subr.bf16.mxu1 %v13381_v10  ;;  %v1338_v5 = vmul.f32 %v10721_v32, %v10721_v32  ;;  %v1426_v36 = vrot.slane %v1425_v1, 2 }
 0x1a9   :  { %v1430_v0 = vsel %vm1187_vm3, %v1337_v46, 0.0 }
 0x1aa   :  { %8077 = vmatpush3.bf16.msra.mxu0 %v10602_v55  ;;  %v1431_v57 = vrot.slane %v1430_v0, 4  ;;  %v1437_v47 = vsel %vm1187_vm3, %v1338_v5, 0.0  ;;  %v1427_v42 = vadd.f32 %v1426_v36, %v1425_v1  ;;  %v1710_v1 = vmul.f32 0.2, %v10518_v6 }
 0x1ab   :  { %9037 = vmatpush3.bf16.msra.mxu1 %v10607_v59  ;;  %8078 = vmatprep.subr.bf16.mxu0 %v10610_v11  ;;  %v1438_v20 = vrot.slane %v1437_v47, 4 }
 0x1ac   :  { %9038 = vmatprep.subr.bf16.mxu1 %v13381_v10  ;;  %v1432_v52 = vadd.f32 %v1431_v57, %v1430_v0  ;;  %v1428_v31 = vrot.slane %v1427_v42, 1  ;;  %v1649_v57 = vrot.slane %v10738_v14, %v10406_v27 }
 0x1ad   :  { %v1439_v53 = vadd.f32 %v1438_v20, %v1437_v47 }
 0x1ae   :  { %8079 = vmatpush3.bf16.msra.mxu0 %v10624_v18  ;;  %v1433_v40 = vrot.slane %v1432_v52, 2  ;;  %v1429_v5 = vadd.f32 %v1428_v31, %v1427_v42  ;;  %v1725_v31 = vsel %vm1695_vm7, %v10518_v6, %v1710_v1 }
 0x1af   :  { %9039 = vmatpush3.bf16.msra.mxu1 %v10630_v56  ;;  %8080 = vmatprep.subr.bf16.mxu0 %v10633_v13  ;;  %v9903_v4 = vpop.eup %9902  ;;  %v1440_v36 = vrot.slane %v1439_v53, 2 }
 0x1b0   :  { %9040 = vmatprep.subr.bf16.mxu1 %v13381_v10  ;;  %v9905_v8 = vpop.eup %9904  ;;  %v1499_v46 = vmul.f32 %v9903_v4, %v10628_v16  ;;  %v1434_v47 = vadd.f32 %v1433_v40, %v1432_v52  ;;  %v1456_v25 = vmul.f32 0.25, %v1429_v5 }
 0x1b1   :  { %v1500_v0 = vmul.f32 %v9905_v8, %v10639_v48  ;;  %v1441_v26 = vadd.f32 %v1440_v36, %v1439_v53  ;;  %v10765_v53 = vpack.c.bf16 %v1725_v31, %v1725_v31  ;;  %v1563_v36 = vrot.slane %v10734_v17, %v10410_v29 }
 0x1b2   :  { %8081 = vmatpush3.bf16.msra.mxu0 %v10653_v33  ;;  %v1593_v20 = vmul.f32 %v1551_v43, %v1499_v46  ;;  %v1435_v42 = vrot.slane %v1434_v47, 1  ;;  %v1471_v48 = vadd.f32 1e-05, %v1456_v25  ;;  %v1653_v46 = vrot.slane %v10738_v14, %v10408_v28 }
 0x1b3   :  { %9041 = vmatpush3.bf16.msra.mxu1 %v10661_v34  ;;  %8082 = vmatprep.subr.bf16.mxu0 %v10664_v21  ;;  %v1594_v16 = vmul.f32 %v1555_v41, %v1500_v0  ;;  %v1442_v8 = vrot.slane %v1441_v26, 1  ;;  %v1661_v31 = vrot.slane %v10738_v14, %v10412_v30 }
 0x1b4   :  { %9042 = vmatprep.subr.bf16.mxu1 %v13381_v10  ;;  %v10758_v4 = vadd.f32 %v1645_v7, %v1593_v20  ;;  %v1436_v40 = vadd.f32 %v1435_v42, %v1434_v47  ;;  %9906 = vrsqrt.f32 %v1471_v48 }
 0x1b5   :  { %v10761_v52 = vadd.f32 %v1649_v57, %v1594_v16  ;;  %v1443_v43 = vadd.f32 %v1442_v8, %v1441_v26  ;;  %v1559_v26 = vrot.slane %v10734_v17, %v10408_v28  ;;  %v1657_v16 = vrot.slane %v10738_v14, %v10410_v29 }
 0x1b6   :  { %8083 = vmatpush3.bf16.msra.mxu0 %v10674_v62  ;;  %v1457_v6 = vmul.f32 0.25, %v1436_v40  ;;  %vm1702_vm14 = vcmp.gt.f32.partialorder %v10758_v4, 0.0 }
 0x1b7   :  { %9043 = vmatpush3.bf16.msra.mxu1 %v10679_v61  ;;  %8099 = vmatprep.subr.bf16.mxu0 %v10682_v45  ;;  %v1458_v25 = vmul.f32 0.25, %v1443_v43  ;;  %vm1703_vm15 = vcmp.gt.f32.partialorder %v10761_v52, 0.0 }
 0x1b8   :  { %9048 = vmatprep.subr.bf16.mxu1 %v13381_v10  ;;  %v1472_v7 = vadd.f32 1e-05, %v1457_v6 }
 0x1b9   :  { %2137 = vmatmul.mubr.bf16.vlgmr.msra.gmra.mxu0 %v10523_v37  ;;  %v1473_v41 = vadd.f32 1e-05, %v1458_v25 }
 0x1ba   :  { %9045 = vmatmul.mubr.bf16.vlgmr.msra.gmra.mxu1 %v10765_v53  ;;  %8100 = vmatpush3.bf16.msra.mxu0 %v10535_v49  ;;  %9908 = vrsqrt.f32 %v1472_v7 }
 0x1bb   :  { %2216 = vmatprep.mubr.bf16.mxu0 %v10765_v53  ;;  %9049 = vmatpush3.bf16.msra.mxu1 %v10541_v50  ;;  %9910 = vrsqrt.f32 %v1473_v41 }
 0x1bc   :  { %8101 = vmatprep.subr.bf16.mxu0 %v10544_v51  ;;  %9050 = vmatprep.subr.bf16.mxu1 %v13381_v10 }
 0x1bd   :  { %9064 = vmatprep.mubr.msk.bf16.mxu1 %vm10244_vm2, %v13381_v10 }
 0x1be   :  { %8102 = vmatpush3.bf16.msra.mxu0 %v10552_v60 }
 0x1bf   :  { %9051 = vmatpush3.bf16.msra.mxu1 %v10557_v23  ;;  %8103 = vmatprep.subr.bf16.mxu0 %v10560_v2 }
 0x1c0   :  { %9052 = vmatprep.subr.bf16.mxu1 %v13381_v10 }
 0x1c1   :  { %v9907_v37 = vpop.eup %9906 }
 0x1c2   :  { %8104 = vmatpush3.bf16.msra.mxu0 %v10568_v12  ;;  %v1501_v1 = vmul.f32 %v9907_v37, %v10706_v22  ;;  %v1567_v22 = vrot.slane %v10734_v17, %v10412_v30 }
 0x1c3   :  { %9053 = vmatpush3.bf16.msra.mxu1 %v10571_v15  ;;  %8105 = vmatprep.subr.bf16.mxu0 %v10574_v19 }
 0x1c4   :  { %9054 = vmatprep.subr.bf16.mxu1 %v13381_v10  ;;  %v1595_v5 = vmul.f32 %v1559_v26, %v1501_v1 }
 0x1c6   :  { %8106 = vmatpush3.bf16.msra.mxu0 %v10581_v35  ;;  %v10796_v57 = vadd.f32 %v1653_v46, %v1595_v5  ;;  %v13382_v5 = vld [vmem:[#allocation21_spill] sm:$0xff] }
 0x1c7   :  { %9055 = vmatpush3.bf16.msra.mxu1 %v10584_v38  ;;  %8107 = vmatprep.subr.bf16.mxu0 %v10587_v39  ;;  %v9909_v0 = vpop.eup %9908 }
 0x1c8   :  { %9056 = vmatprep.subr.bf16.mxu1 %v13381_v10  ;;  %v9911_v47 = vpop.eup %9910  ;;  %v1502_v20 = vmul.f32 %v9909_v0, %v10718_v63  ;;  %vm1704_vm0 = vcmp.gt.f32.partialorder %v10796_v57, 0.0 }
 0x1c9   :  { %v1503_v42 = vmul.f32 %v9911_v47, %v10721_v32  ;;  %v1711_v32 = vmul.f32 0.2, %v10622_v9 }
 0x1ca   :  { %8108 = vmatpush3.bf16.msra.mxu0 %v10602_v55  ;;  %v1596_v48 = vmul.f32 %v1563_v36, %v1502_v20  ;;  %v280_v36 = vrot.slane %v10529_v44, %v13382_v5 }
 0x1cb   :  { %9057 = vmatpush3.bf16.msra.mxu1 %v10607_v59  ;;  %8109 = vmatprep.subr.bf16.mxu0 %v10610_v11  ;;  %v1597_v8 = vmul.f32 %v1567_v22, %v1503_v42  ;;  %v1726_v43 = vsel %vm1696_vm8, %v10622_v9, %v1711_v32  ;;  %v276_v9 = vrot.slane %v10529_v44, %v10400_v24  ;;  %v13383_v22 = vld [vmem:[#allocation23_spill] sm:$0xff] }
 0x1cc   :  { %9058 = vmatprep.subr.bf16.mxu1 %v13381_v10  ;;  %v10811_v40 = vadd.f32 %v1657_v16, %v1596_v48  ;;  %v10828_v6 = vpack.c.bf16 %v1726_v43, %v1726_v43  ;;  %v1061_v47 = vadd.f32 %v13383_v22, %v280_v36 }
 0x1cd   :  { %v10815_v63 = vadd.f32 %v1661_v31, %v1597_v8  ;;  %v13384_v31 = vld [vmem:[#allocation24_spill] sm:$0xff] }
 0x1ce   :  { %8110 = vmatpush3.bf16.msra.mxu0 %v10624_v18  ;;  %v1251_v44 = vsel %vm1187_vm3, %v1061_v47, 0.0  ;;  %v1713_v48 = vmul.f32 0.2, %v13384_v31  ;;  %vm1698_vm10 = vcmp.gt.f32.partialorder %v13384_v31, 0.0  ;;  %vm1705_vm1 = vcmp.gt.f32.partialorder %v10811_v40, 0.0 }
 0x1cf   :  { %9059 = vmatpush3.bf16.msra.mxu1 %v10630_v56  ;;  %8111 = vmatprep.subr.bf16.mxu0 %v10633_v13  ;;  %v1252_v42 = vrot.slane %v1251_v44, 4 }
 0x1d0   :  { %9060 = vmatprep.subr.bf16.mxu1 %v13381_v10 }
 0x1d1   :  { %v1253_v32 = vadd.f32 %v1252_v42, %v1251_v44  ;;  %v13385_v44 = vld [vmem:[#allocation25_spill] sm:$0xff] }
 0x1d2   :  { %8112 = vmatpush3.bf16.msra.mxu0 %v10653_v33  ;;  %vm1699_vm11 = vcmp.gt.f32.partialorder %v13385_v44, 0.0 }
 0x1d3   :  { %9061 = vmatpush3.bf16.msra.mxu1 %v10661_v34  ;;  %8113 = vmatprep.subr.bf16.mxu0 %v10664_v21 }
 0x1d4   :  { %9062 = vmatprep.subr.bf16.mxu1 %v13381_v10 }
 0x1d6   :  { %8114 = vmatpush3.bf16.msra.mxu0 %v10674_v62 }
 0x1d7   :  { %9063 = vmatpush3.bf16.msra.mxu1 %v10679_v61  ;;  %8130 = vmatprep.subr.bf16.mxu0 %v10682_v45 }
 0x1d8   :  { %9068 = vmatprep.subr.bf16.mxu1 %v13381_v10 }
 0x1d9   :  { %2217 = vmatmul.mubr.bf16.vlgmr.msra.gmra.mxu0 %v10685_v3  ;;  %v1059_v3 = vadd.f32 %v10514_v54, %v276_v9  ;;  %v1712_v54 = vmul.f32 0.2, %v10641_v58  ;;  %v1728_v9 = vsel %vm1698_vm10, %v13384_v31, %v1713_v48 }
 0x1da   :  { %9065 = vmatmul.mubr.bf16.vlgmr.msra.gmra.mxu1 %v10828_v6  ;;  %8131 = vmatpush3.bf16.msra.mxu0 %v10535_v49 }
 0x1db   :  { %2296 = vmatprep.mubr.bf16.mxu0 %v10828_v6  ;;  %9069 = vmatpush3.bf16.msra.mxu1 %v10541_v50  ;;  %v1244_v25 = vsel %vm1187_vm3, %v1059_v3, 0.0  ;;  %v1727_v26 = vsel %vm1697_vm9, %v10641_v58, %v1712_v54 }
 0x1dc   :  { %8132 = vmatprep.subr.bf16.mxu0 %v10544_v51  ;;  %9070 = vmatprep.subr.bf16.mxu1 %v13381_v10  ;;  %v1245_v7 = vrot.slane %v1244_v25, 4  ;;  %v10874_v1 = vpack.c.bf16 %v1727_v26, %v1727_v26 }
 0x1dd   :  { %9084 = vmatprep.mubr.msk.bf16.mxu1 %vm10244_vm2, %v13381_v10 }
 0x1de   :  { %8133 = vmatpush3.bf16.msra.mxu0 %v10552_v60  ;;  %v1246_v41 = vadd.f32 %v1245_v7, %v1244_v25  ;;  %v10925_v25 = vpack.c.bf16 %v1728_v9, %v1728_v9 }
 0x1df   :  { %9071 = vmatpush3.bf16.msra.mxu1 %v10557_v23  ;;  %8134 = vmatprep.subr.bf16.mxu0 %v10560_v2 }
 0x1e0   :  { %9072 = vmatprep.subr.bf16.mxu1 %v13381_v10  ;;  %v1247_v37 = vrot.slane %v1246_v41, 2 }
 0x1e2   :  { %8135 = vmatpush3.bf16.msra.mxu0 %v10568_v12  ;;  %v1248_v46 = vadd.f32 %v1247_v37, %v1246_v41 }
 0x1e3   :  { %9073 = vmatpush3.bf16.msra.mxu1 %v10571_v15  ;;  %8136 = vmatprep.subr.bf16.mxu0 %v10574_v19 }
 0x1e4   :  { %9074 = vmatprep.subr.bf16.mxu1 %v13381_v10  ;;  %v1249_v58 = vrot.slane %v1248_v46, 1 }
 0x1e6   :  { %8137 = vmatpush3.bf16.msra.mxu0 %v10581_v35 }
 0x1e7   :  { %9075 = vmatpush3.bf16.msra.mxu1 %v10584_v38  ;;  %8138 = vmatprep.subr.bf16.mxu0 %v10587_v39 }
 0x1e8   :  { %9076 = vmatprep.subr.bf16.mxu1 %v13381_v10 }
 0x1ea   :  { %8139 = vmatpush3.bf16.msra.mxu0 %v10602_v55 }
 0x1eb   :  { %9077 = vmatpush3.bf16.msra.mxu1 %v10607_v59  ;;  %8140 = vmatprep.subr.bf16.mxu0 %v10610_v11 }
 0x1ec   :  { %9078 = vmatprep.subr.bf16.mxu1 %v13381_v10 }
 0x1ee   :  { %8141 = vmatpush3.bf16.msra.mxu0 %v10624_v18 }
 0x1ef   :  { %9079 = vmatpush3.bf16.msra.mxu1 %v10630_v56  ;;  %8142 = vmatprep.subr.bf16.mxu0 %v10633_v13 }
 0x1f0   :  { %9080 = vmatprep.subr.bf16.mxu1 %v13381_v10 }
 0x1f2   :  { %8143 = vmatpush3.bf16.msra.mxu0 %v10653_v33 }
 0x1f3   :  { %9081 = vmatpush3.bf16.msra.mxu1 %v10661_v34  ;;  %8144 = vmatprep.subr.bf16.mxu0 %v10664_v21 }
 0x1f4   :  { %9082 = vmatprep.subr.bf16.mxu1 %v13381_v10 }
 0x1f6   :  { %8145 = vmatpush3.bf16.msra.mxu0 %v10674_v62 }
 0x1f7   :  { %9083 = vmatpush3.bf16.msra.mxu1 %v10679_v61  ;;  %8161 = vmatprep.subr.bf16.mxu0 %v10682_v45 }
 0x1f8   :  { %9088 = vmatprep.subr.bf16.mxu1 %v13381_v10 }
 0x1f9   :  { %2297 = vmatmul.mubr.bf16.vlgmr.msra.gmra.mxu0 %v10765_v53  ;;  %v1250_v53 = vadd.f32 %v1249_v58, %v1248_v46 }
 0x1fa   :  { %9085 = vmatmul.mubr.bf16.vlgmr.msra.gmra.mxu1 %v10874_v1  ;;  %8162 = vmatpush3.bf16.msra.mxu0 %v10535_v49 }
 0x1fb   :  { %2376 = vmatprep.mubr.bf16.mxu0 %v10874_v1  ;;  %9089 = vmatpush3.bf16.msra.mxu1 %v10541_v50  ;;  %v1302_v0 = vmul.f32 0.25, %v1250_v53 }
 0x1fc   :  { %8163 = vmatprep.subr.bf16.mxu0 %v10544_v51  ;;  %9090 = vmatprep.subr.bf16.mxu1 %v13381_v10 }
 0x1fd   :  { %9104 = vmatprep.mubr.msk.bf16.mxu1 %vm10244_vm2, %v13381_v10  ;;  %v10901_v20 = vsub.f32 %v1059_v3, %v1302_v0  ;;  %v1254_v3 = vrot.slane %v1253_v32, 2 }
 0x1fe   :  { %8164 = vmatpush3.bf16.msra.mxu0 %v10552_v60 }
 0x1ff   :  { %9091 = vmatpush3.bf16.msra.mxu1 %v10557_v23  ;;  %8165 = vmatprep.subr.bf16.mxu0 %v10560_v2  ;;  %v1332_v16 = vmul.f32 %v10901_v20, %v10901_v20  ;;  %v1255_v54 = vadd.f32 %v1254_v3, %v1253_v32 }
 0x200   :  { %9092 = vmatprep.subr.bf16.mxu1 %v13381_v10 }
 0x201   :  { %v1395_v8 = vsel %vm1187_vm3, %v1332_v16, 0.0  ;;  %v1256_v26 = vrot.slane %v1255_v54, 1  ;;  %v1714_v16 = vmul.f32 0.2, %v13385_v44 }
 0x202   :  { %8166 = vmatpush3.bf16.msra.mxu0 %v10568_v12  ;;  %v1396_v43 = vrot.slane %v1395_v8, 4 }
 0x203   :  { %9093 = vmatpush3.bf16.msra.mxu1 %v10571_v15  ;;  %8167 = vmatprep.subr.bf16.mxu0 %v10574_v19  ;;  %v1257_v37 = vadd.f32 %v1256_v26, %v1255_v54  ;;  %v1729_v48 = vsel %vm1699_vm11, %v13385_v44, %v1714_v16  ;;  %v11027_v44 = vld [vmem:[#allocation8 + $0xb8] sm:$0xff]  }
 0x204   :  { %9094 = vmatprep.subr.bf16.mxu1 %v13381_v10  ;;  %v1397_v7 = vadd.f32 %v1396_v43, %v1395_v8  ;;  %v10972_v8 = vpack.c.bf16 %v1729_v48, %v1729_v48 }
 0x205   :  { %v1303_v58 = vmul.f32 0.25, %v1257_v37 }
 0x206   :  { %8168 = vmatpush3.bf16.msra.mxu0 %v10581_v35  ;;  %v1398_v41 = vrot.slane %v1397_v7, 2 }
 0x207   :  { %9095 = vmatpush3.bf16.msra.mxu1 %v10584_v38  ;;  %8169 = vmatprep.subr.bf16.mxu0 %v10587_v39  ;;  %v10949_v36 = vsub.f32 %v1061_v47, %v1303_v58 }
 0x208   :  { %9096 = vmatprep.subr.bf16.mxu1 %v13381_v10 }
 0x209   :  { %v1333_v22 = vmul.f32 %v10949_v36, %v10949_v36 }
 0x20a   :  { %8170 = vmatpush3.bf16.msra.mxu0 %v10602_v55 }
 0x20b   :  { %9097 = vmatpush3.bf16.msra.mxu1 %v10607_v59  ;;  %8171 = vmatprep.subr.bf16.mxu0 %v10610_v11  ;;  %v1402_v42 = vsel %vm1187_vm3, %v1333_v22, 0.0  ;;  %v11023_v22 = vld [vmem:[#allocation8 + $0x38] sm:$0xff]   ;;  %vm1706_vm3 = vcmp.gt.f32.partialorder %v10815_v63, 0.0 }
 0x20c   :  { %9098 = vmatprep.subr.bf16.mxu1 %v13381_v10  ;;  %v1403_v31 = vrot.slane %v1402_v42, 4 }
 0x20e   :  { %8172 = vmatpush3.bf16.msra.mxu0 %v10624_v18  ;;  %v1404_v32 = vadd.f32 %v1403_v31, %v1402_v42  ;;  %v11030_v31 = vld [vmem:[#allocation8 + $0x70] sm:$0xff]  }
 0x20f   :  { %9099 = vmatpush3.bf16.msra.mxu1 %v10630_v56  ;;  %8173 = vmatprep.subr.bf16.mxu0 %v10633_v13 }
 0x210   :  { %9100 = vmatprep.subr.bf16.mxu1 %v13381_v10 }
 0x212   :  { %8174 = vmatpush3.bf16.msra.mxu0 %v10653_v33 }
 0x213   :  { %9101 = vmatpush3.bf16.msra.mxu1 %v10661_v34  ;;  %8175 = vmatprep.subr.bf16.mxu0 %v10664_v21 }
 0x214   :  { %9102 = vmatprep.subr.bf16.mxu1 %v13381_v10 }
 0x216   :  { %8176 = vmatpush3.bf16.msra.mxu0 %v10674_v62 }
 0x217   :  { %9103 = vmatpush3.bf16.msra.mxu1 %v10679_v61  ;;  %8192 = vmatprep.subr.bf16.mxu0 %v10682_v45 }
 0x218   :  { %9108 = vmatprep.subr.bf16.mxu1 %v13381_v10 }
 0x219   :  { %2377 = vmatmul.mubr.bf16.vlgmr.msra.gmra.mxu0 %v10828_v6  ;;  %v1399_v6 = vadd.f32 %v1398_v41, %v1397_v7  ;;  %v1405_v41 = vrot.slane %v1404_v32, 2 }
 0x21a   :  { %9105 = vmatmul.mubr.bf16.vlgmr.msra.gmra.mxu1 %v10925_v25  ;;  %8193 = vmatpush3.bf16.msra.mxu0 %v10535_v49 }
 0x21b   :  { %2456 = vmatprep.mubr.bf16.mxu0 %v10925_v25  ;;  %9109 = vmatpush3.bf16.msra.mxu1 %v10541_v50  ;;  %v1400_v46 = vrot.slane %v1399_v6, 1 }
 0x21c   :  { %8194 = vmatprep.subr.bf16.mxu0 %v10544_v51  ;;  %9110 = vmatprep.subr.bf16.mxu1 %v13381_v10 }
 0x21d   :  { %9124 = vmatprep.mubr.msk.bf16.mxu1 %vm10244_vm2, %v13381_v10  ;;  %v1401_v53 = vadd.f32 %v1400_v46, %v1399_v6 }
 0x21e   :  { %8195 = vmatpush3.bf16.msra.mxu0 %v10552_v60 }
 0x21f   :  { %9111 = vmatpush3.bf16.msra.mxu1 %v10557_v23  ;;  %8196 = vmatprep.subr.bf16.mxu0 %v10560_v2  ;;  %v1452_v0 = vmul.f32 0.25, %v1401_v53 }
 0x220   :  { %9112 = vmatprep.subr.bf16.mxu1 %v13381_v10 }
 0x221   :  { %v1467_v47 = vadd.f32 1e-05, %v1452_v0 }
 0x222   :  { %8197 = vmatpush3.bf16.msra.mxu0 %v10568_v12 }
 0x223   :  { %9113 = vmatpush3.bf16.msra.mxu1 %v10571_v15  ;;  %8198 = vmatprep.subr.bf16.mxu0 %v10574_v19  ;;  %9912 = vrsqrt.f32 %v1467_v47 }
 0x224   :  { %9114 = vmatprep.subr.bf16.mxu1 %v13381_v10 }
 0x226   :  { %8199 = vmatpush3.bf16.msra.mxu0 %v10581_v35 }
 0x227   :  { %9115 = vmatpush3.bf16.msra.mxu1 %v10584_v38  ;;  %8200 = vmatprep.subr.bf16.mxu0 %v10587_v39 }
 0x228   :  { %9116 = vmatprep.subr.bf16.mxu1 %v13381_v10 }
 0x22a   :  { %8201 = vmatpush3.bf16.msra.mxu0 %v10602_v55 }
 0x22b   :  { %9117 = vmatpush3.bf16.msra.mxu1 %v10607_v59  ;;  %8202 = vmatprep.subr.bf16.mxu0 %v10610_v11 }
 0x22c   :  { %9118 = vmatprep.subr.bf16.mxu1 %v13381_v10 }
 0x22e   :  { %8203 = vmatpush3.bf16.msra.mxu0 %v10624_v18 }
 0x22f   :  { %9119 = vmatpush3.bf16.msra.mxu1 %v10630_v56  ;;  %8204 = vmatprep.subr.bf16.mxu0 %v10633_v13 }
 0x230   :  { %9120 = vmatprep.subr.bf16.mxu1 %v13381_v10  ;;  %v9913_v37 = vpop.eup %9912 }
 0x232   :  { %8205 = vmatpush3.bf16.msra.mxu0 %v10653_v33 }
 0x233   :  { %9121 = vmatpush3.bf16.msra.mxu1 %v10661_v34  ;;  %8206 = vmatprep.subr.bf16.mxu0 %v10664_v21 }
 0x234   :  { %9122 = vmatprep.subr.bf16.mxu1 %v13381_v10 }
 0x236   :  { %8207 = vmatpush3.bf16.msra.mxu0 %v10674_v62 }
 0x237   :  { %9123 = vmatpush3.bf16.msra.mxu1 %v10679_v61  ;;  %8223 = vmatprep.subr.bf16.mxu0 %v10682_v45 }
 0x238   :  { %9128 = vmatprep.subr.bf16.mxu1 %v13381_v10 }
 0x239   :  { %2457 = vmatmul.mubr.bf16.vlgmr.msra.gmra.mxu0 %v10874_v1  ;;  %v8022_v43 = vpop.f32.mrf.mxu0 }
 0x23a   :  { %v2018_v9 = vpop.f32.mrf.mxu1  ;;  %9125 = vmatmul.mubr.bf16.vlgmr.msra.gmra.mxu1 %v10972_v8  ;;  %8224 = vmatpush3.bf16.msra.mxu0 %v10535_v49 }
 0x23b   :  { %2536 = vmatprep.mubr.bf16.mxu0 %v10972_v8  ;;  %9129 = vmatpush3.bf16.msra.mxu1 %v10541_v50  ;;  %v8023_v3 = vpop.f32.mrf.mxu0 }
 0x23c   :  { %v9006_v7 = vpop.f32.mrf.mxu1  ;;  %v8024_v54 = vadd.f32 %v8023_v3, %v8022_v43  ;;  %8225 = vmatprep.subr.bf16.mxu0 %v10544_v51  ;;  %9130 = vmatprep.subr.bf16.mxu1 %v13381_v10  ;;  %v1406_v51 = vadd.f32 %v1405_v41, %v1404_v32  ;;  %v11038_v43 = vld [vmem:[#allocation8 + $0x30] sm:$0xff]  }
 0x23d   :  { %v8025_v26 = vpop.f32.mrf.mxu0  ;;  %9144 = vmatprep.mubr.msk.bf16.mxu1 %vm10244_vm2, %v13381_v10  ;;  %v11041_v3 = vld [vmem:[#allocation8 + $0xb0] sm:$0xff]   ;;  %v11044_v7 = vld [vmem:[#allocation8 + $0x68] sm:$0xff]  }
 0x23e   :  { %v2021_v1 = vpop.f32.mrf.mxu1  ;;  %v10984_v6 = vadd.f32 %v8024_v54, %v2018_v9  ;;  %8226 = vmatpush3.bf16.msra.mxu0 %v10552_v60  ;;  %v1497_v60 = vmul.f32 %v9913_v37, %v10901_v20  ;;  %v1407_v46 = vrot.slane %v1406_v51, 1  ;;  %v11048_v26 = vld [vmem:[#allocation8 + $0x28] sm:$0xff]   ;;  %v11061_v37 = vld [vmem:[#allocation8 + $0x20] sm:$0xff]  }
 0x23f   :  { %9131 = vmatpush3.bf16.msra.mxu1 %v10557_v23  ;;  %v8026_v49 = vpop.f32.mrf.mxu0  ;;  %8227 = vmatprep.subr.bf16.mxu0 %v10560_v2  ;;  %v1543_v23 = vrot.slane %v10734_v17, %v10400_v24  ;;  %v11051_v1 = vld [vmem:[#allocation8 + $0xa8] sm:$0xff]  }
 0x240   :  { %v9007_v50 = vpop.f32.mrf.mxu1  ;;  %9132 = vmatprep.subr.bf16.mxu1 %v13381_v10  ;;  %v11054_v49 = vld [vmem:[#allocation8 + $0x60] sm:$0xff]  }
 0x241   :  { %v1591_v2 = vmul.f32 %v1543_v23, %v1497_v60  ;;  %v11064_v60 = vld [vmem:[#allocation8 + $0xa0] sm:$0xff]   ;;  %v11067_v23 = vld [vmem:[#allocation8 + $0x58] sm:$0xff]  }
 0x242   :  { %8228 = vmatpush3.bf16.msra.mxu0 %v10568_v12  ;;  %v1637_v12 = vrot.slane %v10738_v14, %v10400_v24 }
 0x243   :  { %9133 = vmatpush3.bf16.msra.mxu1 %v10571_v15  ;;  %8229 = vmatprep.subr.bf16.mxu0 %v10574_v19  ;;  %v1408_v15 = vadd.f32 %v1407_v46, %v1406_v51  ;;  %v1547_v51 = vrot.slane %v10734_v17, %v13382_v5 }
 0x244   :  { %9134 = vmatprep.subr.bf16.mxu1 %v13381_v10  ;;  %v1685_v19 = vadd.f32 %v1637_v12, %v1591_v2  ;;  %v11114_v12 = vld [vmem:[#allocation8 + $0x18] sm:$0xff]  }
 0x246   :  { %8230 = vmatpush3.bf16.msra.mxu0 %v10581_v35  ;;  %v1453_v35 = vmul.f32 0.25, %v1408_v15  ;;  %vm1700_vm12 = vcmp.gt.f32.partialorder %v1685_v19, 0.0  ;;  %v11117_v15 = vld [vmem:[#allocation8 + $0x98] sm:$0xff]  }
 0x247   :  { %9135 = vmatpush3.bf16.msra.mxu1 %v10584_v38  ;;  %8231 = vmatprep.subr.bf16.mxu0 %v10587_v39  ;;  %v1715_v39 = vmul.f32 0.2, %v1685_v19 }
 0x248   :  { %9136 = vmatprep.subr.bf16.mxu1 %v13381_v10  ;;  %v1468_v38 = vadd.f32 1e-05, %v1453_v35  ;;  %v11124_v35 = vld [vmem:[#allocation8 + $0x10] sm:$0xff]  }
 0x249   :  { %v1730_v20 = vsel %vm1700_vm12, %v1685_v19, %v1715_v39  ;;  %v11120_v19 = vld [vmem:[#allocation8 + $0x50] sm:$0xff]   ;;  %v11130_v39 = vld [vmem:[#allocation8 + $0x48] sm:$0xff]  }
 0x24a   :  { %8232 = vmatpush3.bf16.msra.mxu0 %v10602_v55  ;;  %9914 = vrsqrt.f32 %v1468_v38  ;;  %v11018_v58 = vpack.c.bf16 %v1730_v20, %v1730_v20  ;;  %v11127_v38 = vld [vmem:[#allocation8 + $0x90] sm:$0xff]   ;;  %v1717_v20 = vmul.f32 0.2, %v10758_v4 }
 0x24b   :  { %9137 = vmatpush3.bf16.msra.mxu1 %v10607_v59  ;;  %8233 = vmatprep.subr.bf16.mxu0 %v10610_v11 }
 0x24c   :  { %9138 = vmatprep.subr.bf16.mxu1 %v13381_v10 }
 0x24e   :  { %8234 = vmatpush3.bf16.msra.mxu0 %v10624_v18 }
 0x24f   :  { %9139 = vmatpush3.bf16.msra.mxu1 %v10630_v56  ;;  %8235 = vmatprep.subr.bf16.mxu0 %v10633_v13 }
 0x250   :  { %9140 = vmatprep.subr.bf16.mxu1 %v13381_v10 }
 0x252   :  { %8236 = vmatpush3.bf16.msra.mxu0 %v10653_v33 }
 0x253   :  { %9141 = vmatpush3.bf16.msra.mxu1 %v10661_v34  ;;  %8237 = vmatprep.subr.bf16.mxu0 %v10664_v21 }
 0x254   :  { %9142 = vmatprep.subr.bf16.mxu1 %v13381_v10 }
 0x256   :  { %8238 = vmatpush3.bf16.msra.mxu0 %v10674_v62 }
 0x257   :  { %9143 = vmatpush3.bf16.msra.mxu1 %v10679_v61  ;;  %8254 = vmatprep.subr.bf16.mxu0 %v10682_v45  ;;  %v9915_v41 = vpop.eup %9914 }
 0x258   :  { %9148 = vmatprep.subr.bf16.mxu1 %v13381_v10  ;;  %v1498_v50 = vmul.f32 %v9915_v41, %v10949_v36  ;;  %v1641_v36 = vrot.slane %v10738_v14, %v13382_v5 }
 0x259   :  { %v8053_v53 = vpop.f32.mrf.mxu0  ;;  %2537 = vmatmul.mubr.bf16.vlgmr.msra.gmra.mxu0 %v10925_v25 }
 0x25a   :  { %v2098_v0 = vpop.f32.mrf.mxu1  ;;  %9145 = vmatmul.mubr.bf16.vlgmr.msra.gmra.mxu1 %v11018_v58  ;;  %8255 = vmatpush3.bf16.msra.mxu0 %v11023_v22  ;;  %v1592_v46 = vmul.f32 %v1547_v51, %v1498_v50 }
 0x25b   :  { %2616 = vmatprep.mubr.bf16.mxu0 %v11018_v58  ;;  %v8054_v47 = vpop.f32.mrf.mxu0  ;;  %9149 = vmatpush3.bf16.msra.mxu1 %v11027_v44 }
 0x25c   :  { %v8055_v16 = vadd.f32 %v8054_v47, %v8053_v53  ;;  %v9026_v42 = vpop.f32.mrf.mxu1  ;;  %8256 = vmatprep.subr.bf16.mxu0 %v11030_v31  ;;  %9150 = vmatprep.subr.bf16.mxu1 %v13381_v10  ;;  %v1686_v17 = vadd.f32 %v1641_v36, %v1592_v46  ;;  %v11135_v53 = vld [vmem:[#allocation8 + $0x8] sm:$0xff]   ;;  %v11142_v47 = vld [vmem:[#allocation8 + $0x40] sm:$0xff]   ;;  %v1718_v46 = vmul.f32 0.2, %v10761_v52 }
 0x25d   :  { %v8056_v25 = vpop.f32.mrf.mxu0  ;;  %9164 = vmatprep.mubr.msk.bf16.mxu1 %vm10244_vm2, %v13381_v10  ;;  %v11147_v42 = vld [vmem:[#allocation8] sm:$0xff]  }
 0x25e   :  { %v11036_v48 = vadd.f32 %v8055_v16, %v2098_v0  ;;  %v2101_v32 = vpop.f32.mrf.mxu1  ;;  %8257 = vmatpush3.bf16.msra.mxu0 %v11038_v43  ;;  %v1716_v2 = vmul.f32 0.2, %v1686_v17  ;;  %vm1701_vm13 = vcmp.gt.f32.partialorder %v1686_v17, 0.0  ;;  %v11139_v0 = vld [vmem:[#allocation8 + $0x88] sm:$0xff]   ;;  %v1732_v16 = vsel %vm1702_vm14, %v10758_v4, %v1717_v20 }
 0x25f   :  { %v8057_v9 = vpop.f32.mrf.mxu0  ;;  %9151 = vmatpush3.bf16.msra.mxu1 %v11041_v3  ;;  %8258 = vmatprep.subr.bf16.mxu0 %v11044_v7  ;;  %v11152_v25 = vpack.c.bf16 %v1732_v16, %v1732_v16  ;;  %v1733_v36 = vsel %vm1703_vm15, %v10761_v52, %v1718_v46 }
 0x260   :  { %v9027_v54 = vpop.f32.mrf.mxu1  ;;  %9152 = vmatprep.subr.bf16.mxu1 %v13381_v10 }
 0x262   :  { %8259 = vmatpush3.bf16.msra.mxu0 %v11048_v26 }
 0x263   :  { %9153 = vmatpush3.bf16.msra.mxu1 %v11051_v1  ;;  %8260 = vmatprep.subr.bf16.mxu0 %v11054_v49 }
 0x264   :  { %9154 = vmatprep.subr.bf16.mxu1 %v13381_v10 }
 0x266   :  { %8261 = vmatpush3.bf16.msra.mxu0 %v11061_v37 }
 0x267   :  { %9155 = vmatpush3.bf16.msra.mxu1 %v11064_v60  ;;  %8262 = vmatprep.subr.bf16.mxu0 %v11067_v23 }
 0x268   :  { %9156 = vmatprep.subr.bf16.mxu1 %v13381_v10 }
 0x26a   :  { %8263 = vmatpush3.bf16.msra.mxu0 %v10602_v55  ;;  %v1731_v55 = vsel %vm1701_vm13, %v1686_v17, %v1716_v2  ;;  %v11194_v17 = vld [vmem:[#allocation8 + $0x80] sm:$0xff]   ;;  %v11197_v2 = vld [vmem:[#allocation8 + $0x78] sm:$0xff]  }
 0x26b   :  { %9157 = vmatpush3.bf16.msra.mxu1 %v10607_v59  ;;  %8264 = vmatprep.subr.bf16.mxu0 %v10610_v11  ;;  %v11088_v59 = vpack.c.bf16 %v1731_v55, %v1731_v55  ;;  %v11200_v55 = vpack.c.bf16 %v1733_v36, %v1733_v36 }
 0x26c   :  { %9158 = vmatprep.subr.bf16.mxu1 %v13381_v10 }
 0x26e   :  { %8265 = vmatpush3.bf16.msra.mxu0 %v10624_v18 }
 0x26f   :  { %9159 = vmatpush3.bf16.msra.mxu1 %v10630_v56  ;;  %8266 = vmatprep.subr.bf16.mxu0 %v10633_v13 }
 0x270   :  { %9160 = vmatprep.subr.bf16.mxu1 %v13381_v10 }
 0x272   :  { %8267 = vmatpush3.bf16.msra.mxu0 %v10653_v33 }
 0x273   :  { %9161 = vmatpush3.bf16.msra.mxu1 %v10661_v34  ;;  %8268 = vmatprep.subr.bf16.mxu0 %v10664_v21 }
 0x274   :  { %9162 = vmatprep.subr.bf16.mxu1 %v13381_v10 }
 0x276   :  { %8269 = vmatpush3.bf16.msra.mxu0 %v10674_v62 }
 0x277   :  { %9163 = vmatpush3.bf16.msra.mxu1 %v10679_v61  ;;  %8285 = vmatprep.subr.bf16.mxu0 %v10682_v45 }
 0x278   :  { %9168 = vmatprep.subr.bf16.mxu1 %v13381_v10 }
 0x279   :  { %v8084_v11 = vpop.f32.mrf.mxu0  ;;  %2617 = vmatmul.mubr.bf16.vlgmr.msra.gmra.mxu0 %v10972_v8 }
 0x27a   :  { %v2178_v18 = vpop.f32.mrf.mxu1  ;;  %9165 = vmatmul.mubr.bf16.vlgmr.msra.gmra.mxu1 %v11088_v59  ;;  %8286 = vmatpush3.bf16.msra.mxu0 %v11023_v22 }
 0x27b   :  { %2696 = vmatprep.mubr.bf16.mxu0 %v11088_v59  ;;  %v8085_v56 = vpop.f32.mrf.mxu0  ;;  %9169 = vmatpush3.bf16.msra.mxu1 %v11027_v44 }
 0x27c   :  { %v8086_v13 = vadd.f32 %v8085_v56, %v8084_v11  ;;  %v9046_v33 = vpop.f32.mrf.mxu1  ;;  %8287 = vmatprep.subr.bf16.mxu0 %v11030_v31  ;;  %9170 = vmatprep.subr.bf16.mxu1 %v13381_v10 }
 0x27d   :  { %v8087_v34 = vpop.f32.mrf.mxu0  ;;  %9184 = vmatprep.mubr.msk.bf16.mxu1 %vm10244_vm2, %v13381_v10 }
 0x27e   :  { %v11100_v21 = vadd.f32 %v8086_v13, %v2178_v18  ;;  %v2181_v62 = vpop.f32.mrf.mxu1  ;;  %8288 = vmatpush3.bf16.msra.mxu0 %v11038_v43 }
 0x27f   :  { %v8088_v14 = vpop.f32.mrf.mxu0  ;;  %9171 = vmatpush3.bf16.msra.mxu1 %v11041_v3  ;;  %8289 = vmatprep.subr.bf16.mxu0 %v11044_v7 }
 0x280   :  { %v9047_v8 = vpop.f32.mrf.mxu1  ;;  %9172 = vmatprep.subr.bf16.mxu1 %v13381_v10 }
 0x281   :  { %v1719_v8 = vmul.f32 0.2, %v10796_v57 }
 0x282   :  { %8290 = vmatpush3.bf16.msra.mxu0 %v11048_v26 }
 0x283   :  { %9173 = vmatpush3.bf16.msra.mxu1 %v11051_v1  ;;  %8291 = vmatprep.subr.bf16.mxu0 %v11054_v49  ;;  %v1734_v20 = vsel %vm1704_vm0, %v10796_v57, %v1719_v8 }
 0x284   :  { %9174 = vmatprep.subr.bf16.mxu1 %v13381_v10  ;;  %v11244_v16 = vpack.c.bf16 %v1734_v20, %v1734_v20 }
 0x286   :  { %8292 = vmatpush3.bf16.msra.mxu0 %v11061_v37 }
 0x287   :  { %9175 = vmatpush3.bf16.msra.mxu1 %v11064_v60  ;;  %8293 = vmatprep.subr.bf16.mxu0 %v11067_v23 }
 0x288   :  { %9176 = vmatprep.subr.bf16.mxu1 %v13381_v10 }
 0x28a   :  { %8294 = vmatpush3.bf16.msra.mxu0 %v11114_v12 }
 0x28b   :  { %9177 = vmatpush3.bf16.msra.mxu1 %v11117_v15  ;;  %8295 = vmatprep.subr.bf16.mxu0 %v11120_v19 }
 0x28c   :  { %9178 = vmatprep.subr.bf16.mxu1 %v13381_v10 }
 0x28e   :  { %8296 = vmatpush3.bf16.msra.mxu0 %v11124_v35 }
 0x28f   :  { %9179 = vmatpush3.bf16.msra.mxu1 %v11127_v38  ;;  %8297 = vmatprep.subr.bf16.mxu0 %v11130_v39 }
 0x290   :  { %9180 = vmatprep.subr.bf16.mxu1 %v13381_v10 }
 0x292   :  { %8298 = vmatpush3.bf16.msra.mxu0 %v11135_v53 }
 0x293   :  { %9181 = vmatpush3.bf16.msra.mxu1 %v11139_v0  ;;  %8299 = vmatprep.subr.bf16.mxu0 %v11142_v47 }
 0x294   :  { %9182 = vmatprep.subr.bf16.mxu1 %v13381_v10 }
 0x296   :  { %8300 = vmatpush3.bf16.msra.mxu0 %v11147_v42 }
 0x297   :  { %9183 = vmatpush3.bf16.msra.mxu1 %v10679_v61  ;;  %8316 = vmatprep.subr.bf16.mxu0 %v10682_v45 }
 0x298   :  { %9188 = vmatprep.subr.bf16.mxu1 %v13381_v10 }
 0x299   :  { %v8115_v32 = vpop.f32.mrf.mxu0  ;;  %2697 = vmatmul.mubr.bf16.vlgmr.msra.gmra.mxu0 %v11018_v58 }
 0x29a   :  { %v2258_v9 = vpop.f32.mrf.mxu1  ;;  %9185 = vmatmul.mubr.bf16.vlgmr.msra.gmra.mxu1 %v11152_v25  ;;  %8317 = vmatpush3.bf16.msra.mxu0 %v11023_v22 }
 0x29b   :  { %2776 = vmatprep.mubr.bf16.mxu0 %v11152_v25  ;;  %v8116_v4 = vpop.f32.mrf.mxu0  ;;  %9189 = vmatpush3.bf16.msra.mxu1 %v11027_v44 }
 0x29c   :  { %v8117_v61 = vadd.f32 %v8116_v4, %v8115_v32  ;;  %v9066_v54 = vpop.f32.mrf.mxu1  ;;  %8318 = vmatprep.subr.bf16.mxu0 %v11030_v31  ;;  %9190 = vmatprep.subr.bf16.mxu1 %v13381_v10 }
 0x29d   :  { %v8118_v45 = vpop.f32.mrf.mxu0  ;;  %9204 = vmatprep.mubr.msk.bf16.mxu1 %vm10244_vm2, %v13381_v10 }
 0x29e   :  { %v11164_v58 = vadd.f32 %v8117_v61, %v2258_v9  ;;  %v2261_v41 = vpop.f32.mrf.mxu1  ;;  %8319 = vmatpush3.bf16.msra.mxu0 %v11038_v43 }
 0x29f   :  { %v8119_v50 = vpop.f32.mrf.mxu0  ;;  %9191 = vmatpush3.bf16.msra.mxu1 %v11041_v3  ;;  %8320 = vmatprep.subr.bf16.mxu0 %v11044_v7 }
 0x2a0   :  { %v9067_v51 = vpop.f32.mrf.mxu1  ;;  %9192 = vmatprep.subr.bf16.mxu1 %v13381_v10 }
 0x2a1   :  { %v1720_v51 = vmul.f32 0.2, %v10811_v40 }
 0x2a2   :  { %8321 = vmatpush3.bf16.msra.mxu0 %v11048_v26 }
 0x2a3   :  { %9193 = vmatpush3.bf16.msra.mxu1 %v11051_v1  ;;  %8322 = vmatprep.subr.bf16.mxu0 %v11054_v49  ;;  %v1735_v46 = vsel %vm1705_vm1, %v10811_v40, %v1720_v51  ;;  %v9570_v51 = vld [vmem:[%s13301_s7 + $0x60] sm:$0xff]  }
 0x2a4   :  { %9194 = vmatprep.subr.bf16.mxu1 %v13381_v10  ;;  %v11288_v36 = vpack.c.bf16 %v1735_v46, %v1735_v46 }
 0x2a6   :  { %8323 = vmatpush3.bf16.msra.mxu0 %v11061_v37 }
 0x2a7   :  { %9195 = vmatpush3.bf16.msra.mxu1 %v11064_v60  ;;  %8324 = vmatprep.subr.bf16.mxu0 %v11067_v23 }
 0x2a8   :  { %9196 = vmatprep.subr.bf16.mxu1 %v13381_v10 }
 0x2aa   :  { %8325 = vmatpush3.bf16.msra.mxu0 %v11114_v12 }
 0x2ab   :  { %9197 = vmatpush3.bf16.msra.mxu1 %v11117_v15  ;;  %8326 = vmatprep.subr.bf16.mxu0 %v11120_v19 }
 0x2ac   :  { %9198 = vmatprep.subr.bf16.mxu1 %v13381_v10 }
 0x2ae   :  { %8327 = vmatpush3.bf16.msra.mxu0 %v11124_v35 }
 0x2af   :  { %9199 = vmatpush3.bf16.msra.mxu1 %v11127_v38  ;;  %8328 = vmatprep.subr.bf16.mxu0 %v11130_v39 }
 0x2b0   :  { %9200 = vmatprep.subr.bf16.mxu1 %v13381_v10 }
 0x2b2   :  { %8329 = vmatpush3.bf16.msra.mxu0 %v11135_v53 }
 0x2b3   :  { %9201 = vmatpush3.bf16.msra.mxu1 %v11139_v0  ;;  %8330 = vmatprep.subr.bf16.mxu0 %v11142_v47 }
 0x2b4   :  { %9202 = vmatprep.subr.bf16.mxu1 %v13381_v10 }
 0x2b6   :  { %8331 = vmatpush3.bf16.msra.mxu0 %v11147_v42 }
 0x2b7   :  { %9203 = vmatpush3.bf16.msra.mxu1 %v11194_v17  ;;  %8347 = vmatprep.subr.bf16.mxu0 %v11197_v2 }
 0x2b8   :  { %9208 = vmatprep.subr.bf16.mxu1 %v13381_v10 }
 0x2b9   :  { %v8146_v11 = vpop.f32.mrf.mxu0  ;;  %2777 = vmatmul.mubr.bf16.vlgmr.msra.gmra.mxu0 %v11088_v59 }
 0x2ba   :  { %v2338_v18 = vpop.f32.mrf.mxu1  ;;  %9205 = vmatmul.mubr.bf16.vlgmr.msra.gmra.mxu1 %v11200_v55  ;;  %8348 = vmatpush3.bf16.msra.mxu0 %v11023_v22 }
 0x2bb   :  { %2856 = vmatprep.mubr.bf16.mxu0 %v11200_v55  ;;  %v8147_v52 = vpop.f32.mrf.mxu0  ;;  %9209 = vmatpush3.bf16.msra.mxu1 %v11027_v44 }
 0x2bc   :  { %v8148_v56 = vadd.f32 %v8147_v52, %v8146_v11  ;;  %v9086_v13 = vpop.f32.mrf.mxu1  ;;  %8349 = vmatprep.subr.bf16.mxu0 %v11030_v31  ;;  %9210 = vmatprep.subr.bf16.mxu1 %v13381_v10 }
 0x2bd   :  { %v8149_v33 = vpop.f32.mrf.mxu0  ;;  %9224 = vmatprep.mubr.msk.bf16.mxu1 %vm10244_vm2, %v13381_v10 }
 0x2be   :  { %v11212_v59 = vadd.f32 %v8148_v56, %v2338_v18  ;;  %v2341_v34 = vpop.f32.mrf.mxu1  ;;  %8350 = vmatpush3.bf16.msra.mxu0 %v11038_v43 }
 0x2bf   :  { %v8150_v62 = vpop.f32.mrf.mxu0  ;;  %9211 = vmatpush3.bf16.msra.mxu1 %v11041_v3  ;;  %8351 = vmatprep.subr.bf16.mxu0 %v11044_v7 }
 0x2c0   :  { %v9087_v14 = vpop.f32.mrf.mxu1  ;;  %9212 = vmatprep.subr.bf16.mxu1 %v13381_v10 }
 0x2c1   :  { %v1721_v14 = vmul.f32 0.2, %v10815_v63 }
 0x2c2   :  { %8352 = vmatpush3.bf16.msra.mxu0 %v11048_v26 }
 0x2c3   :  { %9213 = vmatpush3.bf16.msra.mxu1 %v11051_v1  ;;  %8353 = vmatprep.subr.bf16.mxu0 %v11054_v49  ;;  %v1736_v8 = vsel %vm1706_vm3, %v10815_v63, %v1721_v14  ;;  %v9581_v14 = vld [vmem:[%s13301_s7 + $0x90] sm:$0xff]  }
 0x2c4   :  { %9214 = vmatprep.subr.bf16.mxu1 %v13381_v10  ;;  %v1751_v20 = vpack.c.bf16 %v1736_v8, %v1736_v8  ;;  %v9582_v8 = vld [vmem:[%s13301_s7 + $0x48] sm:$0xff]  }
 0x2c6   :  { %8354 = vmatpush3.bf16.msra.mxu0 %v11061_v37 }
 0x2c7   :  { %9215 = vmatpush3.bf16.msra.mxu1 %v11064_v60  ;;  %8355 = vmatprep.subr.bf16.mxu0 %v11067_v23 }
 0x2c8   :  { %9216 = vmatprep.subr.bf16.mxu1 %v13381_v10 }
 0x2ca   :  { %8356 = vmatpush3.bf16.msra.mxu0 %v11114_v12 }
 0x2cb   :  { %9217 = vmatpush3.bf16.msra.mxu1 %v11117_v15  ;;  %8357 = vmatprep.subr.bf16.mxu0 %v11120_v19 }
 0x2cc   :  { %9218 = vmatprep.subr.bf16.mxu1 %v13381_v10 }
 0x2ce   :  { %8358 = vmatpush3.bf16.msra.mxu0 %v11124_v35 }
 0x2cf   :  { %9219 = vmatpush3.bf16.msra.mxu1 %v11127_v38  ;;  %8359 = vmatprep.subr.bf16.mxu0 %v11130_v39 }
 0x2d0   :  { %9220 = vmatprep.subr.bf16.mxu1 %v13381_v10 }
 0x2d2   :  { %8360 = vmatpush3.bf16.msra.mxu0 %v11135_v53 }
 0x2d3   :  { %9221 = vmatpush3.bf16.msra.mxu1 %v11139_v0  ;;  %8361 = vmatprep.subr.bf16.mxu0 %v11142_v47 }
 0x2d4   :  { %9222 = vmatprep.subr.bf16.mxu1 %v13381_v10 }
 0x2d6   :  { %8362 = vmatpush3.bf16.msra.mxu0 %v11147_v42 }
 0x2d7   :  { %9223 = vmatpush3.bf16.msra.mxu1 %v11194_v17  ;;  %8378 = vmatprep.subr.bf16.mxu0 %v11197_v2 }
 0x2d8   :  { %9228 = vmatprep.subr.bf16.mxu1 %v13381_v10 }
 0x2d9   :  { %v8177_v32 = vpop.f32.mrf.mxu0  ;;  %2857 = vmatmul.mubr.bf16.vlgmr.msra.gmra.mxu0 %v11152_v25 }
 0x2da   :  { %v2418_v9 = vpop.f32.mrf.mxu1  ;;  %9225 = vmatmul.mubr.bf16.vlgmr.msra.gmra.mxu1 %v11244_v16  ;;  %8379 = vmatpush3.bf16.msra.mxu0 %v11023_v22 }
 0x2db   :  { %2936 = vmatprep.mubr.bf16.mxu0 %v11244_v16  ;;  %v8178_v57 = vpop.f32.mrf.mxu0  ;;  %9229 = vmatpush3.bf16.msra.mxu1 %v11027_v44 }
 0x2dc   :  { %v8179_v4 = vadd.f32 %v8178_v57, %v8177_v32  ;;  %v9106_v61 = vpop.f32.mrf.mxu1  ;;  %8380 = vmatprep.subr.bf16.mxu0 %v11030_v31  ;;  %9230 = vmatprep.subr.bf16.mxu1 %v13381_v10 }
 0x2dd   :  { %v8180_v54 = vpop.f32.mrf.mxu0  ;;  %9244 = vmatprep.mubr.msk.bf16.mxu1 %vm10244_vm2, %v13381_v10 }
 0x2de   :  { %v11256_v25 = vadd.f32 %v8179_v4, %v2418_v9  ;;  %v2421_v45 = vpop.f32.mrf.mxu1  ;;  %8381 = vmatpush3.bf16.msra.mxu0 %v11038_v43 }
 0x2df   :  { %v8181_v41 = vpop.f32.mrf.mxu0  ;;  %9231 = vmatpush3.bf16.msra.mxu1 %v11041_v3  ;;  %8382 = vmatprep.subr.bf16.mxu0 %v11044_v7  ;;  %v9567_v45 = vld [vmem:[%s13301_s7 + $0x28] sm:$0xff]  }
 0x2e0   :  { %v9107_v50 = vpop.f32.mrf.mxu1  ;;  %9232 = vmatprep.subr.bf16.mxu1 %v13381_v10 }
 0x2e1   :  { %v9569_v50 = vld [vmem:[%s13301_s7 + $0xa8] sm:$0xff]  }
 0x2e2   :  { %8383 = vmatpush3.bf16.msra.mxu0 %v11048_v26 }
 0x2e3   :  { %9233 = vmatpush3.bf16.msra.mxu1 %v11051_v1  ;;  %8384 = vmatprep.subr.bf16.mxu0 %v11054_v49 }
 0x2e4   :  { %9234 = vmatprep.subr.bf16.mxu1 %v13381_v10 }
 0x2e6   :  { %8385 = vmatpush3.bf16.msra.mxu0 %v11061_v37 }
 0x2e7   :  { %9235 = vmatpush3.bf16.msra.mxu1 %v11064_v60  ;;  %8386 = vmatprep.subr.bf16.mxu0 %v11067_v23 }
 0x2e8   :  { %9236 = vmatprep.subr.bf16.mxu1 %v13381_v10 }
 0x2ea   :  { %8387 = vmatpush3.bf16.msra.mxu0 %v11114_v12 }
 0x2eb   :  { %9237 = vmatpush3.bf16.msra.mxu1 %v11117_v15  ;;  %8388 = vmatprep.subr.bf16.mxu0 %v11120_v19 }
 0x2ec   :  { %9238 = vmatprep.subr.bf16.mxu1 %v13381_v10 }
 0x2ee   :  { %8389 = vmatpush3.bf16.msra.mxu0 %v11124_v35 }
 0x2ef   :  { %9239 = vmatpush3.bf16.msra.mxu1 %v11127_v38  ;;  %8390 = vmatprep.subr.bf16.mxu0 %v11130_v39 }
 0x2f0   :  { %9240 = vmatprep.subr.bf16.mxu1 %v13381_v10 }
 0x2f2   :  { %8391 = vmatpush3.bf16.msra.mxu0 %v11135_v53 }
 0x2f3   :  { %9241 = vmatpush3.bf16.msra.mxu1 %v11139_v0  ;;  %8392 = vmatprep.subr.bf16.mxu0 %v11142_v47 }
 0x2f4   :  { %9242 = vmatprep.subr.bf16.mxu1 %v13381_v10 }
 0x2f6   :  { %8393 = vmatpush3.bf16.msra.mxu0 %v11147_v42 }
 0x2f7   :  { %9243 = vmatpush3.bf16.msra.mxu1 %v11194_v17  ;;  %8409 = vmatprep.subr.bf16.mxu0 %v11197_v2 }
 0x2f8   :  { %9248 = vmatprep.subr.bf16.mxu1 %v13381_v10 }
 0x2f9   :  { %v8208_v11 = vpop.f32.mrf.mxu0  ;;  %2937 = vmatmul.mubr.bf16.vlgmr.msra.gmra.mxu0 %v11200_v55 }
 0x2fa   :  { %v2498_v18 = vpop.f32.mrf.mxu1  ;;  %9245 = vmatmul.mubr.bf16.vlgmr.msra.gmra.mxu1 %v11288_v36  ;;  %8410 = vmatpush3.bf16.msra.mxu0 %v11023_v22 }
 0x2fb   :  { %3016 = vmatprep.mubr.bf16.mxu0 %v11288_v36  ;;  %v8209_v40 = vpop.f32.mrf.mxu0  ;;  %9249 = vmatpush3.bf16.msra.mxu1 %v11027_v44 }
 0x2fc   :  { %v8210_v52 = vadd.f32 %v8209_v40, %v8208_v11  ;;  %v9126_v56 = vpop.f32.mrf.mxu1  ;;  %8411 = vmatprep.subr.bf16.mxu0 %v11030_v31  ;;  %9250 = vmatprep.subr.bf16.mxu1 %v13381_v10  ;;  %v9571_v11 = vld [vmem:[%s13301_s7 + $0x20] sm:$0xff]   ;;  %v9574_v40 = vld [vmem:[%s13301_s7 + $0x58] sm:$0xff]  }
 0x2fd   :  { %v8211_v13 = vpop.f32.mrf.mxu0  ;;  %9264 = vmatprep.mubr.msk.bf16.mxu1 %vm10244_vm2, %v13381_v10  ;;  %v9575_v56 = vld [vmem:[%s13301_s7 + $0x18] sm:$0xff]  }
 0x2fe   :  { %v11300_v55 = vadd.f32 %v8210_v52, %v2498_v18  ;;  %v2501_v33 = vpop.f32.mrf.mxu1  ;;  %8412 = vmatpush3.bf16.msra.mxu0 %v11038_v43  ;;  %v9573_v18 = vld [vmem:[%s13301_s7 + $0xa0] sm:$0xff]   ;;  %v9576_v52 = vld [vmem:[%s13301_s7 + $0xd8] sm:$0xff]  }
 0x2ff   :  { %v8212_v34 = vpop.f32.mrf.mxu0  ;;  %9251 = vmatpush3.bf16.msra.mxu1 %v11041_v3  ;;  %8413 = vmatprep.subr.bf16.mxu0 %v11044_v7  ;;  %v9577_v13 = vld [vmem:[%s13301_s7 + $0x98] sm:$0xff]   ;;  %v9578_v33 = vld [vmem:[%s13301_s7 + $0x50] sm:$0xff]  }
 0x300   :  { %v9127_v62 = vpop.f32.mrf.mxu1  ;;  %9252 = vmatprep.subr.bf16.mxu1 %v13381_v10  ;;  %v9580_v34 = vld [vmem:[%s13301_s7 + $0xd0] sm:$0xff]  }
 0x301   :  { %v9579_v62 = vld [vmem:[%s13301_s7 + $0x10] sm:$0xff]  }
 0x302   :  { %8414 = vmatpush3.bf16.msra.mxu0 %v11048_v26 }
 0x303   :  { %9253 = vmatpush3.bf16.msra.mxu1 %v11051_v1  ;;  %8415 = vmatprep.subr.bf16.mxu0 %v11054_v49 }
 0x304   :  { %9254 = vmatprep.subr.bf16.mxu1 %v13381_v10 }
 0x306   :  { %8416 = vmatpush3.bf16.msra.mxu0 %v11061_v37 }
 0x307   :  { %9255 = vmatpush3.bf16.msra.mxu1 %v11064_v60  ;;  %8417 = vmatprep.subr.bf16.mxu0 %v11067_v23 }
 0x308   :  { %9256 = vmatprep.subr.bf16.mxu1 %v13381_v10 }
 0x30a   :  { %8418 = vmatpush3.bf16.msra.mxu0 %v11114_v12 }
 0x30b   :  { %9257 = vmatpush3.bf16.msra.mxu1 %v11117_v15  ;;  %8419 = vmatprep.subr.bf16.mxu0 %v11120_v19 }
 0x30c   :  { %9258 = vmatprep.subr.bf16.mxu1 %v13381_v10 }
 0x30e   :  { %8420 = vmatpush3.bf16.msra.mxu0 %v11124_v35 }
 0x30f   :  { %9259 = vmatpush3.bf16.msra.mxu1 %v11127_v38  ;;  %8421 = vmatprep.subr.bf16.mxu0 %v11130_v39 }
 0x310   :  { %9260 = vmatprep.subr.bf16.mxu1 %v13381_v10 }
 0x312   :  { %8422 = vmatpush3.bf16.msra.mxu0 %v11135_v53 }
 0x313   :  { %9261 = vmatpush3.bf16.msra.mxu1 %v11139_v0  ;;  %8423 = vmatprep.subr.bf16.mxu0 %v11142_v47 }
 0x314   :  { %9262 = vmatprep.subr.bf16.mxu1 %v13381_v10 }
 0x316   :  { %8424 = vmatpush3.bf16.msra.mxu0 %v11147_v42 }
 0x317   :  { %9263 = vmatpush3.bf16.msra.mxu1 %v11194_v17  ;;  %8440 = vmatprep.subr.bf16.mxu0 %v11197_v2 }
 0x318   :  { %9268 = vmatprep.subr.bf16.mxu1 %v13381_v10 }
 0x319   :  { %v11333_v32 = vpop.f32.mrf.mxu0  ;;  %3017 = vmatmul.mubr.bf16.vlgmr.msra.gmra.mxu0 %v11244_v16 }
 0x31a   :  { %v11336_v9 = vpop.f32.mrf.mxu1  ;;  %9265 = vmatmul.mubr.bf16.vlgmr.msra.gmra.mxu1 %v1751_v20  ;;  %8441 = vmatpush3.bf16.msra.mxu0 %v11023_v22 }
 0x31b   :  { %3096 = vmatprep.mubr.bf16.mxu0 %v1751_v20  ;;  %v11339_v63 = vpop.f32.mrf.mxu0  ;;  %9269 = vmatpush3.bf16.msra.mxu1 %v11027_v44  ;;  %v11365_v44 = vld [vmem:[#allocation10] sm:$0xff] }
 0x31c   :  { %v9146_v57 = vpop.f32.mrf.mxu1  ;;  %8442 = vmatprep.subr.bf16.mxu0 %v11030_v31  ;;  %9270 = vmatprep.subr.bf16.mxu1 %v13381_v10  ;;  %v3155_v31 = vrot.slane %v11365_v44, %v13382_v5  ;;  %v9584_v20 = vld [vmem:[%s13301_s7 + $0xc8] sm:$0xff]  }
 0x31d   :  { %v8242_v2 = vpop.f32.mrf.mxu0  ;;  %9284 = vmatprep.mubr.msk.bf16.mxu1 %vm10244_vm2, %v13381_v10  ;;  %v8241_v57 = vadd.f32 %v11339_v63, %v11333_v32  ;;  %v9588_v63 = vld [vmem:[%s13301_s7 + $0xc0] sm:$0xff]  }
 0x31e   :  { %v2581_v16 = vpop.f32.mrf.mxu1  ;;  %8443 = vmatpush3.bf16.msra.mxu0 %v11038_v43  ;;  %v3163_v43 = vrot.slane %v11365_v44, %v10406_v27  ;;  %v9583_v2 = vld [vmem:[%s13301_s7 + $0x8] sm:$0xff]  }
 0x31f   :  { %v8243_v4 = vpop.f32.mrf.mxu0  ;;  %9271 = vmatpush3.bf16.msra.mxu1 %v11041_v3  ;;  %8444 = vmatprep.subr.bf16.mxu0 %v11044_v7  ;;  %v9558_v3 = vld [vmem:[%s13301_s7 + $0x78] sm:$0xff]   ;;  %v3151_v16 = vrot.slane %v11365_v44, %v10400_v24 }
 0x320   :  { %v9147_v22 = vpop.f32.mrf.mxu1  ;;  %9272 = vmatprep.subr.bf16.mxu1 %v13381_v10  ;;  %v9560_v7 = vld [vmem:[%s13301_s7 + $0xf8] sm:$0xff]   ;;  %v9585_v4 = vld [vmem:[%s13301_s7 + $0x88] sm:$0xff]  }
 0x321   :  { %v9586_v22 = vld [vmem:[%s13301_s7 + $0x40] sm:$0xff]  }
 0x322   :  { %8445 = vmatpush3.bf16.msra.mxu0 %v11048_v26  ;;  %v11383_v26 = vadd.f32 %v3155_v31, %v11036_v48  ;;  %v9562_v48 = vld [vmem:[%s13301_s7 + $0x70] sm:$0xff]   ;;  %v13387_v31 = vld [vmem:[#allocation20_spill] sm:$0xff] }
 0x323   :  { %9273 = vmatpush3.bf16.msra.mxu1 %v11051_v1  ;;  %8446 = vmatprep.subr.bf16.mxu0 %v11054_v49  ;;  %v11386_v1 = vadd.f32 %v3163_v43, %v11164_v58  ;;  %v9559_v49 = vld [vmem:[%s13301_s7 + $0x38] sm:$0xff]   ;;  %v9568_v58 = vld [vmem:[%s13301_s7 + $0xe8] sm:$0xff]   ;;  %v3159_v32 = vrot.slane %v11365_v44, %v13387_v31  ;;  %v3171_v43 = vrot.slane %v11365_v44, %v10410_v29 }
 0x324   :  { %9274 = vmatprep.subr.bf16.mxu1 %v13381_v10 }
 0x326   :  { %8447 = vmatpush3.bf16.msra.mxu0 %v11061_v37  ;;  %v9561_v37 = vld [vmem:[%s13301_s7 + $0xb8] sm:$0xff]  }
 0x327   :  { %9275 = vmatpush3.bf16.msra.mxu1 %v11064_v60  ;;  %8448 = vmatprep.subr.bf16.mxu0 %v11067_v23  ;;  %v3239_v23 = vpack.c.bf16 %v11383_v26, %v11383_v26 }
 0x328   :  { %9276 = vmatprep.subr.bf16.mxu1 %v13381_v10 }
 0x32a   :  { %8449 = vmatpush3.bf16.msra.mxu0 %v11114_v12  ;;  %v9564_v12 = vld [vmem:[%s13301_s7 + $0xf0] sm:$0xff]  }
 0x32b   :  { %9277 = vmatpush3.bf16.msra.mxu1 %v11117_v15  ;;  %8450 = vmatprep.subr.bf16.mxu0 %v11120_v19  ;;  %v13386_v19 = vmov 0  }
 0x32c   :  { %9278 = vmatprep.subr.bf16.mxu1 %v13381_v10 }
 0x32e   :  { %8451 = vmatpush3.bf16.msra.mxu0 %v11124_v35  ;;  %v3241_v35 = vpack.c.bf16 %v11386_v1, %v11386_v1 }
 0x32f   :  { %9279 = vmatpush3.bf16.msra.mxu1 %v11127_v38  ;;  %8452 = vmatprep.subr.bf16.mxu0 %v11130_v39  ;;  %v9563_v38 = vld [vmem:[%s13301_s7 + $0x30] sm:$0xff]  }
 0x330   :  { %9280 = vmatprep.subr.bf16.mxu1 %v13381_v10 }
 0x332   :  { %8453 = vmatpush3.bf16.msra.mxu0 %v11135_v53  ;;  %v9565_v53 = vld [vmem:[%s13301_s7 + $0xb0] sm:$0xff]  }
 0x333   :  { %9281 = vmatpush3.bf16.msra.mxu1 %v11139_v0  ;;  %8454 = vmatprep.subr.bf16.mxu0 %v11142_v47  ;;  %v9566_v0 = vld [vmem:[%s13301_s7 + $0x68] sm:$0xff]  }
 0x334   :  { %9282 = vmatprep.subr.bf16.mxu1 %v13381_v10 }
 0x336   :  { %8455 = vmatpush3.bf16.msra.mxu0 %v11147_v42 }
 0x337   :  { %9283 = vmatpush3.bf16.msra.mxu1 %v11194_v17  ;;  %8471 = vmatprep.subr.bf16.mxu0 %v9558_v3  ;;  %v2579_v3 = vadd.f32 %v8241_v57, %v11336_v9  ;;  %v9590_v9 = vld [vmem:[%s13301_s7 + $0x178] sm:$0xff]   ;;  %v9610_v57 = vld [vmem:[%s13301_s7 + $0x150] sm:$0xff]  }
 0x338   :  { %8493 = vmatprep.subr.bf16.mxu1 %v9560_v7  ;;  %v13388_v7 = vld [vmem:[#allocation22_spill] sm:$0xff] }
 0x339   :  { %v8270_v60 = vpop.f32.mrf.mxu0  ;;  %3097 = vmatmul.mubr.bf16.vlgmr.msra.gmra.mxu0 %v11288_v36  ;;  %v9572_v36 = vld [vmem:[%s13301_s7 + $0xe0] sm:$0xff]  }
 0x33a   :  { %v2658_v15 = vpop.f32.mrf.mxu1  ;;  %9285 = vmatmul.mubr.bf16.vlgmr.msra.gmra.mxu1 %v13386_v19  ;;  %8472 = vmatpush3.bf16.msra.mxu0 %v9559_v49  ;;  %v3179_v49 = vrot.slane %v11365_v44, %v13388_v7  ;;  %v9617_v7 = vld [vmem:[%s13301_s7 + $0x188] sm:$0xff]  }
 0x33b   :  { %4245 = vmatprep.mubr.bf16.mxu0 %v3239_v23  ;;  %v8271_v39 = vpop.f32.mrf.mxu0  ;;  %8494 = vmatpush3.bf16.msra.mxu1 %v9561_v37  ;;  %v9587_v37 = vld [vmem:[%s13301_s7] sm:$0xff]   ;;  %v11506_v23 = vadd.f32 %v3159_v32, %v11100_v21  ;;  %v9593_v21 = vld [vmem:[%s13301_s7 + $0x1b8] sm:$0xff]   ;;  %v9616_v32 = vld [vmem:[%s13301_s7 + $0x1c8] sm:$0xff]  }
 0x33c   :  { %v8272_v47 = vadd.f32 %v8271_v39, %v8270_v60  ;;  %4285 = vmatprep.mubr.bf16.mxu1 %v3241_v35  ;;  %v9166_v42 = vpop.f32.mrf.mxu1  ;;  %8473 = vmatprep.subr.bf16.mxu0 %v9562_v48  ;;  %v11497_v48 = vadd.f32 %v3151_v16, %v10984_v6  ;;  %v9589_v60 = vld [vmem:[%s13301_s7 + $0x80] sm:$0xff]   ;;  %v11512_v6 = vadd.f32 %v3171_v43, %v11256_v25  ;;  %v9591_v35 = vld [vmem:[%s13301_s7 + $0x138] sm:$0xff]   ;;  %v9594_v39 = vld [vmem:[%s13301_s7 + $0x170] sm:$0xff]  }
 0x33d   :  { %v8273_v17 = vpop.f32.mrf.mxu0  ;;  %8495 = vmatprep.subr.bf16.mxu1 %v9564_v12  ;;  %v9592_v12 = vld [vmem:[%s13301_s7 + $0x1f8] sm:$0xff]   ;;  %v3240_v25 = vpack.c.bf16 %v11506_v23, %v11506_v23  ;;  %v9611_v16 = vld [vmem:[%s13301_s7 + $0x110] sm:$0xff]   ;;  %v9615_v43 = vld [vmem:[%s13301_s7 + $0x108] sm:$0xff]  }
 0x33e   :  { %v11420_v61 = vadd.f32 %v8272_v47, %v2658_v15  ;;  %v2661_v54 = vpop.f32.mrf.mxu1  ;;  %8474 = vmatpush3.bf16.msra.mxu0 %v9563_v38  ;;  %v11514_v15 = vadd.f32 %v3179_v49, %v2579_v3  ;;  %v3238_v38 = vpack.c.bf16 %v11497_v48, %v11497_v48  ;;  %v9596_v47 = vld [vmem:[%s13301_s7 + $0x1f0] sm:$0xff]   ;;  %v3167_v3 = vrot.slane %v11365_v44, %v10408_v28  ;;  %v9618_v49 = vld [vmem:[%s13301_s7 + $0x140] sm:$0xff]  }
 0x33f   :  { %v8274_v41 = vpop.f32.mrf.mxu0  ;;  %8496 = vmatpush3.bf16.msra.mxu1 %v9565_v53  ;;  %8475 = vmatprep.subr.bf16.mxu0 %v9566_v0  ;;  %v3243_v0 = vpack.c.bf16 %v11512_v6, %v11512_v6  ;;  %v9595_v17 = vld [vmem:[%s13301_s7 + $0x130] sm:$0xff]  }
 0x340   :  { %v9167_v46 = vpop.f32.mrf.mxu1  ;;  %8497 = vmatprep.subr.bf16.mxu1 %v9568_v58  ;;  %v3245_v58 = vpack.c.bf16 %v11514_v15, %v11514_v15  ;;  %v9598_v41 = vld [vmem:[%s13301_s7 + $0x168] sm:$0xff]  }
 0x342   :  { %8476 = vmatpush3.bf16.msra.mxu0 %v9567_v45  ;;  %v9597_v45 = vld [vmem:[%s13301_s7 + $0x1b0] sm:$0xff]  }
 0x343   :  { %8498 = vmatpush3.bf16.msra.mxu1 %v9569_v50  ;;  %8477 = vmatprep.subr.bf16.mxu0 %v9570_v51  ;;  %v9600_v51 = vld [vmem:[%s13301_s7 + $0x1e8] sm:$0xff]  }
 0x344   :  { %8499 = vmatprep.subr.bf16.mxu1 %v9572_v36 }
 0x346   :  { %8478 = vmatpush3.bf16.msra.mxu0 %v9571_v11  ;;  %v9599_v11 = vld [vmem:[%s13301_s7 + $0x128] sm:$0xff]  }
 0x347   :  { %8500 = vmatpush3.bf16.msra.mxu1 %v9573_v18  ;;  %8479 = vmatprep.subr.bf16.mxu0 %v9574_v40  ;;  %v9601_v40 = vld [vmem:[%s13301_s7 + $0x1a8] sm:$0xff]  }
 0x348   :  { %8501 = vmatprep.subr.bf16.mxu1 %v9576_v52  ;;  %v9602_v52 = vld [vmem:[%s13301_s7 + $0x160] sm:$0xff]  }
 0x34a   :  { %8480 = vmatpush3.bf16.msra.mxu0 %v9575_v56 }
 0x34b   :  { %8502 = vmatpush3.bf16.msra.mxu1 %v9577_v13  ;;  %8481 = vmatprep.subr.bf16.mxu0 %v9578_v33  ;;  %v9604_v13 = vld [vmem:[%s13301_s7 + $0x1e0] sm:$0xff]  }
 0x34c   :  { %8503 = vmatprep.subr.bf16.mxu1 %v9580_v34  ;;  %v9603_v33 = vld [vmem:[%s13301_s7 + $0x120] sm:$0xff]  }
 0x34d   :  { %v9605_v34 = vld [vmem:[%s13301_s7 + $0x1a0] sm:$0xff]  }
 0x34e   :  { %8482 = vmatpush3.bf16.msra.mxu0 %v9579_v62  ;;  %v9606_v62 = vld [vmem:[%s13301_s7 + $0x158] sm:$0xff]  }
 0x34f   :  { %8504 = vmatpush3.bf16.msra.mxu1 %v9581_v14  ;;  %8483 = vmatprep.subr.bf16.mxu0 %v9582_v8  ;;  %v9608_v14 = vld [vmem:[%s13301_s7 + $0x1d8] sm:$0xff]  }
 0x350   :  { %8505 = vmatprep.subr.bf16.mxu1 %v9584_v20  ;;  %v9607_v8 = vld [vmem:[%s13301_s7 + $0x118] sm:$0xff]  }
 0x351   :  { %v9609_v20 = vld [vmem:[%s13301_s7 + $0x198] sm:$0xff]  }
 0x352   :  { %8484 = vmatpush3.bf16.msra.mxu0 %v9583_v2  ;;  %v9612_v2 = vld [vmem:[%s13301_s7 + $0x1d0] sm:$0xff]  }
 0x353   :  { %8506 = vmatpush3.bf16.msra.mxu1 %v9585_v4  ;;  %8485 = vmatprep.subr.bf16.mxu0 %v9586_v22  ;;  %v9613_v4 = vld [vmem:[%s13301_s7 + $0x190] sm:$0xff]   ;;  %v9614_v22 = vld [vmem:[%s13301_s7 + $0x148] sm:$0xff]  }
 0x354   :  { %8507 = vmatprep.subr.bf16.mxu1 %v9588_v63 }
 0x356   :  { %8486 = vmatpush3.bf16.msra.mxu0 %v9587_v37  ;;  %v3175_v37 = vrot.slane %v11365_v44, %v10412_v30  ;;  %v9621_v44 = vld [vmem:[%s13301_s7 + $0x180] sm:$0xff]  }
 0x357   :  { %8508 = vmatpush3.bf16.msra.mxu1 %v9589_v60  ;;  %8515 = vmatprep.subr.bf16.mxu0 %v9590_v9  ;;  %v11611_v60 = vld [vmem:[#allocation10 + $0x8] sm:$0xff]  ;;  %v9620_v9 = vld [vmem:[%s13301_s7 + $0x1c0] sm:$0xff]  }
 0x358   :  { %8537 = vmatprep.subr.bf16.mxu1 %v9592_v12 }
 0x359   :  { %v8301_v53 = vpop.f32.mrf.mxu0  ;;  %4246 = vmatmul.mubr.bf16.vlgmr.msra.gmra.mxu0 %v3238_v38  ;;  %v9619_v38 = vld [vmem:[%s13301_s7 + $0x100] sm:$0xff]  }
 0x35a   :  { %v11534_v42 = vpop.f32.mrf.mxu1  ;;  %4286 = vmatmul.mubr.bf16.vlgmr.msra.gmra.mxu1 %v3240_v25  ;;  %8516 = vmatpush3.bf16.msra.mxu0 %v9591_v35  ;;  %v3187_v35 = vrot.slane %v11611_v60, %v13382_v5  ;;  %v9622_v25 = vld [vmem:[%s13301_s7 + $0x278] sm:$0xff]  }
 0x35b   :  { %4325 = vmatprep.mubr.bf16.mxu0 %v3243_v0  ;;  %v8302_v54 = vpop.f32.mrf.mxu0  ;;  %8538 = vmatpush3.bf16.msra.mxu1 %v9593_v21  ;;  %v11623_v21 = vadd.f32 %v3167_v3, %v11212_v59  ;;  %v9623_v0 = vld [vmem:[%s13301_s7 + $0x238] sm:$0xff]   ;;  %v9649_v3 = vld [vmem:[%s13301_s7 + $0x290] sm:$0xff]  }
 0x35c   :  { %4365 = vmatprep.mubr.bf16.mxu1 %v3245_v58  ;;  %v9186_v50 = vpop.f32.mrf.mxu1  ;;  %8517 = vmatprep.subr.bf16.mxu0 %v9594_v39  ;;  %v8303_v63 = vadd.f32 %v8302_v54, %v8301_v53  ;;  %v11632_v39 = vadd.f32 %v3175_v37, %v11300_v55  ;;  %v9629_v53 = vld [vmem:[%s13301_s7 + $0x2f8] sm:$0xff]   ;;  %v9624_v55 = vld [vmem:[%s13301_s7 + $0x270] sm:$0xff]   ;;  %v3183_v37 = vrot.slane %v11611_v60, %v10400_v24 }
 0x35d   :  { %v8304_v46 = vpop.f32.mrf.mxu0  ;;  %8539 = vmatprep.subr.bf16.mxu1 %v9596_v47  ;;  %v3242_v47 = vpack.c.bf16 %v11623_v21, %v11623_v21  ;;  %v9631_v58 = vld [vmem:[%s13301_s7 + $0x2b8] sm:$0xff]   ;;  %v9625_v50 = vld [vmem:[%s13301_s7 + $0x230] sm:$0xff]  }
 0x35e   :  { %v2741_v36 = vpop.f32.mrf.mxu1  ;;  %8518 = vmatpush3.bf16.msra.mxu0 %v9595_v17  ;;  %v2739_v12 = vadd.f32 %v8303_v63, %v11534_v42  ;;  %v3244_v42 = vpack.c.bf16 %v11632_v39, %v11632_v39  ;;  %v9626_v46 = vld [vmem:[%s13301_s7 + $0x268] sm:$0xff]   ;;  %v9638_v63 = vld [vmem:[%s13301_s7 + $0x210] sm:$0xff]  }
 0x35f   :  { %v8305_v18 = vpop.f32.mrf.mxu0  ;;  %8540 = vmatpush3.bf16.msra.mxu1 %v9597_v45  ;;  %8519 = vmatprep.subr.bf16.mxu0 %v9598_v41  ;;  %v9633_v45 = vld [vmem:[%s13301_s7 + $0x2f0] sm:$0xff]  }
 0x360   :  { %v9187_v56 = vpop.f32.mrf.mxu1  ;;  %8541 = vmatprep.subr.bf16.mxu1 %v9600_v51  ;;  %v11637_v59 = vadd.f32 %v3187_v35, %v2739_v12  ;;  %v11734_v12 = vld [vmem:[%s13301_s7 + $0x288] sm:$0xff]   ;;  %v11739_v35 = vld [vmem:[%s13301_s7 + $0x2c0] sm:$0xff]  }
 0x361   :  { %v9627_v56 = vld [vmem:[%s13301_s7 + $0x228] sm:$0xff]  }
 0x362   :  { %8520 = vmatpush3.bf16.msra.mxu0 %v9599_v11  ;;  %v3247_v54 = vpack.c.bf16 %v11637_v59, %v11637_v59  ;;  %v9635_v11 = vld [vmem:[%s13301_s7 + $0x2b0] sm:$0xff]  }
 0x363   :  { %8542 = vmatpush3.bf16.msra.mxu1 %v9601_v40  ;;  %8521 = vmatprep.subr.bf16.mxu0 %v9602_v52  ;;  %v9637_v40 = vld [vmem:[%s13301_s7 + $0x2e8] sm:$0xff]  }
 0x364   :  { %8543 = vmatprep.subr.bf16.mxu1 %v9604_v13 }
 0x366   :  { %8522 = vmatpush3.bf16.msra.mxu0 %v9603_v33  ;;  %v9628_v33 = vld [vmem:[%s13301_s7 + $0x260] sm:$0xff]  }
 0x367   :  { %8544 = vmatpush3.bf16.msra.mxu1 %v9605_v34  ;;  %8523 = vmatprep.subr.bf16.mxu0 %v9606_v62  ;;  %v9639_v62 = vld [vmem:[%s13301_s7 + $0x2a8] sm:$0xff]  }
 0x368   :  { %8545 = vmatprep.subr.bf16.mxu1 %v9608_v14  ;;  %v9641_v14 = vld [vmem:[%s13301_s7 + $0x2e0] sm:$0xff]  }
 0x36a   :  { %8524 = vmatpush3.bf16.msra.mxu0 %v9607_v8  ;;  %v9630_v8 = vld [vmem:[%s13301_s7 + $0x220] sm:$0xff]  }
 0x36b   :  { %8546 = vmatpush3.bf16.msra.mxu1 %v9609_v20  ;;  %8525 = vmatprep.subr.bf16.mxu0 %v9610_v57  ;;  %v9632_v20 = vld [vmem:[%s13301_s7 + $0x258] sm:$0xff]   ;;  %v9643_v57 = vld [vmem:[%s13301_s7 + $0x2a0] sm:$0xff]  }
 0x36c   :  { %8547 = vmatprep.subr.bf16.mxu1 %v9612_v2  ;;  %v9645_v2 = vld [vmem:[%s13301_s7 + $0x2d8] sm:$0xff]  }
 0x36e   :  { %8526 = vmatpush3.bf16.msra.mxu0 %v9611_v16  ;;  %v9634_v16 = vld [vmem:[%s13301_s7 + $0x218] sm:$0xff]  }
 0x36f   :  { %8548 = vmatpush3.bf16.msra.mxu1 %v9613_v4  ;;  %8527 = vmatprep.subr.bf16.mxu0 %v9614_v22  ;;  %v9636_v4 = vld [vmem:[%s13301_s7 + $0x250] sm:$0xff]   ;;  %v9647_v22 = vld [vmem:[%s13301_s7 + $0x298] sm:$0xff]  }
 0x370   :  { %8549 = vmatprep.subr.bf16.mxu1 %v9616_v32  ;;  %v9648_v32 = vld [vmem:[%s13301_s7 + $0x2d0] sm:$0xff]  }
 0x372   :  { %8528 = vmatpush3.bf16.msra.mxu0 %v9615_v43  ;;  %v9640_v43 = vld [vmem:[%s13301_s7 + $0x248] sm:$0xff]  }
 0x373   :  { %8550 = vmatpush3.bf16.msra.mxu1 %v9617_v7  ;;  %8529 = vmatprep.subr.bf16.mxu0 %v9618_v49  ;;  %v9650_v7 = vld [vmem:[%s13301_s7 + $0x2c8] sm:$0xff]  }
 0x374   :  { %8551 = vmatprep.subr.bf16.mxu1 %v9620_v9  ;;  %v9642_v49 = vld [vmem:[%s13301_s7 + $0x208] sm:$0xff]   ;;  %v9644_v9 = vld [vmem:[%s13301_s7 + $0x240] sm:$0xff]  }
 0x376   :  { %8530 = vmatpush3.bf16.msra.mxu0 %v9619_v38  ;;  %v11744_v38 = vld [vmem:[%s13301_s7 + $0x200] sm:$0xff]  }
 0x377   :  { %8552 = vmatpush3.bf16.msra.mxu1 %v9621_v44  ;;  %8559 = vmatprep.subr.bf16.mxu0 %v9622_v25  ;;  %v11747_v44 = vadd.f32 %v3183_v37, %v11420_v61  ;;  %v11752_v25 = vld [vmem:[%s13301_s7 + $0x378] sm:$0xff]   ;;  %v11908_v37 = vld [vmem:[%s13301_s7 + $0x390] sm:$0xff]  }
 0x378   :  { %8581 = vmatprep.subr.bf16.mxu1 %v9629_v53  ;;  %v11758_v53 = vld [vmem:[%s13301_s7 + $0x280] sm:$0xff]   ;;  %v9655_v61 = vld [vmem:[%s13301_s7 + $0x338] sm:$0xff]  }
 0x379   :  { %v11652_v17 = vpop.f32.mrf.mxu0  ;;  %4326 = vmatmul.mubr.bf16.vlgmr.msra.gmra.mxu0 %v3242_v47 }
 0x37a   :  { %v11659_v41 = vpop.f32.mrf.mxu1  ;;  %4366 = vmatmul.mubr.bf16.vlgmr.msra.gmra.mxu1 %v3244_v42  ;;  %8560 = vmatpush3.bf16.msra.mxu0 %v9623_v0  ;;  %v3246_v0 = vpack.c.bf16 %v11747_v44, %v11747_v44 }
 0x37b   :  { %4405 = vmatprep.mubr.bf16.mxu0 %v3247_v54  ;;  %v11664_v51 = vpop.f32.mrf.mxu0  ;;  %8561 = vmatprep.subr.bf16.mxu0 %v9624_v55  ;;  %v11773_v55 = vld [vmem:[%s13301_s7 + $0x370] sm:$0xff]  }
 0x37c   :  { %v9206_v36 = vpop.f32.mrf.mxu1  ;;  %8582 = vmatpush3.bf16.msra.mxu1 %v9631_v58  ;;  %v8334_v47 = vadd.f32 %v11664_v51, %v11652_v17  ;;  %v11780_v54 = vld [vmem:[%s13301_s7 + $0x330] sm:$0xff]   ;;  %v11789_v51 = vld [vmem:[%s13301_s7 + $0x368] sm:$0xff]  }
 0x37d   :  { %v8335_v18 = vpop.f32.mrf.mxu0  ;;  %8583 = vmatprep.subr.bf16.mxu1 %v9633_v45  ;;  %v3191_v45 = vrot.slane %v11611_v60, %v13387_v31  ;;  %v3195_v36 = vrot.slane %v11611_v60, %v10406_v27  ;;  %v11797_v31 = vld [vmem:[%s13301_s7 + $0x328] sm:$0xff]   ;;  %v11805_v27 = vld [vmem:[%s13301_s7 + $0x360] sm:$0xff]  }
 0x37e   :  { %v2821_v52 = vpop.f32.mrf.mxu1  ;;  %8562 = vmatpush3.bf16.msra.mxu0 %v9625_v50  ;;  %v2819_v17 = vadd.f32 %v8334_v47, %v11659_v41 }
 0x37f   :  { %v8336_v13 = vpop.f32.mrf.mxu0  ;;  %8563 = vmatprep.subr.bf16.mxu0 %v9626_v46 }
 0x380   :  { %v9207_v34 = vpop.f32.mrf.mxu1  ;;  %8584 = vmatpush3.bf16.msra.mxu1 %v9635_v11  ;;  %v11799_v41 = vadd.f32 %v3191_v45, %v2819_v17  ;;  %v11922_v45 = vld [vmem:[%s13301_s7 + $0x380] sm:$0xff]  }
 0x381   :  { %8585 = vmatprep.subr.bf16.mxu1 %v9637_v40  ;;  %13392 = vst [vmem:[#allocation20_spill] sm:$0xff] %v11922_v45 }
 0x382   :  { %8564 = vmatpush3.bf16.msra.mxu0 %v9627_v56 }
 0x383   :  { %8565 = vmatprep.subr.bf16.mxu0 %v9628_v33 }
 0x384   :  { %8586 = vmatpush3.bf16.msra.mxu1 %v9639_v62  ;;  %v11815_v62 = vld [vmem:[%s13301_s7 + $0x320] sm:$0xff]  }
 0x385   :  { %8587 = vmatprep.subr.bf16.mxu1 %v9641_v14  ;;  %v11820_v14 = vld [vmem:[%s13301_s7 + $0x3b8] sm:$0xff]  }
 0x386   :  { %8566 = vmatpush3.bf16.msra.mxu0 %v9630_v8  ;;  %v3248_v8 = vpack.c.bf16 %v11799_v41, %v11799_v41 }
 0x387   :  { %8567 = vmatprep.subr.bf16.mxu0 %v9632_v20  ;;  %v11828_v20 = vld [vmem:[%s13301_s7 + $0x358] sm:$0xff]  }
 0x388   :  { %8588 = vmatpush3.bf16.msra.mxu1 %v9643_v57  ;;  %v11834_v57 = vld [vmem:[%s13301_s7 + $0x318] sm:$0xff]  }
 0x389   :  { %8589 = vmatprep.subr.bf16.mxu1 %v9645_v2  ;;  %v11840_v2 = vld [vmem:[%s13301_s7 + $0x3b0] sm:$0xff]  }
 0x38a   :  { %8568 = vmatpush3.bf16.msra.mxu0 %v9634_v16  ;;  %v11846_v16 = vld [vmem:[%s13301_s7 + $0x350] sm:$0xff]  }
 0x38b   :  { %8569 = vmatprep.subr.bf16.mxu0 %v9636_v4  ;;  %v11855_v4 = vld [vmem:[%s13301_s7 + $0x310] sm:$0xff]  }
 0x38c   :  { %8590 = vmatpush3.bf16.msra.mxu1 %v9647_v22  ;;  %v11861_v22 = vld [vmem:[%s13301_s7 + $0x3a8] sm:$0xff]  }
 0x38d   :  { %8591 = vmatprep.subr.bf16.mxu1 %v9648_v32  ;;  %v11867_v32 = vld [vmem:[%s13301_s7 + $0x348] sm:$0xff]  }
 0x38e   :  { %8570 = vmatpush3.bf16.msra.mxu0 %v9638_v63  ;;  %v11874_v63 = vld [vmem:[%s13301_s7 + $0x308] sm:$0xff]  }
 0x38f   :  { %8571 = vmatprep.subr.bf16.mxu0 %v9640_v43  ;;  %v11880_v43 = vld [vmem:[%s13301_s7 + $0x3a0] sm:$0xff]  }
 0x390   :  { %8592 = vmatpush3.bf16.msra.mxu1 %v9649_v3  ;;  %v11886_v3 = vld [vmem:[%s13301_s7 + $0x340] sm:$0xff]  }
 0x391   :  { %8593 = vmatprep.subr.bf16.mxu1 %v9650_v7  ;;  %13389 = vst [vmem:[#allocation23_spill] sm:$0xff] %v11886_v3  ;;  %v11893_v7 = vld [vmem:[%s13301_s7 + $0x300] sm:$0xff]  }
 0x392   :  { %8572 = vmatpush3.bf16.msra.mxu0 %v9642_v49  ;;  %13390 = vst [vmem:[#allocation24_spill] sm:$0xff] %v11893_v7  ;;  %v11899_v49 = vld [vmem:[%s13301_s7 + $0x398] sm:$0xff]  }
 0x393   :  { %8573 = vmatprep.subr.bf16.mxu0 %v9644_v9 }
 0x394   :  { %8594 = vmatpush3.bf16.msra.mxu1 %v11734_v12 }
 0x395   :  { %8595 = vmatprep.subr.bf16.mxu1 %v11739_v35 }
 0x396   :  { %8574 = vmatpush3.bf16.msra.mxu0 %v11744_v38 }
 0x397   :  { %8603 = vmatprep.subr.bf16.mxu0 %v11752_v25 }
 0x398   :  { %8596 = vmatpush3.bf16.msra.mxu1 %v11758_v53 }
 0x399   :  { %v8363_v42 = vpop.f32.mrf.mxu0  ;;  %4406 = vmatmul.mubr.bf16.vlgmr.msra.gmra.mxu0 %v3246_v0  ;;  %9288 = vmatprep.subr.bf16.mxu1 %v13381_v10  ;;  %v11915_v0 = vld [vmem:[%s13301_s7 + $0x388] sm:$0xff]  }
 0x39a   :  { %v2898_v58 = vpop.f32.mrf.mxu1  ;;  %8604 = vmatpush3.bf16.msra.mxu0 %v9655_v61  ;;  %13391 = vst [vmem:[#allocation25_spill] sm:$0xff] %v11915_v0 }
 0x39b   :  { %v8364_v50 = vpop.f32.mrf.mxu0  ;;  %8605 = vmatprep.subr.bf16.mxu0 %v11773_v55 }
 0x39c   :  { %v8365_v46 = vadd.f32 %v8364_v50, %v8363_v42  ;;  %v9226_v11 = vpop.f32.mrf.mxu1 }
 0x39d   :  { %v8366_v18 = vpop.f32.mrf.mxu0 }
 0x39e   :  { %v2899_v40 = vadd.f32 %v8365_v46, %v2898_v58  ;;  %v2901_v52 = vpop.f32.mrf.mxu1  ;;  %8606 = vmatpush3.bf16.msra.mxu0 %v11780_v54 }
 0x39f   :  { %v8367_v56 = vpop.f32.mrf.mxu0  ;;  %8607 = vmatprep.subr.bf16.mxu0 %v11789_v51  ;;  %v3199_v52 = vrot.slane %v11611_v60, %v10408_v28 }
 0x3a0   :  { %v11807_v13 = vadd.f32 %v3195_v36, %v2899_v40  ;;  %v9227_v33 = vpop.f32.mrf.mxu1 }
 0x3a2   :  { %v3249_v34 = vpack.c.bf16 %v11807_v13, %v11807_v13  ;;  %8608 = vmatpush3.bf16.msra.mxu0 %v11797_v31 }
 0x3a3   :  { %8609 = vmatprep.subr.bf16.mxu0 %v11805_v27 }
 0x3a4   :  { %4445 = vmatprep.mubr.bf16.mxu1 %v3249_v34  ;;  %v3203_v34 = vrot.slane %v11611_v60, %v10410_v29 }
 0x3a5   :  { %4446 = vmatmul.mubr.bf16.vlgmr.msra.gmra.mxu1 %v3248_v8 }
 0x3a6   :  { %8610 = vmatpush3.bf16.msra.mxu0 %v11815_v62  ;;  %9289 = vmatpush3.bf16.msra.mxu1 %v11820_v14 }
 0x3a7   :  { %8611 = vmatprep.subr.bf16.mxu0 %v11828_v20  ;;  %9290 = vmatprep.subr.bf16.mxu1 %v13381_v10 }
 0x3a8   :  { %9304 = vmatprep.mubr.msk.bf16.mxu1 %vm10244_vm2, %v13381_v10 }
 0x3aa   :  { %8612 = vmatpush3.bf16.msra.mxu0 %v11834_v57  ;;  %9291 = vmatpush3.bf16.msra.mxu1 %v11840_v2 }
 0x3ab   :  { %8613 = vmatprep.subr.bf16.mxu0 %v11846_v16  ;;  %9292 = vmatprep.subr.bf16.mxu1 %v13381_v10 }
 0x3ae   :  { %8614 = vmatpush3.bf16.msra.mxu0 %v11855_v4  ;;  %9293 = vmatpush3.bf16.msra.mxu1 %v11861_v22 }
 0x3af   :  { %8615 = vmatprep.subr.bf16.mxu0 %v11867_v32  ;;  %9294 = vmatprep.subr.bf16.mxu1 %v13381_v10 }
 0x3b2   :  { %8616 = vmatpush3.bf16.msra.mxu0 %v11874_v63  ;;  %9295 = vmatpush3.bf16.msra.mxu1 %v11880_v43 }
 0x3b3   :  { %8617 = vmatprep.subr.bf16.mxu0 %v11886_v3  ;;  %9296 = vmatprep.subr.bf16.mxu1 %v13381_v10 }
 0x3b6   :  { %8618 = vmatpush3.bf16.msra.mxu0 %v11893_v7  ;;  %9297 = vmatpush3.bf16.msra.mxu1 %v11899_v49 }
 0x3b7   :  { %9298 = vmatprep.subr.bf16.mxu1 %v13381_v10 }
 0x3b9   :  { %v8394_v9 = vpop.f32.mrf.mxu0 }
 0x3ba   :  { %v2978_v61 = vpop.f32.mrf.mxu1  ;;  %9299 = vmatpush3.bf16.msra.mxu1 %v11908_v37 }
 0x3bb   :  { %v8395_v47 = vpop.f32.mrf.mxu0  ;;  %9300 = vmatprep.subr.bf16.mxu1 %v13381_v10 }
 0x3bc   :  { %v9246_v42 = vpop.f32.mrf.mxu1  ;;  %v8396_v36 = vadd.f32 %v8395_v47, %v8394_v9 }
 0x3bd   :  { %v8397_v58 = vpop.f32.mrf.mxu0 }
 0x3be   :  { %v2981_v17 = vpop.f32.mrf.mxu1  ;;  %9301 = vmatpush3.bf16.msra.mxu1 %v11915_v0  ;;  %v2979_v40 = vadd.f32 %v8396_v36, %v2978_v61 }
 0x3bf   :  { %v8398_v50 = vpop.f32.mrf.mxu0  ;;  %9302 = vmatprep.subr.bf16.mxu1 %v13381_v10 }
 0x3c0   :  { %v9247_v46 = vpop.f32.mrf.mxu1  ;;  %v11930_v50 = vadd.f32 %v3199_v52, %v2979_v40 }
 0x3c2   :  { %9303 = vmatpush3.bf16.msra.mxu1 %v11922_v45  ;;  %v3250_v28 = vpack.c.bf16 %v11930_v50, %v11930_v50 }
 0x3d9   :  { %v8425_v11 = vpop.f32.mrf.mxu0 }
 0x3da   :  { %v3058_v18 = vpop.f32.mrf.mxu1 }
 0x3db   :  { %v8426_v56 = vpop.f32.mrf.mxu0 }
 0x3dc   :  { %v8427_v33 = vadd.f32 %v8426_v56, %v8425_v11  ;;  %v9266_v8 = vpop.f32.mrf.mxu1 }
 0x3dd   :  { %v8428_v42 = vpop.f32.mrf.mxu0 }
 0x3de   :  { %v3059_v58 = vadd.f32 %v8427_v33, %v3058_v18  ;;  %v3061_v17 = vpop.f32.mrf.mxu1  ;;  %v3207_v18 = vrot.slane %v11611_v60, %v10412_v30 }
 0x3df   :  { %v8429_v46 = vpop.f32.mrf.mxu0 }
 0x3e0   :  { %v11932_v5 = vadd.f32 %v3203_v34, %v3059_v58  ;;  %v9267_v9 = vpop.f32.mrf.mxu1 }
 0x3e2   :  { %v3251_v61 = vpack.c.bf16 %v11932_v5, %v11932_v5 }
 0x3e4   :  { %4485 = vmatprep.mubr.bf16.mxu0 %v3251_v61 }
 0x3e5   :  { %4486 = vmatmul.mubr.bf16.vlgmr.msra.gmra.mxu0 %v3250_v28 }
 0x3e6   :  { %4947 = vmatprep.mubr.bf16.mxu0 %v13386_v19 }
 0x3f9   :  { %v8456_v29 = vpop.f32.mrf.mxu0 }
 0x3fa   :  { %v3138_v47 = vpop.f32.mrf.mxu1 }
 0x3fb   :  { %v8457_v36 = vpop.f32.mrf.mxu0 }
 0x3fc   :  { %v8458_v11 = vadd.f32 %v8457_v36, %v8456_v29  ;;  %v9286_v40 = vpop.f32.mrf.mxu1 }
 0x3fd   :  { %v8459_v52 = vpop.f32.mrf.mxu0 }
 0x3fe   :  { %v3139_v56 = vadd.f32 %v8458_v11, %v3138_v47  ;;  %v3141_v33 = vpop.f32.mrf.mxu1 }
 0x3ff   :  { %v8460_v34 = vpop.f32.mrf.mxu0 }
 0x400   :  { %v11941_v8 = vadd.f32 %v3207_v18, %v3139_v56  ;;  %v9287_v42 = vpop.f32.mrf.mxu1 }
 0x402   :  { %v3252_v58 = vpack.c.bf16 %v11941_v8, %v11941_v8 }
 0x404   :  { %9305 = vmatmul.mubr.bf16.vlgmr.msra.gmra.mxu1 %v3252_v58 }
 0x405   :  { %4988 = vmatprep.mubr.bf16.mxu1 %v13386_v19 }
 0x419   :  { %v8487_v17 = vpop.f32.mrf.mxu0 }
 0x41a   :  { %v8509_v46 = vpop.f32.mrf.mxu1 }
 0x41b   :  { %v8488_v9 = vpop.f32.mrf.mxu0 }
 0x41c   :  { %v8489_v61 = vadd.f32 %v8488_v9, %v8487_v17  ;;  %v8510_v28 = vpop.f32.mrf.mxu1  ;;  %v11949_v17 = vld [vmem:[%s13302_s8 + $0x16c] ss:$60 sps:$4 sm:$0xff]  }
 0x41d   :  { %v8511_v30 = vadd.f32 %v8510_v28, %v8509_v46  ;;  %v8490_v60 = vpop.f32.mrf.mxu0  ;;  %v11954_v46 = vld [vmem:[%s13302_s8 + $0x174] ss:$60 sps:$4 sm:$0xff]   ;;  %v11959_v9 = vld [vmem:[%s13302_s8 + $0x168] ss:$60 sps:$4 sm:$0xff]   ;;  %4923 = vmatprep.subr.bf16.mxu0 %v11949_v17 }
 0x41e   :  { %v8512_v29 = vpop.f32.mrf.mxu1  ;;  %13393 = vst [vmem:[#allocation22_spill] sm:$0xff] %v11954_v46  ;;  %13394 = vst [vmem:[#allocation26_spill] sm:$0xff] %v11959_v9  ;;  %4964 = vmatprep.subr.bf16.mxu1 %v11954_v46  ;;  %4924 = vmatpush1.bf16.msra.mxu0 %v11959_v9  ;;  %v11988_v28 = vld [vmem:[%s13302_s8 + $0xf8] ss:$60 sps:$4 sm:$0xff]   ;;  %v12002_v60 = vld [vmem:[%s13302_s8 + $0x84] ss:$60 sps:$4 sm:$0xff]  }
 0x41f   :  { %v4288_v47 = vadd.f32 %v8511_v30, %v8489_v61  ;;  %v8491_v36 = vpop.f32.mrf.mxu0  ;;  %v11983_v61 = vld [vmem:[%s13302_s8 + $0xf0] ss:$60 sps:$4 sm:$0xff]   ;;  %13399 = vst [vmem:[#allocation31_spill] sm:$0xff] %v11988_v28  ;;  %v11997_v30 = vld [vmem:[%s13302_s8 + $0x7c] ss:$60 sps:$4 sm:$0xff]   ;;  %13401 = vst [vmem:[#allocation33_spill] sm:$0xff] %v12002_v60 }
 0x420   :  { %v8513_v11 = vpop.f32.mrf.mxu1  ;;  %13398 = vst [vmem:[#allocation30_spill] sm:$0xff] %v11983_v61  ;;  %13400 = vst [vmem:[#allocation32_spill] sm:$0xff] %v11997_v30  ;;  %v12007_v29 = vld [vmem:[%s13302_s8 + $0x78] ss:$60 sps:$4 sm:$0xff]   ;;  %v12021_v36 = vld [vmem:[%s13302_s8 + $0x4] ss:$60 sps:$4 sm:$0xff]  }
 0x421   :  { %13402 = vst [vmem:[#allocation34_spill] sm:$0xff] %v12007_v29  ;;  %13404 = vst [vmem:[#allocation36_spill] sm:$0xff] %v12021_v36  ;;  %v12026_v11 = vld [vmem:[%s13302_s8 + $0xc] ss:$60 sps:$4 sm:$0xff]  }
 0x422   :  { %13405 = vst [vmem:[#allocation37_spill] sm:$0xff] %v12026_v11 }
 0x439   :  { %v8531_v18 = vpop.f32.mrf.mxu0 }
 0x43a   :  { %v8553_v40 = vpop.f32.mrf.mxu1 }
 0x43b   :  { %v8532_v52 = vpop.f32.mrf.mxu0 }
 0x43c   :  { %v8533_v56 = vadd.f32 %v8532_v52, %v8531_v18  ;;  %v8554_v33 = vpop.f32.mrf.mxu1  ;;  %v12031_v18 = vld [vmem:[%s13302_s8] ss:$60 sps:$4 sm:$0xff]  }
 0x43d   :  { %v8555_v34 = vadd.f32 %v8554_v33, %v8553_v40  ;;  %v8534_v42 = vpop.f32.mrf.mxu0  ;;  %13406 = vst [vmem:[#allocation38_spill] sm:$0xff] %v12031_v18  ;;  %v12036_v40 = vld [vmem:[%s13302_s8 + $0x8] ss:$60 sps:$4 sm:$0xff]   ;;  %v12045_v52 = vld [vmem:[%s13302_s8 + $0x17c] ss:$60 sps:$4 sm:$0xff]  }
 0x43e   :  { %v4328_v58 = vadd.f32 %v8533_v56, %v4288_v47  ;;  %v8556_v45 = vpop.f32.mrf.mxu1  ;;  %v12012_v47 = vld [vmem:[%s13302_s8 + $0x80] ss:$60 sps:$4 sm:$0xff]   ;;  %13407 = vst [vmem:[#allocation39_spill] sm:$0xff] %v12036_v40  ;;  %13408 = vst [vmem:[#allocation40_spill] sm:$0xff] %v12045_v52 }
 0x43f   :  { %v8535_v7 = vpop.f32.mrf.mxu0  ;;  %v11978_v45 = vld [vmem:[%s13302_s8 + $0xfc] ss:$60 sps:$4 sm:$0xff]   ;;  %13403 = vst [vmem:[#allocation35_spill] sm:$0xff] %v12012_v47  ;;  %v12050_v56 = vld [vmem:[%s13302_s8 + $0x184] ss:$60 sps:$4 sm:$0xff]  }
 0x440   :  { %v4368_v3 = vadd.f32 %v8555_v34, %v4328_v58  ;;  %v8557_v0 = vpop.f32.mrf.mxu1  ;;  %v11964_v7 = vld [vmem:[%s13302_s8 + $0x170] ss:$60 sps:$4 sm:$0xff]   ;;  %13397 = vst [vmem:[#allocation29_spill] sm:$0xff] %v11978_v45  ;;  %13409 = vst [vmem:[#allocation41_spill] sm:$0xff] %v12050_v56 }
 0x441   :  { %13395 = vst [vmem:[#allocation27_spill] sm:$0xff] %v11964_v7  ;;  %4965 = vmatpush1.bf16.msra.mxu1 %v11964_v7  ;;  %v11973_v0 = vld [vmem:[%s13302_s8 + $0xf4] ss:$60 sps:$4 sm:$0xff]  }
 0x442   :  { %13396 = vst [vmem:[#allocation28_spill] sm:$0xff] %v11973_v0  ;;  %4925 = vmatprep.subr.bf16.mxu0 %v11973_v0  ;;  %4966 = vmatprep.subr.bf16.mxu1 %v11978_v45 }
 0x443   :  { %4926 = vmatpush1.bf16.msra.mxu0 %v11983_v61 }
 0x444   :  { %4927 = vmatprep.subr.bf16.mxu0 %v11997_v30 }
 0x445   :  { %4967 = vmatpush1.bf16.msra.mxu1 %v11988_v28 }
 0x446   :  { %4968 = vmatprep.subr.bf16.mxu1 %v12002_v60 }
 0x447   :  { %4928 = vmatpush1.bf16.msra.mxu0 %v12007_v29 }
 0x448   :  { %4929 = vmatprep.subr.bf16.mxu0 %v12021_v36 }
 0x449   :  { %4969 = vmatpush1.bf16.msra.mxu1 %v12012_v47 }
 0x44a   :  { %4970 = vmatprep.subr.bf16.mxu1 %v12026_v11 }
 0x44b   :  { %4930 = vmatpush1.bf16.msra.mxu0 %v12031_v18 }
 0x44c   :  { %5005 = vmatprep.subr.bf16.mxu0 %v12045_v52 }
 0x44d   :  { %4971 = vmatpush1.bf16.msra.mxu1 %v12036_v40 }
 0x44e   :  { %5046 = vmatprep.subr.bf16.mxu1 %v12050_v56 }
 0x459   :  { %v8575_v33 = vpop.f32.mrf.mxu0 }
 0x45b   :  { %v8576_v34 = vpop.f32.mrf.mxu0 }
 0x45c   :  { %v8577_v42 = vadd.f32 %v8576_v34, %v8575_v33 }
 0x45d   :  { %v8578_v58 = vpop.f32.mrf.mxu0 }
 0x45e   :  { %v4408_v18 = vadd.f32 %v8577_v42, %v4368_v3  ;;  %v12124_v58 = vld [vmem:[%s13302_s8 + $0x14] ss:$60 sps:$4 sm:$0xff]  }
 0x45f   :  { %v8579_v40 = vpop.f32.mrf.mxu0  ;;  %13411 = vst [vmem:[#allocation43_spill] sm:$0xff] %v12124_v58 }
 0x465   :  { %v8597_v11 = vpop.f32.mrf.mxu1 }
 0x467   :  { %v8598_v36 = vpop.f32.mrf.mxu1 }
 0x468   :  { %v8599_v47 = vadd.f32 %v8598_v36, %v8597_v11 }
 0x469   :  { %v8600_v29 = vpop.f32.mrf.mxu1 }
 0x46a   :  { %v4448_v60 = vadd.f32 %v8599_v47, %v4408_v18  ;;  %v12103_v18 = vld [vmem:[%s13302_s8 + $0x94] ss:$60 sps:$4 sm:$0xff]  }
 0x46b   :  { %v8601_v30 = vpop.f32.mrf.mxu1 }
 0x4a5   :  { %v8619_v28 = vpop.f32.mrf.mxu0 }
 0x4a7   :  { %v8620_v61 = vpop.f32.mrf.mxu0 }
 0x4a8   :  { %v8621_v7 = vadd.f32 %v8620_v61, %v8619_v28  ;;  %v12086_v61 = vld [vmem:[%s13302_s8 + $0x100] ss:$60 sps:$4 sm:$0xff]   ;;  %v12091_v28 = vld [vmem:[%s13302_s8 + $0x108] ss:$60 sps:$4 sm:$0xff]  }
 0x4a9   :  { %v8622_v45 = vpop.f32.mrf.mxu0 }
 0x4aa   :  { %v4488_v52 = vadd.f32 %v8621_v7, %v4448_v60  ;;  %v12070_v7 = vld [vmem:[%s13302_s8 + $0x104] ss:$60 sps:$4 sm:$0xff]   ;;  %v12075_v45 = vld [vmem:[%s13302_s8 + $0x10c] ss:$60 sps:$4 sm:$0xff]  }
 0x4ab   :  { %v8623_v0 = vpop.f32.mrf.mxu0  ;;  %v12098_v60 = vld [vmem:[%s13302_s8 + $0x8c] ss:$60 sps:$4 sm:$0xff]  }
 0x4ac   :  { %v12058_v0 = vld [vmem:[%s13302_s8 + $0x178] ss:$60 sps:$4 sm:$0xff]  }
 0x4c4   :  { %v4527_v9 = vpop.f32.mrf.mxu1 }
 0x4c5   :  { %v4528_v56 = vadd.f32 %v4527_v9, %v4488_v52  ;;  %v12112_v52 = vld [vmem:[%s13302_s8 + $0x88] ss:$60 sps:$4 sm:$0xff]  }
 0x4c6   :  { %v9306_v46 = vpop.f32.mrf.mxu1 }
 0x4c7   :  { %v4534_v33 = vsel %vm4533_vm4, %v4528_v56, 0.0  ;;  %v12063_v46 = vld [vmem:[%s13302_s8 + $0x180] ss:$60 sps:$4 sm:$0xff]   ;;  %v12117_v56 = vld [vmem:[%s13302_s8 + $0x90] ss:$60 sps:$4 sm:$0xff]  }
 0x4c8   :  { %v4535_v3 = vrot.slane %v4534_v33, 4  ;;  %v4530_v40 = vpop.f32.mrf.mxu1  ;;  %13410 = vst [vmem:[#allocation42_spill] sm:$0xff] %v12117_v56 }
 0x4c9   :  { %v12141_v40 = vld [vmem:[%s13302_s8 + $0x18] ss:$60 sps:$4 sm:$0xff]  }
 0x4ca   :  { %v4536_v34 = vadd.f32 %v4535_v3, %v4534_v33  ;;  %v9307_v42 = vpop.f32.mrf.mxu1  ;;  %v12129_v33 = vld [vmem:[%s13302_s8 + $0x1c] ss:$60 sps:$4 sm:$0xff]   ;;  %v12136_v3 = vld [vmem:[%s13302_s8 + $0x10] ss:$60 sps:$4 sm:$0xff]   ;;  %13414 = vst [vmem:[#allocation46_spill] sm:$0xff] %v12141_v40 }
 0x4cb   :  { %13412 = vst [vmem:[#allocation44_spill] sm:$0xff] %v12129_v33  ;;  %13413 = vst [vmem:[#allocation45_spill] sm:$0xff] %v12136_v3  ;;  %v12153_v42 = vld [vmem:[%s13302_s8 + $0x194] ss:$60 sps:$4 sm:$0xff]  }
 0x4cc   :  { %v4537_v36 = vrot.slane %v4536_v34, 2  ;;  %13416 = vst [vmem:[#allocation48_spill] sm:$0xff] %v12153_v42 }
 0x4ce   :  { %v4538_v29 = vadd.f32 %v4537_v36, %v4536_v34  ;;  %v12148_v34 = vld [vmem:[%s13302_s8 + $0x18c] ss:$60 sps:$4 sm:$0xff]  }
 0x4cf   :  { %13415 = vst [vmem:[#allocation47_spill] sm:$0xff] %v12148_v34  ;;  %v12160_v36 = vld [vmem:[%s13302_s8 + $0x188] ss:$60 sps:$4 sm:$0xff]  }
 0x4d0   :  { %v4539_v47 = vrot.slane %v4538_v29, 1  ;;  %13417 = vst [vmem:[#allocation49_spill] sm:$0xff] %v12160_v36 }
 0x4d2   :  { %v4540_v30 = vadd.f32 %v4539_v47, %v4538_v29  ;;  %v12165_v29 = vld [vmem:[%s13302_s8 + $0x190] ss:$60 sps:$4 sm:$0xff]  }
 0x4d3   :  { %13418 = vst [vmem:[#allocation50_spill] sm:$0xff] %v12165_v29  ;;  %v12172_v47 = vld [vmem:[%s13302_s8 + $0x114] ss:$60 sps:$4 sm:$0xff]  }
 0x4d4   :  { %v4541_v11 = vmul.f32 0.008333334, %v4540_v30  ;;  %13419 = vst [vmem:[#allocation51_spill] sm:$0xff] %v12172_v47  ;;  %v12177_v30 = vld [vmem:[%s13302_s8 + $0x11c] ss:$60 sps:$4 sm:$0xff]  }
 0x4d5   :  { %13420 = vst [vmem:[#allocation52_spill] sm:$0xff] %v12177_v30 }
 0x4d6   :  { %v12065_v9 = vpack.c.bf16 %v4541_v11, %v4541_v11  ;;  %v12188_v11 = vld [vmem:[%s13302_s8 + $0x110] ss:$60 sps:$4 sm:$0xff]  }
 0x4d7   :  { %13421 = vst [vmem:[#allocation53_spill] sm:$0xff] %v12188_v11 }
 0x4d8   :  { %7860 = vmatmul.mubr.msk.bf16.vlgmr.msra.gmra.mxu0 %vm4911_vm5, %v12065_v9  ;;  %7861 = vmatmul.mubr.msk.bf16.vlgmr.msra.gmra.mxu1 %vm4911_vm5, %v12065_v9 }
 0x4d9   :  { %5006 = vmatpush1.bf16.msra.mxu0 %v12058_v0  ;;  %5047 = vmatpush1.bf16.msra.mxu1 %v12063_v46 }
 0x4da   :  { %5007 = vmatprep.subr.bf16.mxu0 %v12070_v7  ;;  %5048 = vmatprep.subr.bf16.mxu1 %v12075_v45 }
 0x4db   :  { %5029 = vmatprep.mubr.bf16.mxu0 %v13386_v19  ;;  %5070 = vmatprep.mubr.bf16.mxu1 %v13386_v19 }
 0x4dd   :  { %5008 = vmatpush1.bf16.msra.mxu0 %v12086_v61  ;;  %5049 = vmatpush1.bf16.msra.mxu1 %v12091_v28 }
 0x4de   :  { %5009 = vmatprep.subr.bf16.mxu0 %v12098_v60  ;;  %5050 = vmatprep.subr.bf16.mxu1 %v12103_v18 }
 0x4e1   :  { %5010 = vmatpush1.bf16.msra.mxu0 %v12112_v52  ;;  %5051 = vmatpush1.bf16.msra.mxu1 %v12117_v56 }
 0x4e2   :  { %5011 = vmatprep.subr.bf16.mxu0 %v12124_v58  ;;  %5052 = vmatprep.subr.bf16.mxu1 %v12129_v33 }
 0x4e5   :  { %5012 = vmatpush1.bf16.msra.mxu0 %v12136_v3  ;;  %5053 = vmatpush1.bf16.msra.mxu1 %v12141_v40 }
 0x4e6   :  { %5087 = vmatprep.subr.bf16.mxu0 %v12148_v34  ;;  %5128 = vmatprep.subr.bf16.mxu1 %v12153_v42  ;;  %v12193_v42 = vld [vmem:[%s13302_s8 + $0x118] ss:$60 sps:$4 sm:$0xff]  }
 0x4e7   :  { %13422 = vst [vmem:[#allocation54_spill] sm:$0xff] %v12193_v42 }
 0x4e8   :  { %7862 = vmatmul.mubr.msk.bf16.vlgmr.msra.gmra.mxu0 %vm4911_vm5, %v12065_v9  ;;  %7863 = vmatmul.mubr.msk.bf16.vlgmr.msra.gmra.mxu1 %vm4911_vm5, %v12065_v9 }
 0x4e9   :  { %5088 = vmatpush1.bf16.msra.mxu0 %v12160_v36  ;;  %5129 = vmatpush1.bf16.msra.mxu1 %v12165_v29  ;;  %v12200_v36 = vld [vmem:[%s13302_s8 + $0x9c] ss:$60 sps:$4 sm:$0xff]   ;;  %v12205_v29 = vld [vmem:[%s13302_s8 + $0xa4] ss:$60 sps:$4 sm:$0xff]  }
 0x4ea   :  { %5089 = vmatprep.subr.bf16.mxu0 %v12172_v47  ;;  %5130 = vmatprep.subr.bf16.mxu1 %v12177_v30  ;;  %13423 = vst [vmem:[#allocation55_spill] sm:$0xff] %v12200_v36  ;;  %13424 = vst [vmem:[#allocation56_spill] sm:$0xff] %v12205_v29  ;;  %v12214_v30 = vld [vmem:[%s13302_s8 + $0x98] ss:$60 sps:$4 sm:$0xff]   ;;  %v12219_v47 = vld [vmem:[%s13302_s8 + $0xa0] ss:$60 sps:$4 sm:$0xff]  }
 0x4eb   :  { %5111 = vmatprep.mubr.bf16.mxu0 %v13386_v19  ;;  %5152 = vmatprep.mubr.bf16.mxu1 %v13386_v19  ;;  %13425 = vst [vmem:[#allocation57_spill] sm:$0xff] %v12214_v30  ;;  %13426 = vst [vmem:[#allocation58_spill] sm:$0xff] %v12219_v47 }
 0x4ed   :  { %5090 = vmatpush1.bf16.msra.mxu0 %v12188_v11  ;;  %5131 = vmatpush1.bf16.msra.mxu1 %v12193_v42  ;;  %v12226_v11 = vld [vmem:[%s13302_s8 + $0x24] ss:$60 sps:$4 sm:$0xff]   ;;  %v12231_v42 = vld [vmem:[%s13302_s8 + $0x2c] ss:$60 sps:$4 sm:$0xff]  }
 0x4ee   :  { %5091 = vmatprep.subr.bf16.mxu0 %v12200_v36  ;;  %5132 = vmatprep.subr.bf16.mxu1 %v12205_v29  ;;  %13427 = vst [vmem:[#allocation59_spill] sm:$0xff] %v12226_v11  ;;  %13428 = vst [vmem:[#allocation60_spill] sm:$0xff] %v12231_v42  ;;  %v12238_v36 = vld [vmem:[%s13302_s8 + $0x20] ss:$60 sps:$4 sm:$0xff]   ;;  %v12243_v29 = vld [vmem:[%s13302_s8 + $0x28] ss:$60 sps:$4 sm:$0xff]  }
 0x4ef   :  { %13429 = vst [vmem:[#allocation61_spill] sm:$0xff] %v12238_v36  ;;  %13430 = vst [vmem:[#allocation62_spill] sm:$0xff] %v12243_v29 }
 0x4f1   :  { %5092 = vmatpush1.bf16.msra.mxu0 %v12214_v30  ;;  %5133 = vmatpush1.bf16.msra.mxu1 %v12219_v47  ;;  %v12250_v30 = vld [vmem:[%s13302_s8 + $0x19c] ss:$60 sps:$4 sm:$0xff]  }
 0x4f2   :  { %5093 = vmatprep.subr.bf16.mxu0 %v12226_v11  ;;  %5134 = vmatprep.subr.bf16.mxu1 %v12231_v42  ;;  %13431 = vst [vmem:[#allocation63_spill] sm:$0xff] %v12250_v30  ;;  %v12257_v47 = vld [vmem:[%s13302_s8 + $0x198] ss:$60 sps:$4 sm:$0xff]   ;;  %v12262_v11 = vld [vmem:[%s13302_s8 + $0x1a0] ss:$60 sps:$4 sm:$0xff]  }
 0x4f3   :  { %13432 = vst [vmem:[#allocation64_spill] sm:$0xff] %v12257_v47  ;;  %13433 = vst [vmem:[#allocation65_spill] sm:$0xff] %v12262_v11 }
 0x4f5   :  { %5094 = vmatpush1.bf16.msra.mxu0 %v12238_v36  ;;  %5135 = vmatpush1.bf16.msra.mxu1 %v12243_v29  ;;  %v12269_v36 = vld [vmem:[%s13302_s8 + $0x124] ss:$60 sps:$4 sm:$0xff]  }
 0x4f6   :  { %5169 = vmatprep.subr.bf16.mxu0 %v12250_v30  ;;  %9308 = vmatprep.subr.bf16.mxu1 %v13381_v10  ;;  %13434 = vst [vmem:[#allocation66_spill] sm:$0xff] %v12269_v36  ;;  %v12280_v30 = vld [vmem:[%s13302_s8 + $0x120] ss:$60 sps:$4 sm:$0xff]   ;;  %v12285_v29 = vld [vmem:[%s13302_s8 + $0x128] ss:$60 sps:$4 sm:$0xff]  }
 0x4f7   :  { %13435 = vst [vmem:[#allocation67_spill] sm:$0xff] %v12280_v30  ;;  %13436 = vst [vmem:[#allocation68_spill] sm:$0xff] %v12285_v29 }
 0x4f8   :  { %7864 = vmatmul.mubr.msk.bf16.vlgmr.msra.gmra.mxu0 %vm4911_vm5, %v12065_v9  ;;  %7865 = vmatmul.mubr.msk.bf16.vlgmr.msra.gmra.mxu1 %vm4911_vm5, %v12065_v9 }
 0x4f9   :  { %5170 = vmatpush1.bf16.msra.mxu0 %v12257_v47  ;;  %9309 = vmatpush3.bf16.msra.mxu1 %v12262_v11  ;;  %v12292_v47 = vld [vmem:[%s13302_s8 + $0xac] ss:$60 sps:$4 sm:$0xff]  }
 0x4fa   :  { %5171 = vmatprep.subr.bf16.mxu0 %v12269_v36  ;;  %9310 = vmatprep.subr.bf16.mxu1 %v13381_v10  ;;  %13437 = vst [vmem:[#allocation69_spill] sm:$0xff] %v12292_v47  ;;  %v12302_v36 = vld [vmem:[%s13302_s8 + $0xa8] ss:$60 sps:$4 sm:$0xff]   ;;  %v12307_v11 = vld [vmem:[%s13302_s8 + $0xb0] ss:$60 sps:$4 sm:$0xff]  }
 0x4fb   :  { %5193 = vmatprep.mubr.bf16.mxu0 %v13386_v19  ;;  %9316 = vmatprep.mubr.msk.bf16.mxu1 %vm10244_vm2, %v13381_v10  ;;  %13438 = vst [vmem:[#allocation70_spill] sm:$0xff] %v12302_v36  ;;  %13439 = vst [vmem:[#allocation71_spill] sm:$0xff] %v12307_v11 }
 0x4fd   :  { %5172 = vmatpush1.bf16.msra.mxu0 %v12280_v30  ;;  %9311 = vmatpush3.bf16.msra.mxu1 %v12285_v29  ;;  %v12314_v30 = vld [vmem:[%s13302_s8 + $0x34] ss:$60 sps:$4 sm:$0xff]  }
 0x4fe   :  { %5173 = vmatprep.subr.bf16.mxu0 %v12292_v47  ;;  %9312 = vmatprep.subr.bf16.mxu1 %v13381_v10  ;;  %13440 = vst [vmem:[#allocation72_spill] sm:$0xff] %v12314_v30  ;;  %v12321_v29 = vld [vmem:[%s13302_s8 + $0x30] ss:$60 sps:$4 sm:$0xff]   ;;  %v12326_v47 = vld [vmem:[%s13302_s8 + $0x38] ss:$60 sps:$4 sm:$0xff]  }
 0x4ff   :  { %13441 = vst [vmem:[#allocation73_spill] sm:$0xff] %v12321_v29  ;;  %13442 = vst [vmem:[#allocation74_spill] sm:$0xff] %v12326_v47 }
 0x501   :  { %5174 = vmatpush1.bf16.msra.mxu0 %v12302_v36  ;;  %9313 = vmatpush3.bf16.msra.mxu1 %v12307_v11  ;;  %v9968_v11 = vld [vmem:[%s13301_s7 + $0x78] sm:$0xff]  }
 0x502   :  { %5175 = vmatprep.subr.bf16.mxu0 %v12314_v30  ;;  %9314 = vmatprep.subr.bf16.mxu1 %v13381_v10  ;;  %v9969_v36 = vld [vmem:[%s13301_s7 + $0xf8] sm:$0xff]  }
 0x505   :  { %5176 = vmatpush1.bf16.msra.mxu0 %v12321_v29  ;;  %9315 = vmatpush3.bf16.msra.mxu1 %v12326_v47  ;;  %v9970_v47 = vld [vmem:[%s13301_s7 + $0x38] sm:$0xff]   ;;  %v9973_v29 = vld [vmem:[%s13301_s7 + $0xf0] sm:$0xff]  }
 0x506   :  { %8639 = vmatprep.subr.bf16.mxu0 %v9968_v11  ;;  %8661 = vmatprep.subr.bf16.mxu1 %v9969_v36  ;;  %v9971_v11 = vld [vmem:[%s13301_s7 + $0xb8] sm:$0xff]   ;;  %v9972_v36 = vld [vmem:[%s13301_s7 + $0x70] sm:$0xff]  }
 0x508   :  { %7866 = vmatmul.mubr.msk.bf16.vlgmr.msra.gmra.mxu0 %vm4911_vm5, %v12065_v9  ;;  %9317 = vmatmul.mubr.msk.bf16.vlgmr.msra.gmra.mxu1 %vm4911_vm5, %v12065_v9  ;;  %v9974_v9 = vld [vmem:[%s13301_s7 + $0x30] sm:$0xff]  }
 0x509   :  { %8640 = vmatpush3.bf16.msra.mxu0 %v9970_v47  ;;  %8662 = vmatpush3.bf16.msra.mxu1 %v9971_v11  ;;  %v9975_v47 = vld [vmem:[%s13301_s7 + $0xb0] sm:$0xff]   ;;  %v9976_v11 = vld [vmem:[%s13301_s7 + $0x68] sm:$0xff]  }
 0x50a   :  { %8641 = vmatprep.subr.bf16.mxu0 %v9972_v36  ;;  %8663 = vmatprep.subr.bf16.mxu1 %v9973_v29  ;;  %v9977_v36 = vld [vmem:[%s13301_s7 + $0xe8] sm:$0xff]  }
 0x50b   :  { %v9978_v29 = vld [vmem:[%s13301_s7 + $0x28] sm:$0xff]  }
 0x50d   :  { %8642 = vmatpush3.bf16.msra.mxu0 %v9974_v9  ;;  %8664 = vmatpush3.bf16.msra.mxu1 %v9975_v47  ;;  %v9979_v9 = vld [vmem:[%s13301_s7 + $0xa8] sm:$0xff]   ;;  %v9980_v47 = vld [vmem:[%s13301_s7 + $0x60] sm:$0xff]  }
 0x50e   :  { %8643 = vmatprep.subr.bf16.mxu0 %v9976_v11  ;;  %8665 = vmatprep.subr.bf16.mxu1 %v9977_v36  ;;  %v9981_v11 = vld [vmem:[%s13301_s7 + $0xe0] sm:$0xff]  }
 0x50f   :  { %v9982_v36 = vld [vmem:[%s13301_s7 + $0x20] sm:$0xff]  }
 0x511   :  { %8644 = vmatpush3.bf16.msra.mxu0 %v9978_v29  ;;  %8666 = vmatpush3.bf16.msra.mxu1 %v9979_v9  ;;  %v9983_v29 = vld [vmem:[%s13301_s7 + $0xa0] sm:$0xff]   ;;  %v9984_v9 = vld [vmem:[%s13301_s7 + $0x58] sm:$0xff]  }
 0x512   :  { %8645 = vmatprep.subr.bf16.mxu0 %v9980_v47  ;;  %8667 = vmatprep.subr.bf16.mxu1 %v9981_v11  ;;  %v9985_v47 = vld [vmem:[%s13301_s7 + $0xd8] sm:$0xff]  }
 0x513   :  { %v9986_v11 = vld [vmem:[%s13301_s7 + $0x18] sm:$0xff]  }
 0x515   :  { %8646 = vmatpush3.bf16.msra.mxu0 %v9982_v36  ;;  %8668 = vmatpush3.bf16.msra.mxu1 %v9983_v29  ;;  %v9987_v36 = vld [vmem:[%s13301_s7 + $0x98] sm:$0xff]   ;;  %v9988_v29 = vld [vmem:[%s13301_s7 + $0x50] sm:$0xff]  }
 0x516   :  { %8647 = vmatprep.subr.bf16.mxu0 %v9984_v9  ;;  %8669 = vmatprep.subr.bf16.mxu1 %v9985_v47  ;;  %v9989_v9 = vld [vmem:[%s13301_s7 + $0xd0] sm:$0xff]  }
 0x517   :  { %v9990_v47 = vld [vmem:[%s13301_s7 + $0x10] sm:$0xff]  }
 0x519   :  { %8648 = vmatpush3.bf16.msra.mxu0 %v9986_v11  ;;  %8670 = vmatpush3.bf16.msra.mxu1 %v9987_v36  ;;  %v9991_v11 = vld [vmem:[%s13301_s7 + $0x90] sm:$0xff]   ;;  %v9992_v36 = vld [vmem:[%s13301_s7 + $0x48] sm:$0xff]  }
 0x51a   :  { %8649 = vmatprep.subr.bf16.mxu0 %v9988_v29  ;;  %8671 = vmatprep.subr.bf16.mxu1 %v9989_v9  ;;  %v9993_v29 = vld [vmem:[%s13301_s7 + $0xc8] sm:$0xff]  }
 0x51b   :  { %v9994_v9 = vld [vmem:[%s13301_s7 + $0x8] sm:$0xff]  }
 0x51d   :  { %8650 = vmatpush3.bf16.msra.mxu0 %v9990_v47  ;;  %8672 = vmatpush3.bf16.msra.mxu1 %v9991_v11  ;;  %v9995_v47 = vld [vmem:[%s13301_s7 + $0x88] sm:$0xff]   ;;  %v9996_v11 = vld [vmem:[%s13301_s7 + $0x40] sm:$0xff]  }
 0x51e   :  { %8651 = vmatprep.subr.bf16.mxu0 %v9992_v36  ;;  %8673 = vmatprep.subr.bf16.mxu1 %v9993_v29  ;;  %v9997_v36 = vld [vmem:[%s13301_s7 + $0xc0] sm:$0xff]  }
 0x51f   :  { %v9998_v29 = vld [vmem:[%s13301_s7] sm:$0xff]  }
 0x521   :  { %8652 = vmatpush3.bf16.msra.mxu0 %v9994_v9  ;;  %8674 = vmatpush3.bf16.msra.mxu1 %v9995_v47  ;;  %v9999_v9 = vld [vmem:[%s13301_s7 + $0x80] sm:$0xff]   ;;  %v10000_v47 = vld [vmem:[%s13301_s7 + $0x178] sm:$0xff]  }
 0x522   :  { %8653 = vmatprep.subr.bf16.mxu0 %v9996_v11  ;;  %8675 = vmatprep.subr.bf16.mxu1 %v9997_v36  ;;  %v10001_v11 = vld [vmem:[%s13301_s7 + $0x1f8] sm:$0xff]  }
 0x525   :  { %8654 = vmatpush3.bf16.msra.mxu0 %v9998_v29  ;;  %8676 = vmatpush3.bf16.msra.mxu1 %v9999_v9 }
 0x526   :  { %8683 = vmatprep.subr.bf16.mxu0 %v10000_v47  ;;  %8705 = vmatprep.subr.bf16.mxu1 %v10001_v11 }
 0x598   :  { %v4949_v36 = vpop.f32.mrf.mxu0  ;;  %v4990_v30 = vpop.f32.mrf.mxu1 }
 0x599   :  { %v5245_v42 = vrot.slane %v4949_v36, %v10400_v24  ;;  %v5253_v29 = vrot.slane %v4990_v30, %v10400_v24 }
 0x59a   :  { %v4951_v34 = vpop.f32.mrf.mxu0  ;;  %v4992_v40 = vpop.f32.mrf.mxu1 }
 0x59b   :  { %v12441_v9 = vsub.f32 %v11497_v48, %v5245_v42  ;;  %v12444_v3 = vsub.f32 %v11506_v23, %v5253_v29  ;;  %v5249_v47 = vrot.slane %v4951_v34, %v10400_v24  ;;  %v5257_v33 = vrot.slane %v4992_v40, %v10400_v24 }
 0x59c   :  { %v4953_v58 = vpop.f32.mrf.mxu0  ;;  %v4994_v11 = vpop.f32.mrf.mxu1 }
 0x59d   :  { %v12449_v56 = vsub.f32 %v11383_v26, %v5249_v47  ;;  %v12452_v36 = vsub.f32 %v11386_v1, %v5257_v33  ;;  %v5317_v30 = vmul.f32 %v12441_v9, %v12441_v9  ;;  %v5319_v48 = vmul.f32 %v12444_v3, %v12444_v3  ;;  %v10002_v1 = vld [vmem:[%s13301_s7 + $0x138] sm:$0xff]   ;;  %v10004_v11 = vld [vmem:[%s13301_s7 + $0x170] sm:$0xff]  }
 0x59e   :  { %v4954_v23 = vpop.f32.mrf.mxu0  ;;  %v4995_v42 = vpop.f32.mrf.mxu1  ;;  %v10003_v33 = vld [vmem:[%s13301_s7 + $0x1b8] sm:$0xff]  }
 0x59f   :  { %v5318_v34 = vmul.f32 %v12449_v56, %v12449_v56  ;;  %v5320_v58 = vmul.f32 %v12452_v36, %v12452_v36  ;;  %v5332_v29 = vpack.c.bf16 %v5317_v30, %v5317_v30  ;;  %v5334_v47 = vpack.c.bf16 %v5319_v48, %v5319_v48  ;;  %v10005_v30 = vld [vmem:[%s13301_s7 + $0x1f0] sm:$0xff]  }
 0x5a0   :  { %v10006_v42 = vld [vmem:[%s13301_s7 + $0x130] sm:$0xff]  }
 0x5a1   :  { %v5333_v40 = vpack.c.bf16 %v5318_v34, %v5318_v34  ;;  %v5335_v26 = vpack.c.bf16 %v5320_v58, %v5320_v58  ;;  %v10007_v34 = vld [vmem:[%s13301_s7 + $0x1b0] sm:$0xff]  }
 0x5a3   :  { %5379 = vmatprep.mubr.bf16.mxu0 %v5333_v40  ;;  %5419 = vmatprep.mubr.bf16.mxu1 %v5335_v26  ;;  %v10008_v26 = vld [vmem:[%s13301_s7 + $0x168] sm:$0xff]  }
 0x5a4   :  { %5380 = vmatmul.mubr.bf16.vlgmr.msra.gmra.mxu0 %v5332_v29  ;;  %5420 = vmatmul.mubr.bf16.vlgmr.msra.gmra.mxu1 %v5334_v47  ;;  %v10009_v29 = vld [vmem:[%s13301_s7 + $0x1e8] sm:$0xff]  }
 0x5a5   :  { %8684 = vmatpush3.bf16.msra.mxu0 %v10002_v1  ;;  %8706 = vmatpush3.bf16.msra.mxu1 %v10003_v33 }
 0x5a6   :  { %8685 = vmatprep.subr.bf16.mxu0 %v10004_v11  ;;  %8707 = vmatprep.subr.bf16.mxu1 %v10005_v30 }
 0x5a8   :  { %v5031_v48 = vpop.f32.mrf.mxu0  ;;  %v12474_v23 = vpop.f32.mrf.mxu1 }
 0x5a9   :  { %8686 = vmatpush3.bf16.msra.mxu0 %v10006_v42  ;;  %8708 = vmatpush3.bf16.msra.mxu1 %v10007_v34  ;;  %v10010_v34 = vld [vmem:[%s13301_s7 + $0x128] sm:$0xff]  }
 0x5aa   :  { %v5033_v58 = vpop.f32.mrf.mxu0  ;;  %v5074_v40 = vpop.f32.mrf.mxu1  ;;  %8687 = vmatprep.subr.bf16.mxu0 %v10008_v26  ;;  %8709 = vmatprep.subr.bf16.mxu1 %v10009_v29  ;;  %v10011_v26 = vld [vmem:[%s13301_s7 + $0x1a8] sm:$0xff]  }
 0x5ab   :  { %v5265_v47 = vrot.slane %v5033_v58, %v10400_v24  ;;  %v5273_v1 = vrot.slane %v5074_v40, %v10400_v24 }
 0x5ac   :  { %v5035_v33 = vpop.f32.mrf.mxu0  ;;  %v5076_v11 = vpop.f32.mrf.mxu1 }
 0x5ad   :  { %v12491_v30 = vsub.f32 %v11512_v6, %v5265_v47  ;;  %v12494_v42 = vsub.f32 %v11514_v15, %v5273_v1  ;;  %8688 = vmatpush3.bf16.msra.mxu0 %v10010_v34  ;;  %8710 = vmatpush3.bf16.msra.mxu1 %v10011_v26  ;;  %v10012_v6 = vld [vmem:[%s13301_s7 + $0x160] sm:$0xff]   ;;  %v10016_v26 = vld [vmem:[%s13301_s7 + $0x158] sm:$0xff]  }
 0x5ae   :  { %v5036_v58 = vpop.f32.mrf.mxu0  ;;  %v5077_v40 = vpop.f32.mrf.mxu1  ;;  %8689 = vmatprep.subr.bf16.mxu0 %v10012_v6  ;;  %v10013_v15 = vld [vmem:[%s13301_s7 + $0x1e0] sm:$0xff]   ;;  %v5261_v6 = vrot.slane %v5031_v48, %v10400_v24 }
 0x5af   :  { %13443 = vst [vmem:[#allocation75_spill] sm:$0xff] %v12494_v42  ;;  %8711 = vmatprep.subr.bf16.mxu1 %v10013_v15  ;;  %v5322_v29 = vmul.f32 %v12491_v30, %v12491_v30  ;;  %v5324_v47 = vmul.f32 %v12494_v42, %v12494_v42  ;;  %v10014_v1 = vld [vmem:[%s13301_s7 + $0x120] sm:$0xff]   ;;  %v10017_v58 = vld [vmem:[%s13301_s7 + $0x1d8] sm:$0xff]  }
 0x5b0   :  { %v10015_v34 = vld [vmem:[%s13301_s7 + $0x1a0] sm:$0xff]   ;;  %v10018_v40 = vld [vmem:[%s13301_s7 + $0x118] sm:$0xff]  }
 0x5b1   :  { %8690 = vmatpush3.bf16.msra.mxu0 %v10014_v1  ;;  %v5337_v33 = vpack.c.bf16 %v5322_v29, %v5322_v29  ;;  %v5339_v11 = vpack.c.bf16 %v5324_v47, %v5324_v47  ;;  %8712 = vmatpush3.bf16.msra.mxu1 %v10015_v34  ;;  %v10019_v15 = vld [vmem:[%s13301_s7 + $0x198] sm:$0xff]   ;;  %v10020_v29 = vld [vmem:[%s13301_s7 + $0x150] sm:$0xff]   ;;  %v5269_v47 = vrot.slane %v12474_v23, %v10400_v24 }
 0x5b2   :  { %8691 = vmatprep.subr.bf16.mxu0 %v10016_v26  ;;  %8713 = vmatprep.subr.bf16.mxu1 %v10017_v58  ;;  %v10021_v1 = vld [vmem:[%s13301_s7 + $0x1d0] sm:$0xff]   ;;  %v12547_v34 = vsub.f32 %v11623_v21, %v5261_v6  ;;  %v10025_v6 = vld [vmem:[%s13301_s7 + $0x1c8] sm:$0xff]  }
 0x5b3   :  { %5459 = vmatprep.mubr.bf16.mxu0 %v5337_v33  ;;  %5499 = vmatprep.mubr.bf16.mxu1 %v5339_v11  ;;  %v10022_v11 = vld [vmem:[%s13301_s7 + $0x110] sm:$0xff]  }
 0x5b4   :  { %v10023_v23 = vld [vmem:[%s13301_s7 + $0x190] sm:$0xff]  }
 0x5b5   :  { %8692 = vmatpush3.bf16.msra.mxu0 %v10018_v40  ;;  %8714 = vmatpush3.bf16.msra.mxu1 %v10019_v15  ;;  %v10024_v40 = vld [vmem:[%s13301_s7 + $0x148] sm:$0xff]   ;;  %v12556_v15 = vsub.f32 %v11632_v39, %v5269_v47  ;;  %v5321_v47 = vmul.f32 %v12547_v34, %v12547_v34 }
 0x5b6   :  { %8693 = vmatprep.subr.bf16.mxu0 %v10020_v29  ;;  %8715 = vmatprep.subr.bf16.mxu1 %v10021_v1  ;;  %v10026_v39 = vld [vmem:[%s13301_s7 + $0x108] sm:$0xff]  }
 0x5b8   :  { %v12539_v33 = vpop.f32.mrf.mxu0  ;;  %v12541_v48 = vpop.f32.mrf.mxu1 }
 0x5b9   :  { %8694 = vmatpush3.bf16.msra.mxu0 %v10022_v11  ;;  %8716 = vmatpush3.bf16.msra.mxu1 %v10023_v23 }
 0x5ba   :  { %v5115_v26 = vpop.f32.mrf.mxu0  ;;  %v5156_v58 = vpop.f32.mrf.mxu1  ;;  %8695 = vmatprep.subr.bf16.mxu0 %v10024_v40  ;;  %8717 = vmatprep.subr.bf16.mxu1 %v10025_v6  ;;  %v10030_v6 = vld [vmem:[%s13301_s7 + $0x100] sm:$0xff]  }
 0x5bb   :  { %v5281_v29 = vrot.slane %v5115_v26, %v10400_v24  ;;  %v5289_v21 = vrot.slane %v5156_v58, %v10400_v24  ;;  %v10027_v26 = vld [vmem:[%s13301_s7 + $0x188] sm:$0xff]  }
 0x5bc   :  { %v5117_v1 = vpop.f32.mrf.mxu0  ;;  %v5158_v11 = vpop.f32.mrf.mxu1 }
 0x5bd   :  { %v12564_v23 = vsub.f32 %v11637_v59, %v5281_v29  ;;  %v12567_v42 = vsub.f32 %v11807_v13, %v5289_v21  ;;  %8696 = vmatpush3.bf16.msra.mxu0 %v10026_v39  ;;  %8718 = vmatpush3.bf16.msra.mxu1 %v10027_v26  ;;  %v10028_v59 = vld [vmem:[%s13301_s7 + $0x140] sm:$0xff]   ;;  %v5323_v13 = vmul.f32 %v12556_v15, %v12556_v15  ;;  %v10032_v26 = vld [vmem:[%s13301_s7 + $0x278] sm:$0xff]  }
 0x5be   :  { %v5118_v58 = vpop.f32.mrf.mxu0  ;;  %v5159_v40 = vpop.f32.mrf.mxu1  ;;  %8697 = vmatprep.subr.bf16.mxu0 %v10028_v59  ;;  %v10029_v29 = vld [vmem:[%s13301_s7 + $0x1c0] sm:$0xff]   ;;  %v5336_v11 = vpack.c.bf16 %v5321_v47, %v5321_v47  ;;  %v10034_v47 = vld [vmem:[%s13301_s7 + $0x238] sm:$0xff]  }
 0x5bf   :  { %8719 = vmatprep.subr.bf16.mxu1 %v10029_v29  ;;  %v5326_v21 = vmul.f32 %v12564_v23, %v12564_v23  ;;  %v5328_v1 = vmul.f32 %v12567_v42, %v12567_v42  ;;  %v10031_v39 = vld [vmem:[%s13301_s7 + $0x180] sm:$0xff]   ;;  %v5338_v58 = vpack.c.bf16 %v5323_v13, %v5323_v13  ;;  %v10033_v40 = vld [vmem:[%s13301_s7 + $0x2f8] sm:$0xff]   ;;  %v10036_v13 = vld [vmem:[%s13301_s7 + $0x270] sm:$0xff]  }
 0x5c1   :  { %8698 = vmatpush3.bf16.msra.mxu0 %v10030_v6  ;;  %8720 = vmatpush3.bf16.msra.mxu1 %v10031_v39  ;;  %v5341_v59 = vpack.c.bf16 %v5326_v21, %v5326_v21  ;;  %v5343_v29 = vpack.c.bf16 %v5328_v1, %v5328_v1  ;;  %v10035_v6 = vld [vmem:[%s13301_s7 + $0x2b8] sm:$0xff]   ;;  %v10037_v1 = vld [vmem:[%s13301_s7 + $0x2f0] sm:$0xff]  }
 0x5c2   :  { %8727 = vmatprep.subr.bf16.mxu0 %v10032_v26  ;;  %8749 = vmatprep.subr.bf16.mxu1 %v10033_v40  ;;  %v10038_v39 = vld [vmem:[%s13301_s7 + $0x230] sm:$0xff]  }
 0x5c3   :  { %v10039_v26 = vld [vmem:[%s13301_s7 + $0x2b0] sm:$0xff]  }
 0x5c4   :  { %5460 = vmatmul.mubr.bf16.vlgmr.msra.gmra.mxu0 %v5336_v11  ;;  %5500 = vmatmul.mubr.bf16.vlgmr.msra.gmra.mxu1 %v5338_v58 }
 0x5c5   :  { %8728 = vmatpush3.bf16.msra.mxu0 %v10034_v47  ;;  %5539 = vmatprep.mubr.bf16.mxu0 %v5341_v59  ;;  %v10040_v59 = vld [vmem:[%s13301_s7 + $0x268] sm:$0xff]  }
 0x5c6   :  { %8750 = vmatpush3.bf16.msra.mxu1 %v10035_v6  ;;  %5579 = vmatprep.mubr.bf16.mxu1 %v5343_v29  ;;  %v10041_v47 = vld [vmem:[%s13301_s7 + $0x2e8] sm:$0xff]  }
 0x5c7   :  { %8729 = vmatprep.subr.bf16.mxu0 %v10036_v13  ;;  %8751 = vmatprep.subr.bf16.mxu1 %v10037_v1  ;;  %v10042_v13 = vld [vmem:[%s13301_s7 + $0x228] sm:$0xff]  }
 0x5c8   :  { %v12610_v21 = vpop.f32.mrf.mxu0  ;;  %v12612_v11 = vpop.f32.mrf.mxu1  ;;  %v10043_v1 = vld [vmem:[%s13301_s7 + $0x2a8] sm:$0xff]  }
 0x5c9   :  { %8730 = vmatpush3.bf16.msra.mxu0 %v10038_v39 }
 0x5ca   :  { %8752 = vmatpush3.bf16.msra.mxu1 %v10039_v26  ;;  %v5197_v58 = vpop.f32.mrf.mxu0  ;;  %v9318_v40 = vpop.f32.mrf.mxu1  ;;  %8731 = vmatprep.subr.bf16.mxu0 %v10040_v59  ;;  %v10045_v59 = vld [vmem:[%s13301_s7 + $0x2e0] sm:$0xff]  }
 0x5cb   :  { %8753 = vmatprep.subr.bf16.mxu1 %v10041_v47  ;;  %v10044_v40 = vld [vmem:[%s13301_s7 + $0x260] sm:$0xff]  }
 0x5cc   :  { %v5199_v29 = vpop.f32.mrf.mxu0  ;;  %v5239_v6 = vpop.f32.mrf.mxu1  ;;  %v10046_v47 = vld [vmem:[%s13301_s7 + $0x220] sm:$0xff]  }
 0x5cd   :  { %8732 = vmatpush3.bf16.msra.mxu0 %v10042_v13  ;;  %v10047_v29 = vld [vmem:[%s13301_s7 + $0x2a0] sm:$0xff]   ;;  %v10048_v6 = vld [vmem:[%s13301_s7 + $0x258] sm:$0xff]  }
 0x5ce   :  { %8754 = vmatpush3.bf16.msra.mxu1 %v10043_v1  ;;  %v5200_v39 = vpop.f32.mrf.mxu0  ;;  %v9319_v26 = vpop.f32.mrf.mxu1  ;;  %8733 = vmatprep.subr.bf16.mxu0 %v10044_v40  ;;  %v10049_v13 = vld [vmem:[%s13301_s7 + $0x2d8] sm:$0xff]   ;;  %v10052_v40 = vld [vmem:[%s13301_s7 + $0x250] sm:$0xff]  }
 0x5cf   :  { %8755 = vmatprep.subr.bf16.mxu1 %v10045_v59  ;;  %v10050_v1 = vld [vmem:[%s13301_s7 + $0x218] sm:$0xff]   ;;  %v5277_v39 = vrot.slane %v12539_v33, %v10400_v24  ;;  %v5285_v59 = vrot.slane %v12541_v48, %v10400_v24  ;;  %v5297_v33 = vrot.slane %v5197_v58, %v10400_v24  ;;  %v10056_v48 = vld [vmem:[%s13301_s7 + $0x248] sm:$0xff]  }
 0x5d0   :  { %v10051_v26 = vld [vmem:[%s13301_s7 + $0x298] sm:$0xff]  }
 0x5d1   :  { %8734 = vmatpush3.bf16.msra.mxu0 %v10046_v47  ;;  %v10053_v47 = vld [vmem:[%s13301_s7 + $0x2d0] sm:$0xff]   ;;  %v12683_v58 = vsub.f32 %v11799_v41, %v5285_v59  ;;  %v10059_v41 = vld [vmem:[%s13301_s7 + $0x240] sm:$0xff]  }
 0x5d2   :  { %8756 = vmatpush3.bf16.msra.mxu1 %v10047_v29  ;;  %8735 = vmatprep.subr.bf16.mxu0 %v10048_v6  ;;  %v10054_v29 = vld [vmem:[%s13301_s7 + $0x210] sm:$0xff]   ;;  %v12674_v6 = vsub.f32 %v11747_v44, %v5277_v39  ;;  %v12689_v44 = vsub.f32 %v11932_v5, %v5297_v33  ;;  %v10058_v39 = vld [vmem:[%s13301_s7 + $0x208] sm:$0xff]   ;;  %v13462_v33 = vld [vmem:[#allocation39_spill] sm:$0xff] }
 0x5d3   :  { %8757 = vmatprep.subr.bf16.mxu1 %v10049_v13  ;;  %v10055_v13 = vld [vmem:[%s13301_s7 + $0x290] sm:$0xff]  }
 0x5d4   :  { %v5330_v5 = vmul.f32 %v12689_v44, %v12689_v44 }
 0x5d5   :  { %8736 = vmatpush3.bf16.msra.mxu0 %v10050_v1  ;;  %v10057_v1 = vld [vmem:[%s13301_s7 + $0x2c8] sm:$0xff]  }
 0x5d6   :  { %8758 = vmatpush3.bf16.msra.mxu1 %v10051_v26  ;;  %8737 = vmatprep.subr.bf16.mxu0 %v10052_v40  ;;  %v5325_v26 = vmul.f32 %v12674_v6, %v12674_v6  ;;  %v5327_v40 = vmul.f32 %v12683_v58, %v12683_v58 }
 0x5d7   :  { %8759 = vmatprep.subr.bf16.mxu1 %v10053_v47  ;;  %v5345_v47 = vpack.c.bf16 %v5330_v5, %v5330_v5 }
 0x5d8   :  { %v5340_v59 = vpack.c.bf16 %v5325_v26, %v5325_v26 }
 0x5d9   :  { %8738 = vmatpush3.bf16.msra.mxu0 %v10054_v29  ;;  %v13463_v29 = vld [vmem:[#allocation40_spill] sm:$0xff] }
 0x5da   :  { %8760 = vmatpush3.bf16.msra.mxu1 %v10055_v13  ;;  %8739 = vmatprep.subr.bf16.mxu0 %v10056_v48  ;;  %v13464_v13 = vld [vmem:[#allocation41_spill] sm:$0xff] }
 0x5db   :  { %8761 = vmatprep.subr.bf16.mxu1 %v10057_v1 }
 0x5dd   :  { %8740 = vmatpush3.bf16.msra.mxu0 %v10058_v39 }
 0x5de   :  { %8762 = vmatpush3.bf16.msra.mxu1 %v11734_v12  ;;  %8741 = vmatprep.subr.bf16.mxu0 %v10059_v41  ;;  %v5342_v12 = vpack.c.bf16 %v5327_v40, %v5327_v40 }
 0x5df   :  { %8763 = vmatprep.subr.bf16.mxu1 %v11739_v35  ;;  %v10060_v35 = vld [vmem:[%s13301_s7 + $0x338] sm:$0xff]  }
 0x5e1   :  { %8742 = vmatpush3.bf16.msra.mxu0 %v11744_v38  ;;  %v5293_v38 = vrot.slane %v12610_v21, %v10400_v24  ;;  %v13460_v21 = vld [vmem:[#allocation37_spill] sm:$0xff] }
 0x5e2   :  { %8764 = vmatpush3.bf16.msra.mxu1 %v11758_v53  ;;  %8771 = vmatprep.subr.bf16.mxu0 %v11752_v25  ;;  %v5301_v25 = vrot.slane %v12612_v11, %v10400_v24  ;;  %v13461_v11 = vld [vmem:[#allocation38_spill] sm:$0xff] }
 0x5e3   :  { %9320 = vmatprep.subr.bf16.mxu1 %v13381_v10  ;;  %v12739_v53 = vsub.f32 %v11930_v50, %v5293_v38  ;;  %v13457_v50 = vld [vmem:[#allocation34_spill] sm:$0xff] }
 0x5e4   :  { %5540 = vmatmul.mubr.bf16.vlgmr.msra.gmra.mxu0 %v5340_v59 }
 0x5e5   :  { %5580 = vmatmul.mubr.bf16.vlgmr.msra.gmra.mxu1 %v5342_v12  ;;  %8772 = vmatpush3.bf16.msra.mxu0 %v10060_v35 }
 0x5e6   :  { %5619 = vmatprep.mubr.bf16.mxu0 %v5345_v47  ;;  %9321 = vmatpush3.bf16.msra.mxu1 %v11820_v14 }
 0x5e7   :  { %8773 = vmatprep.subr.bf16.mxu0 %v11773_v55  ;;  %9322 = vmatprep.subr.bf16.mxu1 %v13381_v10  ;;  %v12744_v55 = vsub.f32 %v11941_v8, %v5301_v25  ;;  %v13458_v8 = vld [vmem:[#allocation35_spill] sm:$0xff] }
 0x5e8   :  { %9336 = vmatprep.mubr.msk.bf16.mxu1 %vm10244_vm2, %v13381_v10 }
 0x5e9   :  { %8774 = vmatpush3.bf16.msra.mxu0 %v11780_v54  ;;  %v5329_v54 = vmul.f32 %v12739_v53, %v12739_v53 }
 0x5ea   :  { %9323 = vmatpush3.bf16.msra.mxu1 %v11840_v2  ;;  %8775 = vmatprep.subr.bf16.mxu0 %v11789_v51  ;;  %v13444_v51 = vld [vmem:[#allocation25_spill] sm:$0xff]  ;;  %v13448_v2 = vld [vmem:[#allocation22_spill] sm:$0xff] }
 0x5eb   :  { %9324 = vmatprep.subr.bf16.mxu1 %v13381_v10  ;;  %v5344_v14 = vpack.c.bf16 %v5329_v54, %v5329_v54 }
 0x5ed   :  { %8776 = vmatpush3.bf16.msra.mxu0 %v11797_v31  ;;  %v13445_v31 = vld [vmem:[#allocation23_spill] sm:$0xff] }
 0x5ee   :  { %9325 = vmatpush3.bf16.msra.mxu1 %v11861_v22  ;;  %8777 = vmatprep.subr.bf16.mxu0 %v11805_v27  ;;  %v5331_v27 = vmul.f32 %v12744_v55, %v12744_v55  ;;  %v13451_v22 = vld [vmem:[#allocation28_spill] sm:$0xff] }
 0x5ef   :  { %9326 = vmatprep.subr.bf16.mxu1 %v13381_v10 }
 0x5f1   :  { %8778 = vmatpush3.bf16.msra.mxu0 %v11815_v62  ;;  %v13446_v62 = vld [vmem:[#allocation24_spill] sm:$0xff] }
 0x5f2   :  { %9327 = vmatpush3.bf16.msra.mxu1 %v11880_v43  ;;  %8779 = vmatprep.subr.bf16.mxu0 %v11828_v20  ;;  %v13447_v20 = vld [vmem:[#allocation20_spill] sm:$0xff]  ;;  %v13454_v43 = vld [vmem:[#allocation31_spill] sm:$0xff] }
 0x5f3   :  { %9328 = vmatprep.subr.bf16.mxu1 %v13381_v10 }
 0x5f5   :  { %8780 = vmatpush3.bf16.msra.mxu0 %v11834_v57  ;;  %v5346_v57 = vpack.c.bf16 %v5331_v27, %v5331_v27 }
 0x5f6   :  { %9329 = vmatpush3.bf16.msra.mxu1 %v11899_v49  ;;  %8781 = vmatprep.subr.bf16.mxu0 %v11846_v16  ;;  %v13449_v16 = vld [vmem:[#allocation26_spill] sm:$0xff]  ;;  %v13455_v49 = vld [vmem:[#allocation32_spill] sm:$0xff] }
 0x5f7   :  { %9330 = vmatprep.subr.bf16.mxu1 %v13381_v10 }
 0x5f9   :  { %8782 = vmatpush3.bf16.msra.mxu0 %v11855_v4  ;;  %v13450_v4 = vld [vmem:[#allocation27_spill] sm:$0xff] }
 0x5fa   :  { %9331 = vmatpush3.bf16.msra.mxu1 %v11908_v37  ;;  %8783 = vmatprep.subr.bf16.mxu0 %v11867_v32  ;;  %v13452_v32 = vld [vmem:[#allocation29_spill] sm:$0xff] }
 0x5fb   :  { %9332 = vmatprep.subr.bf16.mxu1 %v13381_v10  ;;  %v13456_v37 = vld [vmem:[#allocation33_spill] sm:$0xff] }
 0x5fd   :  { %8784 = vmatpush3.bf16.msra.mxu0 %v11874_v63  ;;  %v13453_v63 = vld [vmem:[#allocation30_spill] sm:$0xff] }
 0x5fe   :  { %9333 = vmatpush3.bf16.msra.mxu1 %v13444_v51  ;;  %8785 = vmatprep.subr.bf16.mxu0 %v13445_v31 }
 0x5ff   :  { %9334 = vmatprep.subr.bf16.mxu1 %v13381_v10 }
 0x601   :  { %8786 = vmatpush3.bf16.msra.mxu0 %v13446_v62 }
 0x602   :  { %9335 = vmatpush3.bf16.msra.mxu1 %v13447_v20  ;;  %5700 = vmatprep.subr.bf16.mxu0 %v11949_v17  ;;  %v13459_v17 = vld [vmem:[#allocation36_spill] sm:$0xff] }
 0x603   :  { %5741 = vmatprep.subr.bf16.mxu1 %v13448_v2 }
 0x604   :  { %5620 = vmatmul.mubr.bf16.vlgmr.msra.gmra.mxu0 %v5344_v14 }
 0x605   :  { %9337 = vmatmul.mubr.bf16.vlgmr.msra.gmra.mxu1 %v5346_v57  ;;  %5701 = vmatpush1.bf16.msra.mxu0 %v13449_v16 }
 0x606   :  { %5742 = vmatpush1.bf16.msra.mxu1 %v13450_v4  ;;  %5702 = vmatprep.subr.bf16.mxu0 %v13451_v22 }
 0x607   :  { %5743 = vmatprep.subr.bf16.mxu1 %v13452_v32  ;;  %5724 = vmatprep.mubr.bf16.mxu0 %v13386_v19 }
 0x608   :  { %5765 = vmatprep.mubr.bf16.mxu1 %v13386_v19 }
 0x609   :  { %5703 = vmatpush1.bf16.msra.mxu0 %v13453_v63 }
 0x60a   :  { %5744 = vmatpush1.bf16.msra.mxu1 %v13454_v43  ;;  %5704 = vmatprep.subr.bf16.mxu0 %v13455_v49 }
 0x60b   :  { %5745 = vmatprep.subr.bf16.mxu1 %v13456_v37 }
 0x60d   :  { %5705 = vmatpush1.bf16.msra.mxu0 %v13457_v50 }
 0x60e   :  { %5746 = vmatpush1.bf16.msra.mxu1 %v13458_v8  ;;  %5706 = vmatprep.subr.bf16.mxu0 %v13459_v17 }
 0x60f   :  { %5747 = vmatprep.subr.bf16.mxu1 %v13460_v21 }
 0x611   :  { %5707 = vmatpush1.bf16.msra.mxu0 %v13461_v11 }
 0x612   :  { %5748 = vmatpush1.bf16.msra.mxu1 %v13462_v33  ;;  %5782 = vmatprep.subr.bf16.mxu0 %v13463_v29 }
 0x613   :  { %5823 = vmatprep.subr.bf16.mxu1 %v13464_v13 }
 0x664   :  { %v8655_v48 = vpop.f32.mrf.mxu0  ;;  %v8677_v1 = vpop.f32.mrf.mxu1 }
 0x666   :  { %v8656_v39 = vpop.f32.mrf.mxu0  ;;  %v8678_v26 = vpop.f32.mrf.mxu1 }
 0x667   :  { %v8657_v41 = vadd.f32 %v8656_v39, %v8655_v48  ;;  %v8679_v40 = vadd.f32 %v8678_v26, %v8677_v1 }
 0x668   :  { %v8658_v5 = vpop.f32.mrf.mxu0  ;;  %v8680_v59 = vpop.f32.mrf.mxu1 }
 0x669   :  { %v5422_v12 = vadd.f32 %v8679_v40, %v8657_v41 }
 0x66a   :  { %v8659_v47 = vpop.f32.mrf.mxu0  ;;  %v8681_v35 = vpop.f32.mrf.mxu1 }
 0x684   :  { %v8699_v38 = vpop.f32.mrf.mxu0  ;;  %v8721_v25 = vpop.f32.mrf.mxu1 }
 0x686   :  { %v8700_v54 = vpop.f32.mrf.mxu0  ;;  %v8722_v51 = vpop.f32.mrf.mxu1 }
 0x687   :  { %v8701_v43 = vadd.f32 %v8700_v54, %v8699_v38  ;;  %v8723_v37 = vadd.f32 %v8722_v51, %v8721_v25 }
 0x688   :  { %v8702_v31 = vpop.f32.mrf.mxu0  ;;  %v8724_v27 = vpop.f32.mrf.mxu1 }
 0x689   :  { %v5462_v49 = vadd.f32 %v8701_v43, %v5422_v12  ;;  %v13478_v43 = vld [vmem:[#allocation55_spill] sm:$0xff] }
 0x68a   :  { %v8703_v62 = vpop.f32.mrf.mxu0  ;;  %v8725_v14 = vpop.f32.mrf.mxu1 }
 0x68b   :  { %v5502_v8 = vadd.f32 %v8723_v37, %v5462_v49  ;;  %v5675_v62 = vld [vmem:[%s13303_s9] sm:$0x1]  ;;  %v13479_v49 = vld [vmem:[#allocation56_spill] sm:$0xff]  ;;  %v13480_v37 = vld [vmem:[#allocation57_spill] sm:$0xff] }
 0x6a4   :  { %v8743_v20 = vpop.f32.mrf.mxu0 }
 0x6a5   :  { %v8765_v57 = vpop.f32.mrf.mxu1 }
 0x6a6   :  { %v8744_v2 = vpop.f32.mrf.mxu0 }
 0x6a7   :  { %v8766_v16 = vpop.f32.mrf.mxu1  ;;  %v8745_v50 = vadd.f32 %v8744_v2, %v8743_v20  ;;  %v7868_v20 = vld [vmem:[#allocation11] ss:$0 sm:$0xff] }
 0x6a8   :  { %v8746_v4 = vpop.f32.mrf.mxu0  ;;  %v8767_v11 = vadd.f32 %v8766_v16, %v8765_v57 }
 0x6a9   :  { %v8768_v22 = vpop.f32.mrf.mxu1  ;;  %v5542_v17 = vadd.f32 %v8745_v50, %v5502_v8  ;;  %v13469_v4 = vld [vmem:[#allocation46_spill] sm:$0xff]  ;;  %v13482_v8 = vld [vmem:[#allocation59_spill] sm:$0xff] }
 0x6aa   :  { %v8747_v32 = vpop.f32.mrf.mxu0  ;;  %v13470_v22 = vld [vmem:[#allocation47_spill] sm:$0xff]  ;;  %v13481_v50 = vld [vmem:[#allocation58_spill] sm:$0xff] }
 0x6ab   :  { %v8769_v63 = vpop.f32.mrf.mxu1  ;;  %v5582_v13 = vadd.f32 %v8767_v11, %v5542_v17  ;;  %v13476_v32 = vld [vmem:[#allocation53_spill] sm:$0xff]  ;;  %v13483_v17 = vld [vmem:[#allocation60_spill] sm:$0xff]  ;;  %v13485_v11 = vld [vmem:[#allocation62_spill] sm:$0xff] }
 0x6ac   :  { %v13477_v63 = vld [vmem:[#allocation54_spill] sm:$0xff] }
 0x6c4   :  { %v8787_v21 = vpop.f32.mrf.mxu0 }
 0x6c5   :  { %v5661_v33 = vpop.f32.mrf.mxu1 }
 0x6c6   :  { %v8788_v29 = vpop.f32.mrf.mxu0 }
 0x6c7   :  { %v8789_v48 = vadd.f32 %v8788_v29, %v8787_v21  ;;  %v9338_v1 = vpop.f32.mrf.mxu1  ;;  %v13484_v21 = vld [vmem:[#allocation61_spill] sm:$0xff]  ;;  %v13487_v29 = vld [vmem:[#allocation64_spill] sm:$0xff] }
 0x6c8   :  { %v8790_v39 = vpop.f32.mrf.mxu0  ;;  %v13490_v1 = vld [vmem:[#allocation67_spill] sm:$0xff] }
 0x6c9   :  { %v5622_v26 = vadd.f32 %v8789_v48, %v5582_v13  ;;  %v5664_v41 = vpop.f32.mrf.mxu1  ;;  %v13488_v13 = vld [vmem:[#allocation65_spill] sm:$0xff]  ;;  %v13489_v48 = vld [vmem:[#allocation66_spill] sm:$0xff]  ;;  %v13491_v39 = vld [vmem:[#allocation68_spill] sm:$0xff] }
 0x6ca   :  { %v8791_v40 = vpop.f32.mrf.mxu0  ;;  %v13493_v41 = vld [vmem:[#allocation70_spill] sm:$0xff] }
 0x6cb   :  { %v5662_v5 = vadd.f32 %v5661_v33, %v5622_v26  ;;  %v9339_v59 = vpop.f32.mrf.mxu1  ;;  %v13486_v33 = vld [vmem:[#allocation63_spill] sm:$0xff]  ;;  %v13492_v26 = vld [vmem:[#allocation69_spill] sm:$0xff] }
 0x6cc   :  { %v13494_v40 = vld [vmem:[#allocation71_spill] sm:$0xff] }
 0x6cd   :  { %v5667_v47 = vsel %vm4533_vm4, %v5662_v5, 0.0  ;;  %v13495_v5 = vld [vmem:[#allocation72_spill] sm:$0xff]  ;;  %v9767_v59 = vld [vmem:[%s13305_s11 + $0xf8] sm:$0xff]  }
 0x6ce   :  { %v5668_v12 = vrot.slane %v5667_v47, 4 }
 0x6d0   :  { %v5669_v35 = vadd.f32 %v5668_v12, %v5667_v47  ;;  %v13496_v47 = vld [vmem:[#allocation73_spill] sm:$0xff]  ;;  %v13497_v12 = vld [vmem:[#allocation74_spill] sm:$0xff] }
 0x6d2   :  { %v5670_v38 = vrot.slane %v5669_v35, 2 }
 0x6d4   :  { %v5671_v25 = vadd.f32 %v5670_v38, %v5669_v35  ;;  %v9768_v35 = vld [vmem:[%s13305_s11 + $0x38] sm:$0xff]  }
 0x6d5   :  { %v9769_v38 = vld [vmem:[%s13305_s11 + $0xb8] sm:$0xff]  }
 0x6d6   :  { %v5672_v54 = vrot.slane %v5671_v25, 1 }
 0x6d8   :  { %v5673_v51 = vadd.f32 %v5672_v54, %v5671_v25  ;;  %v9770_v25 = vld [vmem:[%s13305_s11 + $0x70] sm:$0xff]  }
 0x6d9   :  { %v9771_v54 = vld [vmem:[%s13305_s11 + $0xf0] sm:$0xff]  }
 0x6da   :  { %v5674_v31 = vmul.f32 0.008333334, %v5673_v51  ;;  %v9772_v51 = vld [vmem:[%s13305_s11 + $0x30] sm:$0xff]  }
 0x6dc   :  { %v5676_v27 = vadd.f32 1e-05, %v5674_v31  ;;  %v9773_v31 = vld [vmem:[%s13305_s11 + $0xb0] sm:$0xff]  }
 0x6de   :  { %9916 = vrsqrt.f32 %v5676_v27  ;;  %v9774_v27 = vld [vmem:[%s13305_s11 + $0x68] sm:$0xff]  }
 0x6eb   :  { %v9917_v14 = vpop.eup %9916 }
 0x6ec   :  { %v5678_v57 = vmul.f32 %v9917_v14, %v5675_v62  ;;  %v9775_v62 = vld [vmem:[%s13305_s11 + $0xe8] sm:$0xff]  }
 0x6ed   :  { %v9776_v14 = vld [vmem:[%s13305_s11 + $0x28] sm:$0xff]  }
 0x6ee   :  { %v5687_v2 = vsel %vm5686_vm6, %v5678_v57, %v7868_v20  ;;  %v9777_v20 = vld [vmem:[%s13305_s11 + $0xa8] sm:$0xff]   ;;  %v9778_v57 = vld [vmem:[%s13305_s11 + $0x60] sm:$0xff]  }
 0x6ef   :  { %v12781_v16 = vpack.c.bf16 %v5687_v2, %v5687_v2  ;;  %v9779_v2 = vld [vmem:[%s13305_s11 + $0xe0] sm:$0xff]  }
 0x6f1   :  { %7869 = vmatmul.mubr.msk.bf16.vlgmr.msra.gmra.mxu0 %vm4911_vm5, %v12781_v16  ;;  %7870 = vmatmul.mubr.msk.bf16.vlgmr.msra.gmra.mxu1 %vm4911_vm5, %v12781_v16 }
 0x6f2   :  { %5783 = vmatpush1.bf16.msra.mxu0 %v12058_v0  ;;  %5824 = vmatpush1.bf16.msra.mxu1 %v12063_v46  ;;  %v13465_v0 = vld [vmem:[#allocation42_spill] sm:$0xff]  ;;  %v13466_v46 = vld [vmem:[#allocation43_spill] sm:$0xff] }
 0x6f3   :  { %5784 = vmatprep.subr.bf16.mxu0 %v12070_v7  ;;  %5825 = vmatprep.subr.bf16.mxu1 %v12075_v45  ;;  %v13467_v7 = vld [vmem:[#allocation44_spill] sm:$0xff]  ;;  %v13468_v45 = vld [vmem:[#allocation45_spill] sm:$0xff] }
 0x6f4   :  { %5806 = vmatprep.mubr.bf16.mxu0 %v13386_v19  ;;  %5847 = vmatprep.mubr.bf16.mxu1 %v13386_v19 }
 0x6f6   :  { %5785 = vmatpush1.bf16.msra.mxu0 %v12086_v61  ;;  %5826 = vmatpush1.bf16.msra.mxu1 %v12091_v28  ;;  %v13471_v61 = vld [vmem:[#allocation48_spill] sm:$0xff]  ;;  %v13472_v28 = vld [vmem:[#allocation49_spill] sm:$0xff] }
 0x6f7   :  { %5786 = vmatprep.subr.bf16.mxu0 %v12098_v60  ;;  %5827 = vmatprep.subr.bf16.mxu1 %v12103_v18  ;;  %v13473_v60 = vld [vmem:[#allocation50_spill] sm:$0xff]  ;;  %v13474_v18 = vld [vmem:[#allocation51_spill] sm:$0xff] }
 0x6fa   :  { %5787 = vmatpush1.bf16.msra.mxu0 %v12112_v52  ;;  %5828 = vmatpush1.bf16.msra.mxu1 %v13465_v0  ;;  %v13475_v52 = vld [vmem:[#allocation52_spill] sm:$0xff] }
 0x6fb   :  { %5788 = vmatprep.subr.bf16.mxu0 %v13466_v46  ;;  %5829 = vmatprep.subr.bf16.mxu1 %v13467_v7  ;;  %v9781_v0 = vld [vmem:[%s13305_s11 + $0xa0] sm:$0xff]   ;;  %v9782_v46 = vld [vmem:[%s13305_s11 + $0x58] sm:$0xff]  }
 0x6fc   :  { %v9783_v7 = vld [vmem:[%s13305_s11 + $0xd8] sm:$0xff]  }
 0x6fe   :  { %5789 = vmatpush1.bf16.msra.mxu0 %v13468_v45  ;;  %5830 = vmatpush1.bf16.msra.mxu1 %v13469_v4  ;;  %v9784_v45 = vld [vmem:[%s13305_s11 + $0x18] sm:$0xff]  }
 0x6ff   :  { %5864 = vmatprep.subr.bf16.mxu0 %v13470_v22  ;;  %5905 = vmatprep.subr.bf16.mxu1 %v13471_v61  ;;  %v9785_v4 = vld [vmem:[%s13305_s11 + $0x98] sm:$0xff]   ;;  %v9786_v22 = vld [vmem:[%s13305_s11 + $0x50] sm:$0xff]  }
 0x700   :  { %v9787_v61 = vld [vmem:[%s13305_s11 + $0xd0] sm:$0xff]  }
 0x701   :  { %7871 = vmatmul.mubr.msk.bf16.vlgmr.msra.gmra.mxu0 %vm4911_vm5, %v12781_v16  ;;  %7872 = vmatmul.mubr.msk.bf16.vlgmr.msra.gmra.mxu1 %vm4911_vm5, %v12781_v16 }
 0x702   :  { %5865 = vmatpush1.bf16.msra.mxu0 %v13472_v28  ;;  %5906 = vmatpush1.bf16.msra.mxu1 %v13473_v60  ;;  %v9788_v28 = vld [vmem:[%s13305_s11 + $0x10] sm:$0xff]  }
 0x703   :  { %5866 = vmatprep.subr.bf16.mxu0 %v13474_v18  ;;  %5907 = vmatprep.subr.bf16.mxu1 %v13475_v52  ;;  %v9789_v60 = vld [vmem:[%s13305_s11 + $0x90] sm:$0xff]   ;;  %v9790_v18 = vld [vmem:[%s13305_s11 + $0x48] sm:$0xff]  }
 0x704   :  { %5888 = vmatprep.mubr.bf16.mxu0 %v13386_v19  ;;  %5929 = vmatprep.mubr.bf16.mxu1 %v13386_v19  ;;  %v9791_v52 = vld [vmem:[%s13305_s11 + $0xc8] sm:$0xff]  }
 0x706   :  { %5867 = vmatpush1.bf16.msra.mxu0 %v13476_v32  ;;  %5908 = vmatpush1.bf16.msra.mxu1 %v13477_v63  ;;  %v9792_v32 = vld [vmem:[%s13305_s11 + $0x8] sm:$0xff]  }
 0x707   :  { %5868 = vmatprep.subr.bf16.mxu0 %v13478_v43  ;;  %5909 = vmatprep.subr.bf16.mxu1 %v13479_v49  ;;  %v9793_v63 = vld [vmem:[%s13305_s11 + $0x88] sm:$0xff]   ;;  %v9794_v43 = vld [vmem:[%s13305_s11 + $0x40] sm:$0xff]  }
 0x708   :  { %v9795_v49 = vld [vmem:[%s13305_s11 + $0xc0] sm:$0xff]  }
 0x70a   :  { %5869 = vmatpush1.bf16.msra.mxu0 %v13480_v37  ;;  %5910 = vmatpush1.bf16.msra.mxu1 %v13481_v50  ;;  %v9796_v37 = vld [vmem:[%s13305_s11] sm:$0xff]  }
 0x70b   :  { %5870 = vmatprep.subr.bf16.mxu0 %v13482_v8  ;;  %5911 = vmatprep.subr.bf16.mxu1 %v13483_v17  ;;  %v9797_v50 = vld [vmem:[%s13305_s11 + $0x80] sm:$0xff]   ;;  %v9798_v8 = vld [vmem:[%s13305_s11 + $0x178] sm:$0xff]  }
 0x70c   :  { %v9799_v17 = vld [vmem:[%s13305_s11 + $0x1f8] sm:$0xff]  }
 0x70e   :  { %5871 = vmatpush1.bf16.msra.mxu0 %v13484_v21  ;;  %5912 = vmatpush1.bf16.msra.mxu1 %v13485_v11 }
 0x70f   :  { %5946 = vmatprep.subr.bf16.mxu0 %v13486_v33  ;;  %9340 = vmatprep.subr.bf16.mxu1 %v13381_v10 }
 0x711   :  { %7873 = vmatmul.mubr.msk.bf16.vlgmr.msra.gmra.mxu0 %vm4911_vm5, %v12781_v16  ;;  %7874 = vmatmul.mubr.msk.bf16.vlgmr.msra.gmra.mxu1 %vm4911_vm5, %v12781_v16 }
 0x712   :  { %5947 = vmatpush1.bf16.msra.mxu0 %v13487_v29  ;;  %9341 = vmatpush3.bf16.msra.mxu1 %v13488_v13  ;;  %v13498_v13 = vld [vmem:[#allocation21_spill] sm:$0xff] }
 0x713   :  { %5948 = vmatprep.subr.bf16.mxu0 %v13489_v48  ;;  %9342 = vmatprep.subr.bf16.mxu1 %v13381_v10 }
 0x714   :  { %5970 = vmatprep.mubr.bf16.mxu0 %v13386_v19  ;;  %9348 = vmatprep.mubr.msk.bf16.mxu1 %vm10244_vm2, %v13381_v10  ;;  %v9766_v19 = vld [vmem:[%s13305_s11 + $0x78] sm:$0xff]  }
 0x716   :  { %5949 = vmatpush1.bf16.msra.mxu0 %v13490_v1  ;;  %9343 = vmatpush3.bf16.msra.mxu1 %v13491_v39 }
 0x717   :  { %5950 = vmatprep.subr.bf16.mxu0 %v13492_v26  ;;  %9344 = vmatprep.subr.bf16.mxu1 %v13381_v10 }
 0x71a   :  { %5951 = vmatpush1.bf16.msra.mxu0 %v13493_v41  ;;  %9345 = vmatpush3.bf16.msra.mxu1 %v13494_v40 }
 0x71b   :  { %5952 = vmatprep.subr.bf16.mxu0 %v13495_v5  ;;  %9346 = vmatprep.subr.bf16.mxu1 %v13381_v10 }
 0x71e   :  { %5953 = vmatpush1.bf16.msra.mxu0 %v13496_v47  ;;  %9347 = vmatpush3.bf16.msra.mxu1 %v13497_v12 }
 0x71f   :  { %8807 = vmatprep.subr.bf16.mxu0 %v9766_v19  ;;  %8829 = vmatprep.subr.bf16.mxu1 %v9767_v59 }
 0x721   :  { %7875 = vmatmul.mubr.msk.bf16.vlgmr.msra.gmra.mxu0 %vm4911_vm5, %v12781_v16  ;;  %9349 = vmatmul.mubr.msk.bf16.vlgmr.msra.gmra.mxu1 %vm4911_vm5, %v12781_v16  ;;  %v9780_v16 = vld [vmem:[%s13305_s11 + $0x20] sm:$0xff]  }
 0x722   :  { %8808 = vmatpush3.bf16.msra.mxu0 %v9768_v35  ;;  %8830 = vmatpush3.bf16.msra.mxu1 %v9769_v38 }
 0x723   :  { %8809 = vmatprep.subr.bf16.mxu0 %v9770_v25  ;;  %8831 = vmatprep.subr.bf16.mxu1 %v9771_v54 }
 0x726   :  { %8810 = vmatpush3.bf16.msra.mxu0 %v9772_v51  ;;  %8832 = vmatpush3.bf16.msra.mxu1 %v9773_v31 }
 0x727   :  { %8811 = vmatprep.subr.bf16.mxu0 %v9774_v27  ;;  %8833 = vmatprep.subr.bf16.mxu1 %v9775_v62 }
 0x72a   :  { %8812 = vmatpush3.bf16.msra.mxu0 %v9776_v14  ;;  %8834 = vmatpush3.bf16.msra.mxu1 %v9777_v20 }
 0x72b   :  { %8813 = vmatprep.subr.bf16.mxu0 %v9778_v57  ;;  %8835 = vmatprep.subr.bf16.mxu1 %v9779_v2 }
 0x72e   :  { %8814 = vmatpush3.bf16.msra.mxu0 %v9780_v16  ;;  %8836 = vmatpush3.bf16.msra.mxu1 %v9781_v0 }
 0x72f   :  { %8815 = vmatprep.subr.bf16.mxu0 %v9782_v46  ;;  %8837 = vmatprep.subr.bf16.mxu1 %v9783_v7  ;;  %v9800_v7 = vld [vmem:[%s13305_s11 + $0x138] sm:$0xff]  }
 0x732   :  { %8816 = vmatpush3.bf16.msra.mxu0 %v9784_v45  ;;  %8838 = vmatpush3.bf16.msra.mxu1 %v9785_v4 }
 0x733   :  { %8817 = vmatprep.subr.bf16.mxu0 %v9786_v22  ;;  %8839 = vmatprep.subr.bf16.mxu1 %v9787_v61  ;;  %v9801_v22 = vld [vmem:[%s13305_s11 + $0x1b8] sm:$0xff]   ;;  %v9802_v61 = vld [vmem:[%s13305_s11 + $0x170] sm:$0xff]  }
 0x736   :  { %8818 = vmatpush3.bf16.msra.mxu0 %v9788_v28  ;;  %8840 = vmatpush3.bf16.msra.mxu1 %v9789_v60  ;;  %v9803_v28 = vld [vmem:[%s13305_s11 + $0x1f0] sm:$0xff]  }
 0x737   :  { %8819 = vmatprep.subr.bf16.mxu0 %v9790_v18  ;;  %8841 = vmatprep.subr.bf16.mxu1 %v9791_v52  ;;  %v9804_v52 = vld [vmem:[%s13305_s11 + $0x130] sm:$0xff]  }
 0x73a   :  { %8820 = vmatpush3.bf16.msra.mxu0 %v9792_v32  ;;  %8842 = vmatpush3.bf16.msra.mxu1 %v9793_v63 }
 0x73b   :  { %8821 = vmatprep.subr.bf16.mxu0 %v9794_v43  ;;  %8843 = vmatprep.subr.bf16.mxu1 %v9795_v49  ;;  %v9805_v43 = vld [vmem:[%s13305_s11 + $0x1b0] sm:$0xff]   ;;  %v9806_v49 = vld [vmem:[%s13305_s11 + $0x168] sm:$0xff]  }
 0x73e   :  { %8822 = vmatpush3.bf16.msra.mxu0 %v9796_v37  ;;  %8844 = vmatpush3.bf16.msra.mxu1 %v9797_v50  ;;  %v9807_v50 = vld [vmem:[%s13305_s11 + $0x1e8] sm:$0xff]  }
 0x73f   :  { %8851 = vmatprep.subr.bf16.mxu0 %v9798_v8  ;;  %8873 = vmatprep.subr.bf16.mxu1 %v9799_v17 }
 0x7b1   :  { %v5726_v21 = vpop.f32.mrf.mxu0  ;;  %v5767_v11 = vpop.f32.mrf.mxu1 }
 0x7b2   :  { %v6022_v33 = vrot.slane %v5726_v21, %v10400_v24  ;;  %v6030_v29 = vrot.slane %v5767_v11, %v10400_v24  ;;  %v6097_v48 = vrot.slane %v5726_v21, %v13498_v13  ;;  %v6105_v40 = vrot.slane %v5767_v11, %v13498_v13 }
 0x7b3   :  { %v5728_v1 = vpop.f32.mrf.mxu0  ;;  %v5769_v39 = vpop.f32.mrf.mxu1 }
 0x7b4   :  { %v6079_v26 = vmul.f32 %v6022_v33, %v12441_v9  ;;  %v6081_v41 = vmul.f32 %v6030_v29, %v12444_v3  ;;  %v6026_v5 = vrot.slane %v5728_v1, %v10400_v24  ;;  %v6034_v19 = vrot.slane %v5769_v39, %v10400_v24  ;;  %v9808_v33 = vld [vmem:[%s13305_s11 + $0x128] sm:$0xff]  }
 0x7b5   :  { %v5730_v59 = vpop.f32.mrf.mxu0  ;;  %v5771_v47 = vpop.f32.mrf.mxu1  ;;  %v6101_v25 = vrot.slane %v5728_v1, %v13498_v13  ;;  %v6109_v9 = vrot.slane %v5769_v39, %v13498_v13 }
 0x7b6   :  { %v6154_v12 = vadd.f32 %v6097_v48, %v6079_v26  ;;  %v6156_v35 = vadd.f32 %v6105_v40, %v6081_v41  ;;  %v6080_v38 = vmul.f32 %v6026_v5, %v12449_v56  ;;  %v6082_v54 = vmul.f32 %v6034_v19, %v12452_v36  ;;  %v13499_v48 = vld [vmem:[#allocation75_spill] sm:$0xff]  ;;  %v9809_v40 = vld [vmem:[%s13305_s11 + $0x1a8] sm:$0xff]  }
 0x7b7   :  { %v5731_v51 = vpop.f32.mrf.mxu0  ;;  %v5772_v3 = vpop.f32.mrf.mxu1  ;;  %v9811_v5 = vld [vmem:[%s13305_s11 + $0x1e0] sm:$0xff]  }
 0x7b8   :  { %v6184_v31 = vmul.f32 0.2, %v6154_v12  ;;  %v6186_v27 = vmul.f32 0.2, %v6156_v35  ;;  %vm6169_vm7 = vcmp.gt.f32.partialorder %v6154_v12, 0.0  ;;  %vm6171_vm8 = vcmp.gt.f32.partialorder %v6156_v35, 0.0 }
 0x7b9   :  { %v6155_v62 = vadd.f32 %v6101_v25, %v6080_v38  ;;  %v6157_v14 = vadd.f32 %v6109_v9, %v6082_v54  ;;  %v9812_v47 = vld [vmem:[%s13305_s11 + $0x120] sm:$0xff]   ;;  %v9814_v25 = vld [vmem:[%s13305_s11 + $0x158] sm:$0xff]  }
 0x7ba   :  { %v6199_v2 = vsel %vm6169_vm7, %v6154_v12, %v6184_v31  ;;  %v6201_v16 = vsel %vm6171_vm8, %v6156_v35, %v6186_v27  ;;  %v9813_v38 = vld [vmem:[%s13305_s11 + $0x1a0] sm:$0xff]   ;;  %v9815_v31 = vld [vmem:[%s13305_s11 + $0x1d8] sm:$0xff]  }
 0x7bb   :  { %v6185_v20 = vmul.f32 0.2, %v6155_v62  ;;  %v6187_v57 = vmul.f32 0.2, %v6157_v14  ;;  %vm6170_vm9 = vcmp.gt.f32.partialorder %v6155_v62, 0.0  ;;  %vm6172_vm10 = vcmp.gt.f32.partialorder %v6157_v14, 0.0 }
 0x7bc   :  { %v6214_v45 = vpack.c.bf16 %v6199_v2, %v6199_v2  ;;  %v6216_v4 = vpack.c.bf16 %v6201_v16, %v6201_v16  ;;  %v9819_v16 = vld [vmem:[%s13305_s11 + $0x1d0] sm:$0xff]  }
 0x7bd   :  { %v6200_v56 = vsel %vm6170_vm9, %v6155_v62, %v6185_v20  ;;  %v6202_v0 = vsel %vm6172_vm10, %v6157_v14, %v6187_v57  ;;  %v9816_v14 = vld [vmem:[%s13305_s11 + $0x118] sm:$0xff]   ;;  %v9818_v57 = vld [vmem:[%s13305_s11 + $0x150] sm:$0xff]  }
 0x7be   :  { %v6215_v46 = vpack.c.bf16 %v6200_v56, %v6200_v56  ;;  %v6217_v36 = vpack.c.bf16 %v6202_v0, %v6202_v0  ;;  %v9817_v20 = vld [vmem:[%s13305_s11 + $0x198] sm:$0xff]  }
 0x7c0   :  { %7228 = vmatprep.mubr.bf16.mxu0 %v6215_v46  ;;  %7268 = vmatprep.mubr.bf16.mxu1 %v6217_v36 }
 0x7c1   :  { %v12978_v60 = vpop.f32.mrf.mxu0  ;;  %v12980_v18 = vpop.f32.mrf.mxu1  ;;  %7229 = vmatmul.mubr.bf16.vlgmr.msra.gmra.mxu0 %v6214_v45  ;;  %7269 = vmatmul.mubr.bf16.vlgmr.msra.gmra.mxu1 %v6216_v4 }
 0x7c2   :  { %8852 = vmatpush3.bf16.msra.mxu0 %v9800_v7  ;;  %8874 = vmatpush3.bf16.msra.mxu1 %v9801_v22  ;;  %v6038_v54 = vrot.slane %v12978_v60, %v10400_v24  ;;  %v6046_v9 = vrot.slane %v12980_v18, %v10400_v24  ;;  %v6113_v36 = vrot.slane %v12978_v60, %v13498_v13  ;;  %v9822_v22 = vld [vmem:[%s13305_s11 + $0x148] sm:$0xff]  }
 0x7c3   :  { %v5810_v32 = vpop.f32.mrf.mxu0  ;;  %v5851_v63 = vpop.f32.mrf.mxu1  ;;  %8853 = vmatprep.subr.bf16.mxu0 %v9802_v61  ;;  %8875 = vmatprep.subr.bf16.mxu1 %v9803_v28  ;;  %v6121_v7 = vrot.slane %v12980_v18, %v13498_v13  ;;  %v9823_v60 = vld [vmem:[%s13305_s11 + $0x1c8] sm:$0xff]  }
 0x7c4   :  { %v6042_v37 = vrot.slane %v5810_v32, %v10400_v24  ;;  %v6050_v8 = vrot.slane %v5851_v63, %v10400_v24  ;;  %v6117_v29 = vrot.slane %v5810_v32, %v13498_v13  ;;  %v6125_v39 = vrot.slane %v5851_v63, %v13498_v13 }
 0x7c5   :  { %v5812_v17 = vpop.f32.mrf.mxu0  ;;  %v5853_v21 = vpop.f32.mrf.mxu1  ;;  %v6083_v2 = vmul.f32 %v6038_v54, %v12547_v34  ;;  %v6085_v56 = vmul.f32 %v6046_v9, %v12556_v15  ;;  %v9820_v34 = vld [vmem:[%s13305_s11 + $0x110] sm:$0xff]   ;;  %v9833_v54 = vld [vmem:[%s13305_s11 + $0x2b8] sm:$0xff]  }
 0x7c6   :  { %v6084_v11 = vmul.f32 %v6042_v37, %v12491_v30  ;;  %8854 = vmatpush3.bf16.msra.mxu0 %v9804_v52  ;;  %v6086_v1 = vmul.f32 %v6050_v8, %v13499_v48  ;;  %8876 = vmatpush3.bf16.msra.mxu1 %v9805_v43  ;;  %v9810_v30 = vld [vmem:[%s13305_s11 + $0x160] sm:$0xff]   ;;  %v9821_v15 = vld [vmem:[%s13305_s11 + $0x190] sm:$0xff]  }
 0x7c7   :  { %v5813_v26 = vpop.f32.mrf.mxu0  ;;  %v5854_v41 = vpop.f32.mrf.mxu1  ;;  %8855 = vmatprep.subr.bf16.mxu0 %v9806_v49  ;;  %8877 = vmatprep.subr.bf16.mxu1 %v9807_v50  ;;  %v6158_v61 = vadd.f32 %v6113_v36, %v6083_v2  ;;  %v6160_v18 = vadd.f32 %v6121_v7, %v6085_v56  ;;  %v9824_v49 = vld [vmem:[%s13305_s11 + $0x108] sm:$0xff]   ;;  %v9837_v2 = vld [vmem:[%s13305_s11 + $0x2b0] sm:$0xff]  }
 0x7c8   :  { %v6159_v19 = vadd.f32 %v6117_v29, %v6084_v11  ;;  %v6161_v59 = vadd.f32 %v6125_v39, %v6086_v1  ;;  %v9825_v11 = vld [vmem:[%s13305_s11 + $0x188] sm:$0xff]   ;;  %v9828_v39 = vld [vmem:[%s13305_s11 + $0x100] sm:$0xff]  }
 0x7c9   :  { %vm6173_vm13 = vcmp.gt.f32.partialorder %v6158_v61, 0.0  ;;  %v6190_v29 = vmul.f32 0.2, %v6160_v18  ;;  %vm6175_vm14 = vcmp.gt.f32.partialorder %v6160_v18, 0.0 }
 0x7ca   :  { %8856 = vmatpush3.bf16.msra.mxu0 %v9808_v33  ;;  %v6189_v12 = vmul.f32 0.2, %v6159_v19  ;;  %v6191_v35 = vmul.f32 0.2, %v6161_v59  ;;  %8878 = vmatpush3.bf16.msra.mxu1 %v9809_v40  ;;  %vm6174_vm11 = vcmp.gt.f32.partialorder %v6159_v19, 0.0  ;;  %vm6176_vm12 = vcmp.gt.f32.partialorder %v6161_v59, 0.0 }
 0x7cb   :  { %8857 = vmatprep.subr.bf16.mxu0 %v9810_v30  ;;  %8879 = vmatprep.subr.bf16.mxu1 %v9811_v5  ;;  %v6188_v33 = vmul.f32 0.2, %v6158_v61  ;;  %v9829_v40 = vld [vmem:[%s13305_s11 + $0x180] sm:$0xff]   ;;  %v9830_v30 = vld [vmem:[%s13305_s11 + $0x278] sm:$0xff]  }
 0x7cc   :  { %v6204_v51 = vsel %vm6174_vm11, %v6159_v19, %v6189_v12  ;;  %v6206_v3 = vsel %vm6176_vm12, %v6161_v59, %v6191_v35  ;;  %v9831_v19 = vld [vmem:[%s13305_s11 + $0x2f8] sm:$0xff]   ;;  %v6205_v59 = vsel %vm6175_vm14, %v6160_v18, %v6190_v29  ;;  %v9855_v29 = vld [vmem:[%s13305_s11 + $0x2c8] sm:$0xff]  }
 0x7cd   :  { %v6219_v27 = vpack.c.bf16 %v6204_v51, %v6204_v51  ;;  %v6221_v62 = vpack.c.bf16 %v6206_v3, %v6206_v3  ;;  %v6203_v5 = vsel %vm6173_vm13, %v6158_v61, %v6188_v33  ;;  %v9832_v35 = vld [vmem:[%s13305_s11 + $0x238] sm:$0xff]   ;;  %v9843_v61 = vld [vmem:[%s13305_s11 + $0x2e0] sm:$0xff]   ;;  %v9852_v33 = vld [vmem:[%s13305_s11 + $0x210] sm:$0xff]  }
 0x7ce   :  { %8858 = vmatpush3.bf16.msra.mxu0 %v9812_v47  ;;  %8880 = vmatpush3.bf16.msra.mxu1 %v9813_v38  ;;  %v6218_v12 = vpack.c.bf16 %v6203_v5, %v6203_v5  ;;  %v9846_v18 = vld [vmem:[%s13305_s11 + $0x258] sm:$0xff]  }
 0x7cf   :  { %8859 = vmatprep.subr.bf16.mxu0 %v9814_v25  ;;  %7308 = vmatprep.mubr.bf16.mxu0 %v6219_v27  ;;  %v6220_v25 = vpack.c.bf16 %v6205_v59, %v6205_v59  ;;  %v9835_v27 = vld [vmem:[%s13305_s11 + $0x2f0] sm:$0xff]   ;;  %v9861_v59 = vld [vmem:[%s13305_s11 + $0x280] sm:$0xff]  }
 0x7d0   :  { %7348 = vmatprep.mubr.bf16.mxu1 %v6221_v62  ;;  %8881 = vmatprep.subr.bf16.mxu1 %v9815_v31  ;;  %v9834_v31 = vld [vmem:[%s13305_s11 + $0x270] sm:$0xff]  }
 0x7d1   :  { %v13042_v0 = vpop.f32.mrf.mxu0  ;;  %v13044_v46 = vpop.f32.mrf.mxu1 }
 0x7d2   :  { %8860 = vmatpush3.bf16.msra.mxu0 %v9816_v14  ;;  %8882 = vmatpush3.bf16.msra.mxu1 %v9817_v20 }
 0x7d3   :  { %v5892_v45 = vpop.f32.mrf.mxu0  ;;  %v5933_v4 = vpop.f32.mrf.mxu1  ;;  %8861 = vmatprep.subr.bf16.mxu0 %v9818_v57  ;;  %8883 = vmatprep.subr.bf16.mxu1 %v9819_v16  ;;  %v9836_v57 = vld [vmem:[%s13305_s11 + $0x230] sm:$0xff]   ;;  %v9838_v16 = vld [vmem:[%s13305_s11 + $0x268] sm:$0xff]  }
 0x7d4   :  { %v6058_v28 = vrot.slane %v5892_v45, %v10400_v24  ;;  %v6066_v52 = vrot.slane %v5933_v4, %v10400_v24  ;;  %v6133_v37 = vrot.slane %v5892_v45, %v13498_v13  ;;  %v6141_v8 = vrot.slane %v5933_v4, %v13498_v13  ;;  %v9840_v4 = vld [vmem:[%s13305_s11 + $0x228] sm:$0xff]  }
 0x7d5   :  { %v5894_v32 = vpop.f32.mrf.mxu0  ;;  %v5935_v63 = vpop.f32.mrf.mxu1 }
 0x7d6   :  { %v6088_v43 = vmul.f32 %v6058_v28, %v12564_v23  ;;  %8862 = vmatpush3.bf16.msra.mxu0 %v9820_v34  ;;  %v6090_v50 = vmul.f32 %v6066_v52, %v12567_v42  ;;  %8884 = vmatpush3.bf16.msra.mxu1 %v9821_v15  ;;  %v9826_v23 = vld [vmem:[%s13305_s11 + $0x140] sm:$0xff]   ;;  %v9839_v34 = vld [vmem:[%s13305_s11 + $0x2e8] sm:$0xff]   ;;  %v6054_v52 = vrot.slane %v13042_v0, %v10400_v24  ;;  %v9847_v32 = vld [vmem:[%s13305_s11 + $0x2d8] sm:$0xff]  }
 0x7d7   :  { %v5895_v17 = vpop.f32.mrf.mxu0  ;;  %v5936_v21 = vpop.f32.mrf.mxu1  ;;  %8863 = vmatprep.subr.bf16.mxu0 %v9822_v22  ;;  %8885 = vmatprep.subr.bf16.mxu1 %v9823_v60  ;;  %v9827_v42 = vld [vmem:[%s13305_s11 + $0x1c0] sm:$0xff]   ;;  %v9841_v15 = vld [vmem:[%s13305_s11 + $0x2a8] sm:$0xff]   ;;  %v6062_v63 = vrot.slane %v13044_v46, %v10400_v24 }
 0x7d8   :  { %v6163_v48 = vadd.f32 %v6133_v37, %v6088_v43  ;;  %v6165_v1 = vadd.f32 %v6141_v8, %v6090_v50  ;;  %v9842_v22 = vld [vmem:[%s13305_s11 + $0x260] sm:$0xff]   ;;  %v9849_v37 = vld [vmem:[%s13305_s11 + $0x298] sm:$0xff]   ;;  %v9850_v50 = vld [vmem:[%s13305_s11 + $0x250] sm:$0xff]   ;;  %v6087_v8 = vmul.f32 %v6054_v52, %v12674_v6  ;;  %v6137_v6 = vrot.slane %v13044_v46, %v13498_v13 }
 0x7d9   :  { %v9844_v28 = vld [vmem:[%s13305_s11 + $0x220] sm:$0xff]   ;;  %v9851_v17 = vld [vmem:[%s13305_s11 + $0x2d0] sm:$0xff]   ;;  %v6089_v21 = vmul.f32 %v6062_v63, %v12683_v58  ;;  %v9854_v58 = vld [vmem:[%s13305_s11 + $0x248] sm:$0xff]  }
 0x7da   :  { %8864 = vmatpush3.bf16.msra.mxu0 %v9824_v49  ;;  %v6193_v26 = vmul.f32 0.2, %v6163_v48  ;;  %v6195_v41 = vmul.f32 0.2, %v6165_v1  ;;  %8886 = vmatpush3.bf16.msra.mxu1 %v9825_v11  ;;  %vm6178_vm15 = vcmp.gt.f32.partialorder %v6163_v48, 0.0  ;;  %vm6180_vm0 = vcmp.gt.f32.partialorder %v6165_v1, 0.0 }
 0x7db   :  { %8865 = vmatprep.subr.bf16.mxu0 %v9826_v23  ;;  %8887 = vmatprep.subr.bf16.mxu1 %v9827_v42  ;;  %v9845_v60 = vld [vmem:[%s13305_s11 + $0x2a0] sm:$0xff]   ;;  %v9848_v49 = vld [vmem:[%s13305_s11 + $0x218] sm:$0xff]   ;;  %v6129_v11 = vrot.slane %v13042_v0, %v13498_v13  ;;  %v9853_v42 = vld [vmem:[%s13305_s11 + $0x290] sm:$0xff]  }
 0x7dc   :  { %v6208_v47 = vsel %vm6178_vm15, %v6163_v48, %v6193_v26  ;;  %v6210_v38 = vsel %vm6180_vm0, %v6165_v1, %v6195_v41  ;;  %v6164_v48 = vadd.f32 %v6137_v6, %v6089_v21  ;;  %v9856_v1 = vld [vmem:[%s13305_s11 + $0x208] sm:$0xff]   ;;  %v9858_v26 = vld [vmem:[%s13305_s11 + $0x240] sm:$0xff]   ;;  %v7877_v6 = vld [vmem:[#allocation13] ss:$0 sm:$0xff] }
 0x7dd   :  { %v6223_v3 = vpack.c.bf16 %v6208_v47, %v6208_v47  ;;  %v6225_v62 = vpack.c.bf16 %v6210_v38, %v6210_v38  ;;  %v6162_v0 = vadd.f32 %v6129_v11, %v6087_v8  ;;  %v9862_v47 = vld [vmem:[%s13305_s11 + $0x378] sm:$0xff]   ;;  %v9881_v63 = vld [vmem:[%s13305_s11 + $0x308] sm:$0xff]  }
 0x7de   :  { %8866 = vmatpush3.bf16.msra.mxu0 %v9828_v39  ;;  %8888 = vmatpush3.bf16.msra.mxu1 %v9829_v40  ;;  %v9857_v39 = vld [vmem:[%s13305_s11 + $0x288] sm:$0xff]   ;;  %v9859_v40 = vld [vmem:[%s13305_s11 + $0x2c0] sm:$0xff]   ;;  %vm6179_vm3 = vcmp.gt.f32.partialorder %v6164_v48, 0.0  ;;  %v9863_v38 = vld [vmem:[%s13305_s11 + $0x338] sm:$0xff]  }
 0x7df   :  { %8895 = vmatprep.subr.bf16.mxu0 %v9830_v30  ;;  %8917 = vmatprep.subr.bf16.mxu1 %v9831_v19  ;;  %v6192_v41 = vmul.f32 0.2, %v6162_v0  ;;  %vm6177_vm1 = vcmp.gt.f32.partialorder %v6162_v0, 0.0  ;;  %v6194_v30 = vmul.f32 0.2, %v6164_v48  ;;  %v9860_v19 = vld [vmem:[%s13305_s11 + $0x200] sm:$0xff]  }
 0x7e1   :  { %7309 = vmatmul.mubr.bf16.vlgmr.msra.gmra.mxu0 %v6218_v12  ;;  %v13098_v9 = vpop.f32.mrf.mxu0  ;;  %v13100_v51 = vpop.f32.mrf.mxu1  ;;  %7349 = vmatmul.mubr.bf16.vlgmr.msra.gmra.mxu1 %v6220_v25  ;;  %v6207_v12 = vsel %vm6177_vm1, %v6162_v0, %v6192_v41 }
 0x7e2   :  { %8896 = vmatpush3.bf16.msra.mxu0 %v9832_v35  ;;  %7388 = vmatprep.mubr.bf16.mxu0 %v6223_v3  ;;  %v6209_v35 = vsel %vm6179_vm3, %v6164_v48, %v6194_v30  ;;  %v9864_v3 = vld [vmem:[%s13305_s11 + $0x3b8] sm:$0xff]   ;;  %v6153_v52 = vrot.slane %v13100_v51, %v13498_v13 }
 0x7e3   :  { %v5974_v14 = vpop.f32.mrf.mxu0  ;;  %v9350_v20 = vpop.f32.mrf.mxu1  ;;  %8918 = vmatpush3.bf16.msra.mxu1 %v9833_v54  ;;  %7428 = vmatprep.mubr.bf16.mxu1 %v6225_v62  ;;  %v6222_v54 = vpack.c.bf16 %v6207_v12, %v6207_v12 }
 0x7e4   :  { %8897 = vmatprep.subr.bf16.mxu0 %v9834_v31  ;;  %8919 = vmatprep.subr.bf16.mxu1 %v9835_v27  ;;  %v6074_v43 = vrot.slane %v5974_v14, %v10400_v24  ;;  %v6224_v31 = vpack.c.bf16 %v6209_v35, %v6209_v35  ;;  %v9865_v27 = vld [vmem:[%s13305_s11 + $0x370] sm:$0xff]  }
 0x7e5   :  { %v5976_v56 = vpop.f32.mrf.mxu0  ;;  %v6016_v36 = vpop.f32.mrf.mxu1  ;;  %v9867_v20 = vld [vmem:[%s13305_s11 + $0x3b0] sm:$0xff]  }
 0x7e6   :  { %8898 = vmatpush3.bf16.msra.mxu0 %v9836_v57  ;;  %v6092_v23 = vmul.f32 %v6074_v43, %v12689_v44  ;;  %v6149_v44 = vrot.slane %v5974_v14, %v13498_v13  ;;  %v9866_v14 = vld [vmem:[%s13305_s11 + $0x330] sm:$0xff]   ;;  %v9868_v57 = vld [vmem:[%s13305_s11 + $0x368] sm:$0xff]   ;;  %v9871_v56 = vld [vmem:[%s13305_s11 + $0x360] sm:$0xff]  }
 0x7e7   :  { %v5977_v7 = vpop.f32.mrf.mxu0  ;;  %v9351_v45 = vpop.f32.mrf.mxu1  ;;  %8920 = vmatpush3.bf16.msra.mxu1 %v9837_v2  ;;  %8899 = vmatprep.subr.bf16.mxu0 %v9838_v16  ;;  %v9869_v2 = vld [vmem:[%s13305_s11 + $0x328] sm:$0xff]   ;;  %v9872_v36 = vld [vmem:[%s13305_s11 + $0x320] sm:$0xff]  }
 0x7e8   :  { %8921 = vmatprep.subr.bf16.mxu1 %v9839_v34  ;;  %v6167_v46 = vadd.f32 %v6149_v44, %v6092_v23  ;;  %v9870_v16 = vld [vmem:[%s13305_s11 + $0x3a8] sm:$0xff]   ;;  %v9873_v34 = vld [vmem:[%s13305_s11 + $0x3a0] sm:$0xff]   ;;  %v9874_v7 = vld [vmem:[%s13305_s11 + $0x358] sm:$0xff]   ;;  %v6070_v45 = vrot.slane %v13098_v9, %v10400_v24 }
 0x7ea   :  { %8900 = vmatpush3.bf16.msra.mxu0 %v9840_v4  ;;  %v6197_v5 = vmul.f32 0.2, %v6167_v46  ;;  %vm6182_vm4 = vcmp.gt.f32.partialorder %v6167_v46, 0.0  ;;  %v6078_v4 = vrot.slane %v13100_v51, %v10400_v24  ;;  %v9883_v51 = vld [vmem:[%s13305_s11 + $0x340] sm:$0xff]  }
 0x7eb   :  { %8922 = vmatpush3.bf16.msra.mxu1 %v9841_v15  ;;  %8901 = vmatprep.subr.bf16.mxu0 %v9842_v22  ;;  %v9875_v15 = vld [vmem:[%s13305_s11 + $0x318] sm:$0xff]  }
 0x7ec   :  { %8923 = vmatprep.subr.bf16.mxu1 %v9843_v61  ;;  %v6212_v25 = vsel %vm6182_vm4, %v6167_v46, %v6197_v5  ;;  %v9876_v22 = vld [vmem:[%s13305_s11 + $0x398] sm:$0xff]   ;;  %v9877_v61 = vld [vmem:[%s13305_s11 + $0x350] sm:$0xff]   ;;  %v6093_v24 = vmul.f32 %v6078_v4, %v12744_v55  ;;  %v9880_v55 = vld [vmem:[%s13305_s11 + $0x348] sm:$0xff]  }
 0x7ed   :  { %v6227_v62 = vpack.c.bf16 %v6212_v25, %v6212_v25 }
 0x7ee   :  { %8902 = vmatpush3.bf16.msra.mxu0 %v9844_v28  ;;  %v6091_v28 = vmul.f32 %v6070_v45, %v12739_v53  ;;  %v9879_v53 = vld [vmem:[%s13305_s11 + $0x390] sm:$0xff]  }
 0x7ef   :  { %8924 = vmatpush3.bf16.msra.mxu1 %v9845_v60  ;;  %8903 = vmatprep.subr.bf16.mxu0 %v9846_v18  ;;  %v6145_v60 = vrot.slane %v13098_v9, %v13498_v13  ;;  %v9878_v18 = vld [vmem:[%s13305_s11 + $0x310] sm:$0xff]   ;;  %v6168_v9 = vadd.f32 %v6153_v52, %v6093_v24  ;;  %v9882_v13 = vld [vmem:[%s13305_s11 + $0x388] sm:$0xff]  }
 0x7f0   :  { %8925 = vmatprep.subr.bf16.mxu1 %v9847_v32 }
 0x7f1   :  { %v6166_v32 = vadd.f32 %v6145_v60, %v6091_v28  ;;  %vm6183_vm5 = vcmp.gt.f32.partialorder %v6168_v9, 0.0 }
 0x7f2   :  { %8904 = vmatpush3.bf16.msra.mxu0 %v9848_v49  ;;  %v6198_v49 = vmul.f32 0.2, %v6168_v9 }
 0x7f3   :  { %8926 = vmatpush3.bf16.msra.mxu1 %v9849_v37  ;;  %8905 = vmatprep.subr.bf16.mxu0 %v9850_v50  ;;  %v6196_v43 = vmul.f32 0.2, %v6166_v32  ;;  %v9884_v37 = vld [vmem:[%s13305_s11 + $0x300] sm:$0xff]  }
 0x7f4   :  { %8927 = vmatprep.subr.bf16.mxu1 %v9851_v17  ;;  %v9885_v50 = vld [vmem:[%s13305_s11 + $0x380] sm:$0xff]   ;;  %v6213_v17 = vsel %vm6183_vm5, %v6168_v9, %v6198_v49  ;;  %s10245_s11 = smov [#allocation14]  }
 0x7f5   :  { %v6228_v11 = vpack.c.bf16 %v6213_v17, %v6213_v17  ;;  %s7524_s2 = sshll.u32 %s10245_s11, 4  ;;  %s7525_s2 = int_to_ptr.vmem [resolvable:$true] %s7524_s2 }
 0x7f6   :  { %8906 = vmatpush3.bf16.msra.mxu0 %v9852_v33  ;;  %s10201_s14 = scalar_lea.vmem %s7525_s2, 64  ;;  %p10206_p8 = scmp.lt.s32.totalorder %s7525_s2, %s7525_s2 }
 0x7f7   :  { %8928 = vmatpush3.bf16.msra.mxu1 %v9853_v42  ;;  %8907 = vmatprep.subr.bf16.mxu0 %v9854_v58  ;;  %p10202_p7 = scmp.ne.s32.totalorder %s7525_s2, %s10201_s14  ;;  %p10207_p9 = scmp.lt.s32.totalorder %s10201_s14, %s10201_s14 }
 0x7f8   :  { %8929 = vmatprep.subr.bf16.mxu1 %v9855_v29 }
 0x7f9   :  { %p10208_p10 = por %p10207_p9, %p10206_p8 }
 0x7fa   :  { %8908 = vmatpush3.bf16.msra.mxu0 %v9856_v1 }
 0x7fb   :  { %8930 = vmatpush3.bf16.msra.mxu1 %v9857_v39  ;;  %8909 = vmatprep.subr.bf16.mxu0 %v9858_v26  ;;  %p10209_p11 = pnand %p10208_p10, %p10202_p7 }
 0x7fc   :  { %8931 = vmatprep.subr.bf16.mxu1 %v9859_v40 }
 0x7fe   :  { %8910 = vmatpush3.bf16.msra.mxu0 %v9860_v19 }
 0x7ff   :  { %8932 = vmatpush3.bf16.msra.mxu1 %v9861_v59  ;;  %8939 = vmatprep.subr.bf16.mxu0 %v9862_v47 }
 0x800   :  { %9352 = vmatprep.subr.bf16.mxu1 %v13381_v10 }
 0x801   :  { %7389 = vmatmul.mubr.bf16.vlgmr.msra.gmra.mxu0 %v6222_v54 }
 0x802   :  { %7429 = vmatmul.mubr.bf16.vlgmr.msra.gmra.mxu1 %v6224_v31  ;;  %8940 = vmatpush3.bf16.msra.mxu0 %v9863_v38 }
 0x803   :  { %7468 = vmatprep.mubr.bf16.mxu0 %v6227_v62  ;;  %9353 = vmatpush3.bf16.msra.mxu1 %v9864_v3 }
 0x804   :  { %8941 = vmatprep.subr.bf16.mxu0 %v9865_v27  ;;  %9354 = vmatprep.subr.bf16.mxu1 %v13381_v10 }
 0x805   :  { %9368 = vmatprep.mubr.msk.bf16.mxu1 %vm10244_vm2, %v13381_v10  ;;  %vm6181_vm2 = vcmp.gt.f32.partialorder %v6166_v32, 0.0 }
 0x806   :  { %8942 = vmatpush3.bf16.msra.mxu0 %v9866_v14  ;;  %v6211_v8 = vsel %vm6181_vm2, %v6166_v32, %v6196_v43 }
 0x807   :  { %9355 = vmatpush3.bf16.msra.mxu1 %v9867_v20  ;;  %8943 = vmatprep.subr.bf16.mxu0 %v9868_v57  ;;  %v6226_v21 = vpack.c.bf16 %v6211_v8, %v6211_v8 }
 0x808   :  { %9356 = vmatprep.subr.bf16.mxu1 %v13381_v10 }
 0x80a   :  { %8944 = vmatpush3.bf16.msra.mxu0 %v9869_v2 }
 0x80b   :  { %9357 = vmatpush3.bf16.msra.mxu1 %v9870_v16  ;;  %8945 = vmatprep.subr.bf16.mxu0 %v9871_v56 }
 0x80c   :  { %9358 = vmatprep.subr.bf16.mxu1 %v13381_v10 }
 0x80e   :  { %8946 = vmatpush3.bf16.msra.mxu0 %v9872_v36 }
 0x80f   :  { %9359 = vmatpush3.bf16.msra.mxu1 %v9873_v34  ;;  %8947 = vmatprep.subr.bf16.mxu0 %v9874_v7 }
 0x810   :  { %9360 = vmatprep.subr.bf16.mxu1 %v13381_v10 }
 0x812   :  { %8948 = vmatpush3.bf16.msra.mxu0 %v9875_v15 }
 0x813   :  { %9361 = vmatpush3.bf16.msra.mxu1 %v9876_v22  ;;  %8949 = vmatprep.subr.bf16.mxu0 %v9877_v61 }
 0x814   :  { %9362 = vmatprep.subr.bf16.mxu1 %v13381_v10 }
 0x816   :  { %8950 = vmatpush3.bf16.msra.mxu0 %v9878_v18 }
 0x817   :  { %9363 = vmatpush3.bf16.msra.mxu1 %v9879_v53  ;;  %8951 = vmatprep.subr.bf16.mxu0 %v9880_v55 }
 0x818   :  { %9364 = vmatprep.subr.bf16.mxu1 %v13381_v10 }
 0x81a   :  { %8952 = vmatpush3.bf16.msra.mxu0 %v9881_v63 }
 0x81b   :  { %9365 = vmatpush3.bf16.msra.mxu1 %v9882_v13  ;;  %8953 = vmatprep.subr.bf16.mxu0 %v9883_v51 }
 0x81c   :  { %9366 = vmatprep.subr.bf16.mxu1 %v13381_v10 }
 0x81e   :  { %8954 = vmatpush3.bf16.msra.mxu0 %v9884_v37 }
 0x81f   :  { %9367 = vmatpush3.bf16.msra.mxu1 %v9885_v50 }
 0x821   :  { %7469 = vmatmul.mubr.bf16.vlgmr.msra.gmra.mxu0 %v6226_v21 }
 0x822   :  { %9369 = vmatmul.mubr.bf16.vlgmr.msra.gmra.mxu1 %v6228_v11 }
 0x881   :  { %v8823_v23 = vpop.f32.mrf.mxu0  ;;  %v8845_v33 = vpop.f32.mrf.mxu1 }
 0x883   :  { %v8824_v42 = vpop.f32.mrf.mxu0  ;;  %v8846_v58 = vpop.f32.mrf.mxu1 }
 0x884   :  { %v8825_v0 = vadd.f32 %v8824_v42, %v8823_v23  ;;  %v8847_v44 = vadd.f32 %v8846_v58, %v8845_v33 }
 0x885   :  { %v8826_v29 = vpop.f32.mrf.mxu0  ;;  %v8848_v48 = vpop.f32.mrf.mxu1 }
 0x886   :  { %v7231_v46 = vadd.f32 %v8825_v0, %v7877_v6 }
 0x887   :  { %v8827_v1 = vpop.f32.mrf.mxu0  ;;  %v8849_v39 = vpop.f32.mrf.mxu1 }
 0x888   :  { %v7271_v10 = vadd.f32 %v8847_v44, %v7231_v46 }
 0x8a1   :  { %v8867_v26 = vpop.f32.mrf.mxu0  ;;  %v8889_v41 = vpop.f32.mrf.mxu1 }
 0x8a3   :  { %v8868_v40 = vpop.f32.mrf.mxu0  ;;  %v8890_v30 = vpop.f32.mrf.mxu1 }
 0x8a4   :  { %v8869_v62 = vadd.f32 %v8868_v40, %v8867_v26  ;;  %v8891_v20 = vadd.f32 %v8890_v30, %v8889_v41 }
 0x8a5   :  { %v8870_v5 = vpop.f32.mrf.mxu0  ;;  %v8892_v19 = vpop.f32.mrf.mxu1 }
 0x8a6   :  { %v7311_v14 = vadd.f32 %v8869_v62, %v7271_v10 }
 0x8a7   :  { %v8871_v59 = vpop.f32.mrf.mxu0  ;;  %v8893_v47 = vpop.f32.mrf.mxu1 }
 0x8a8   :  { %v7351_v2 = vadd.f32 %v8891_v20, %v7311_v14 }
 0x8c1   :  { %v8911_v12 = vpop.f32.mrf.mxu0 }
 0x8c2   :  { %v8933_v35 = vpop.f32.mrf.mxu1 }
 0x8c3   :  { %v8912_v38 = vpop.f32.mrf.mxu0 }
 0x8c4   :  { %v8934_v25 = vpop.f32.mrf.mxu1  ;;  %v8913_v57 = vadd.f32 %v8912_v38, %v8911_v12 }
 0x8c5   :  { %v8914_v54 = vpop.f32.mrf.mxu0  ;;  %v8935_v36 = vadd.f32 %v8934_v25, %v8933_v35 }
 0x8c6   :  { %v8936_v3 = vpop.f32.mrf.mxu1  ;;  %v7391_v16 = vadd.f32 %v8913_v57, %v7351_v2 }
 0x8c7   :  { %v8915_v31 = vpop.f32.mrf.mxu0 }
 0x8c8   :  { %v8937_v27 = vpop.f32.mrf.mxu1  ;;  %v7431_v45 = vadd.f32 %v8935_v36, %v7391_v16 }
 0x8e1   :  { %v8955_v56 = vpop.f32.mrf.mxu0 }
 0x8e2   :  { %v7510_v34 = vpop.f32.mrf.mxu1 }
 0x8e3   :  { %v8956_v7 = vpop.f32.mrf.mxu0 }
 0x8e4   :  { %v8957_v4 = vadd.f32 %v8956_v7, %v8955_v56  ;;  %v9370_v15 = vpop.f32.mrf.mxu1 }
 0x8e5   :  { %v8958_v22 = vpop.f32.mrf.mxu0 }
 0x8e6   :  { %v7471_v61 = vadd.f32 %v8957_v4, %v7431_v45  ;;  %v7513_v28 = vpop.f32.mrf.mxu1 }
 0x8e7   :  { %v8959_v24 = vpop.f32.mrf.mxu0 }
 0x8e8   :  { %v7511_v60 = vadd.f32 %v7510_v34, %v7471_v61  ;;  %v9371_v18 = vpop.f32.mrf.mxu1 }
 0x8ea   :  { %9918 = vtanh.f32 %v7511_v60 }
 0x8f7   :  { %v9919_v52 = vpop.eup %9918 }
 0x8f8   :  { %7517 = vst [vmem:[#allocation14] sm:$0xf] %v9919_v52 }
 0x8f9   :  { %10212 = shalt.err (!%p10209_p11)
}
 0x8fa   :  { %7527 = dma.vmem_to_hbm [thread:$0]  %s7525_s2, 64, %s13307_s13, [#allocation4]  }
 0x8fb   :  { %10229 = dma.done.wait [#allocation4], 64  }
 0x8fc   :  { %10230 = vsyncadd [#allocation4], 4294967232 }
 0x8fd   :  { %7531 = vsyncpa [#allocation3], 1 }
 0x8fe   :  { %7532 = vsyncpa [#allocation6], 1 }
 0x8ff   :  { %7533 = vsyncpa [#allocation9], 1 }
 0x900   :  { %7534 = vsyncpa [#allocation12], 1 }
 0x901   :  { %7535 = vsyncpa [#allocation4], 1 }

</bundles_post_ra>
